<compile_context>
chip_gen: v7x
topology: tpu7x:2x2x1
jax: 0.10.0
libtpu: 0.0.40
codegen_flags: <defaults>
</compile_context>

<pallas_src>
import jax
import jax.numpy as jnp
from jax import lax
from jax.experimental import pallas as pl
from jax.experimental.pallas import tpu as pltpu


def _silu(x):
    return x * jax.nn.sigmoid(x)


def _round_up(x, m):
    return ((x + m - 1) // m) * m


_VMEM_LIMIT = 32 * 1024 * 1024  # explicit budget, safe on v5e/v6e/v7x


# ----------------------------------------------------------------------------
# Fused GatedMLP core (normalization=None):
#   h   = silu(x @ [W1|G1] + [b1|c1])                  -> (t, 2H), lane dense
#   pre = h @ blockdiag(W2, G2) + [b2|c2]              -> (t, 2*dout)
#   out = silu(pre[:, :dout]) * sigmoid(pre[:, dout:])
# x is never concatenated/materialized: the first matmul is split into 4
# partial matmuls over the input segments (bonds_i, angle, atom, bonds_j).
# All row operands arrive already in bf16; accumulation / bias / elementwise
# math are f32.
# ----------------------------------------------------------------------------
def _gated_core(xi, ang, aux, xj, w1_ref, b1, w2_ref, b2, dout):
    nb, na, nc = xi.shape[1], ang.shape[1], aux.shape[1]

    def seg(v, r0, r1):
        return jnp.dot(v.astype(jnp.bfloat16), w1_ref[r0:r1, :],
                       preferred_element_type=jnp.float32)

    # TODO(synk): v5e-specific micro-opt: a single K=Din matmul over a
    # VMEM-concatenated x would save 3 MRF pops + 3 VALU adds; kept as 4
    # partial matmuls since these kernels are bandwidth-bound on v6e/v7x and
    # sub-128-lane concats add relayout work.
    h = (seg(xi, 0, nb)
         + seg(ang, nb, nb + na)
         + seg(aux, nb + na, nb + na + nc)
         + seg(xj, nb + na + nc, nb + na + nc + nb)
         + b1)
    h = _silu(h).astype(jnp.bfloat16)
    pre = jnp.dot(h, w2_ref[...], preferred_element_type=jnp.float32) + b2
    return _silu(pre[:, :dout]) * jax.nn.sigmoid(pre[:, dout:])


def _node_msg_kernel_w(xi_ref, ang_ref, aux_ref, xj_ref, w_ref,
                       w1_ref, b1_ref, w2_ref, b2_ref, out_ref):
    dout = out_ref.shape[1]
    msg = _gated_core(xi_ref[...], ang_ref[...], aux_ref[...], xj_ref[...],
                      w1_ref, b1_ref[...], w2_ref, b2_ref[...], dout)
    out_ref[...] = (msg * w_ref[...].astype(jnp.float32)).astype(out_ref.dtype)


def _node_msg_kernel_now(xi_ref, ang_ref, aux_ref, xj_ref,
                         w1_ref, b1_ref, w2_ref, b2_ref, out_ref):
    dout = out_ref.shape[1]
    msg = _gated_core(xi_ref[...], ang_ref[...], aux_ref[...], xj_ref[...],
                      w1_ref, b1_ref[...], w2_ref, b2_ref[...], dout)
    out_ref[...] = msg.astype(out_ref.dtype)


def _edge_update_kernel(xi_ref, ang_ref, aux_ref, xj_ref,
                        w1_ref, b1_ref, w2_ref, b2_ref, out_ref):
    dout = out_ref.shape[1]
    ang = ang_ref[...]
    upd = _gated_core(xi_ref[...], ang, aux_ref[...], xj_ref[...],
                      w1_ref, b1_ref[...], w2_ref, b2_ref[...], dout)
    out_ref[...] = (ang.astype(jnp.float32) + upd).astype(out_ref.dtype)


def _fuse_gated_params(p):
    """Pack (W1,b1,W2,b2,G1,c1,G2,c2) -> lane-dense fused bf16 weights."""
    w1, b1, w2, b2, g1, c1, g2, c2 = p
    h, dout = w2.shape
    w1f = jnp.concatenate([w1, g1], axis=1).astype(jnp.bfloat16)       # (Din, 2H)
    b1f = jnp.concatenate([b1, c1], axis=1).astype(jnp.float32)        # (1, 2H)
    w2f = jnp.zeros((2 * h, 2 * dout), jnp.float32)
    w2f = w2f.at[:h, :dout].set(w2).at[h:, dout:].set(g2)
    w2f = w2f.astype(jnp.bfloat16)                                     # (2H, 2*dout)
    b2f = jnp.concatenate([b2, c2], axis=1).astype(jnp.float32)        # (1, 2*dout)
    return w1f, b1f, w2f, b2f


def _gated_mlp_call(kernel, row_inputs, fused, dout, tile, out_dtype):
    """row_inputs: tuple of (rows, f) bf16 arrays streamed per tile; weights const."""
    w1f, b1f, w2f, b2f = fused
    rows = row_inputs[0].shape[0]
    assert rows % tile == 0
    row = lambda i: (i, 0)
    const = lambda i: (0, 0)
    in_specs = [pl.BlockSpec((tile, v.shape[1]), row) for v in row_inputs]
    in_specs += [
        pl.BlockSpec(w1f.shape, const),
        pl.BlockSpec(b1f.shape, const),
        pl.BlockSpec(w2f.shape, const),
        pl.BlockSpec(b2f.shape, const),
    ]
    return pl.pallas_call(
        kernel,
        out_shape=jax.ShapeDtypeStruct((rows, dout), out_dtype),
        grid_spec=pltpu.PrefetchScalarGridSpec(
            num_scalar_prefetch=0,
            grid=(rows // tile,),
            in_specs=in_specs,
            out_specs=pl.BlockSpec((tile, dout), row),
        ),
        compiler_params=pltpu.CompilerParams(
            dimension_semantics=("parallel",),
            vmem_limit_bytes=_VMEM_LIMIT),
    )(*row_inputs, w1f, b1f, w2f, b2f)


# ----------------------------------------------------------------------------
# Tiled scatter-sum (one-hot matmul) + output linear + node residual:
#   acc[i-tile] += onehot(node_tile x edge_tile) @ messages(edge_tile, B)
#   out = node_features_tile + acc @ W_out          (at last edge tile)
# grid = (node tiles "parallel", edge tiles "arbitrary"); f32 VMEM accumulator.
# Edges are sorted by dst; scalar-prefetched per-node-tile edge-tile ranges
# [lo, hi] bound the sweep: out-of-range steps clamp to the same block index
# (DMA skipped) and compute is gated off with pl.when.  Padded edges carry a
# sentinel dst >= n_pad so they never match a node id.
# ----------------------------------------------------------------------------
def _aggregate_out_kernel(lo_ref, hi_ref, dst_ref, msg_ref, wout_ref, nf_ref,
                          out_ref, acc_ref):
    i = pl.program_id(0)
    k = pl.program_id(1)

    @pl.when(k == 0)
    def _():
        acc_ref[...] = jnp.zeros_like(acc_ref)

    @pl.when((k >= lo_ref[i]) & (k <= hi_ref[i]))
    def _():
        tn = out_ref.shape[0]
        te = dst_ref.shape[1]
        node_ids = i * tn + lax.broadcasted_iota(jnp.int32, (tn, te), 0)
        onehot = (node_ids == dst_ref[...]).astype(jnp.bfloat16)    # (tn, te)
        acc_ref[...] += jnp.dot(onehot, msg_ref[...],
                                preferred_element_type=jnp.float32)  # f32 acc

    @pl.when(k == pl.num_programs(1) - 1)
    def _():
        upd = jnp.dot(acc_ref[...].astype(jnp.bfloat16), wout_ref[...],
                      preferred_element_type=jnp.float32)
        out_ref[...] = (nf_ref[...] + upd).astype(out_ref.dtype)


def aggregate_project_residual(lo_c, hi_m1, dst2d, messages, w_out_bf,
                               node_features_pad, node_tile, edge_tile):
    n_pad, b = node_features_pad.shape
    e_pad = messages.shape[0]
    assert n_pad % node_tile == 0 and e_pad % edge_tile == 0

    def edge_blk(i, k, lo, hi):
        return (0, jnp.clip(k, lo[i], hi[i]))

    def msg_blk(i, k, lo, hi):
        return (jnp.clip(k, lo[i], hi[i]), 0)

    return pl.pallas_call(
        _aggregate_out_kernel,
        out_shape=jax.ShapeDtypeStruct((n_pad, b), jnp.float32),
        grid_spec=pltpu.PrefetchScalarGridSpec(
            num_scalar_prefetch=2,
            grid=(n_pad // node_tile, e_pad // edge_tile),
            in_specs=[
                pl.BlockSpec((1, edge_tile), edge_blk),
                pl.BlockSpec((edge_tile, b), msg_blk),
                pl.BlockSpec(w_out_bf.shape, lambda i, k, lo, hi: (0, 0)),
                pl.BlockSpec((node_tile, b), lambda i, k, lo, hi: (i, 0)),
            ],
            out_specs=pl.BlockSpec((node_tile, b), lambda i, k, lo, hi: (i, 0)),
            scratch_shapes=[pltpu.VMEM((node_tile, b), jnp.float32)],
        ),
        compiler_params=pltpu.CompilerParams(
            dimension_semantics=("parallel", "arbitrary"),
            vmem_limit_bytes=_VMEM_LIMIT),
    )(lo_c, hi_m1, dst2d, messages, w_out_bf, node_features_pad)


# ----------------------------------------------------------------------------
# CHGNetBondGraphBlock.forward
# ----------------------------------------------------------------------------
def chgnet_bond_graph_block(params, graph, atom_features, bond_features,
                            angle_features, shared_node_weights,
                            edge_tile=1024, node_tile=512):
    bond_index = graph["bond_index"]          # (N,)  line-graph node -> bond id
    src, dst = graph["src"], graph["dst"]     # (E,)  line-graph edges (angles)
    center_atom_index = graph["center_atom_index"]  # (E,)

    node_features = bond_features[bond_index]               # (N, B) f32
    n_nodes, B = node_features.shape
    n_edges, A = angle_features.shape

    # Clamp tiles to the padded problem size (multiples of 256 keep sublane/
    # lane constraints and MXU K-dims comfortable).  For v7x, keep tiles small
    # enough that parallel grid axes retain >= 2 steps on production graphs.
    edge_tile = min(edge_tile, _round_up(n_edges, 256))
    node_tile = min(node_tile, _round_up(n_nodes, 256))
    e_pad = _round_up(n_edges, edge_tile)
    n_pad = _round_up(n_nodes, node_tile)
    pe = e_pad - n_edges

    src_p = jnp.pad(src, (0, pe))
    dst_p = jnp.pad(dst, (0, pe))
    cai_p = jnp.pad(center_atom_index, (0, pe))

    # bf16 copies of everything streamed per edge row: halves the dominant
    # input DMA of the memory-bound gated-MLP kernels (f32 math inside).
    node_bf = node_features.astype(jnp.bfloat16)
    atom_bf = atom_features.astype(jnp.bfloat16)
    ang_bf = jnp.pad(angle_features, ((0, pe), (0, 0))).astype(jnp.bfloat16)

    # TODO(synk): for production graphs where node_features fits VMEM, keep it
    # whole-array resident (memory_space=pl.ANY + one DMA) and gather rows
    # in-kernel via scalar-prefetched src/dst, instead of materializing the
    # (E_pad, B) gathers in HBM (written by XLA, re-read by the kernel).
    bonds_i = node_bf[src_p]                                 # (E_pad, B) bf16
    bonds_j = node_bf[dst_p]
    aux = atom_bf[cai_p]                                     # (E_pad, C) bf16

    node_fused = _fuse_gated_params(params["node_mlp"])
    edge_fused = _fuse_gated_params(params["edge_mlp"])

    # ---- node (bond) messages (bf16 out, scaled by fused w_i*w_j if given) --
    if shared_node_weights is None:
        messages = _gated_mlp_call(
            _node_msg_kernel_now, (bonds_i, ang_bf, aux, bonds_j),
            node_fused, dout=B, tile=edge_tile, out_dtype=jnp.bfloat16)
    else:
        wprod = (shared_node_weights[src_p]
                 * shared_node_weights[dst_p]).astype(jnp.bfloat16)
        messages = _gated_mlp_call(
            _node_msg_kernel_w, (bonds_i, ang_bf, aux, bonds_j, wprod),
            node_fused, dout=B, tile=edge_tile, out_dtype=jnp.bfloat16)

    # ---- scatter-sum + W_out + residual, with dst-sorted edge-tile ranges ---
    n_tiles = n_pad // node_tile
    e_tiles = e_pad // edge_tile
    dst_key = jnp.concatenate(
        [dst.astype(jnp.int32),
         jnp.full((pe,), n_pad, jnp.int32)])      # padded edges: sort last, never match
    order = jnp.argsort(dst_key)
    dst_sorted = dst_key[order]
    messages_sorted = messages[order]
    bounds = jnp.searchsorted(
        dst_sorted,
        jnp.arange(n_tiles + 1, dtype=jnp.int32) * node_tile).astype(jnp.int32)
    e_lo, e_hi = bounds[:-1], bounds[1:]
    lo_c = jnp.minimum(e_lo // edge_tile, e_tiles - 1).astype(jnp.int32)
    hi_m1 = jnp.where(e_hi > e_lo, (e_hi - 1) // edge_tile, lo_c)
    hi_m1 = jnp.clip(hi_m1, lo_c, e_tiles - 1).astype(jnp.int32)

    node_features_pad = jnp.pad(node_features, ((0, n_pad - n_nodes), (0, 0)))
    new_nodes = aggregate_project_residual(
        lo_c, hi_m1, dst_sorted.reshape(1, e_pad), messages_sorted,
        params["w_out"].astype(jnp.bfloat16), node_features_pad,
        node_tile, edge_tile)[:n_nodes]                      # (N, B) f32

    # ---- edge (angle) update, using the updated node features --------------
    new_nodes_bf = new_nodes.astype(jnp.bfloat16)
    nb_i = new_nodes_bf[src_p]
    nb_j = new_nodes_bf[dst_p]
    new_angles = _gated_mlp_call(
        _edge_update_kernel, (nb_i, ang_bf, aux, nb_j),
        edge_fused, dout=A, tile=edge_tile, out_dtype=jnp.float32)[:n_edges]

    # dropout p=0.0 -> Identity; scatter updated bonds back.
    # TODO(synk): donate/alias bond_features (jit donate_argnums /
    # input_output_aliases) so this scatter happens in place per layer.
    new_bond_features = bond_features.at[bond_index].set(new_nodes)
    return new_bond_features, new_angles


# ----------------------------------------------------------------------------
# Pure-JAX f32 reference (no Pallas) for correctness check
# ----------------------------------------------------------------------------
def _ref_gated_mlp(x, p, scale):
    w1, b1, w2, b2, g1, c1, g2, c2 = p
    y = _silu(_silu(x @ w1 + b1) @ w2 + b2)
    g = jax.nn.sigmoid(_silu(x @ g1 + c1) @ g2 + c2)
    return y * g * scale


def reference(params, graph, atom_features, bond_features, angle_features,
              shared_node_weights):
    bond_index, src, dst = graph["bond_index"], graph["src"], graph["dst"]
    nodes = bond_features[bond_index]
    aux = atom_features[graph["center_atom_index"]]
    x = jnp.concatenate([nodes[src], angle_features, aux, nodes[dst]], axis=1)
    scale = shared_node_weights[src] * shared_node_weights[dst]
    msg = _ref_gated_mlp(x, params["node_mlp"], scale)
    fu = jax.ops.segment_sum(msg, dst, num_segments=nodes.shape[0])
    new_nodes = nodes + fu @ params["w_out"]
    x2 = jnp.concatenate([new_nodes[src], angle_features, aux, new_nodes[dst]], axis=1)
    eu = _ref_gated_mlp(x2, params["edge_mlp"],
                        jnp.ones((x2.shape[0], angle_features.shape[1]), jnp.float32))
    new_angles = angle_features + eu
    new_bonds = bond_features.at[bond_index].set(new_nodes)
    return new_bonds, new_angles


if __name__ == "__main__":
    # sizes (small, consistent with the module)
    num_atoms, num_bonds = 10, 40
    n_nodes, n_edges = 24, 48          # line-graph nodes (bonds in cutoff) / edges (angles)
    C, B, A, H = 16, 32, 16, 64        # atom / bond / angle feats, hidden dim
    Din = 2 * B + A + C                # 96

    key = jax.random.PRNGKey(0)
    keys = jax.random.split(key, 21)

    def init(k, shape, scl=0.1):
        return (scl * jax.random.normal(k, shape)).astype(jnp.float32)

    node_mlp = (init(keys[0], (Din, H)), init(keys[1], (1, H)),
                init(keys[2], (H, B)), init(keys[3], (1, B)),
                init(keys[4], (Din, H)), init(keys[5], (1, H)),
                init(keys[6], (H, B)), init(keys[7], (1, B)))
    edge_mlp = (init(keys[8], (Din, H)), init(keys[9], (1, H)),
                init(keys[10], (H, A)), init(keys[11], (1, A)),
                init(keys[12], (Din, H)), init(keys[13], (1, H)),
                init(keys[14], (H, A)), init(keys[15], (1, A)))
    w_out = init(keys[16], (B, B))     # node_out_func Linear(B,B,bias=False), stored (in,out)
    params = dict(node_mlp=node_mlp, edge_mlp=edge_mlp, w_out=w_out)

    atom_features = init(keys[17], (num_atoms, C), 1.0)
    bond_features = init(keys[18], (num_bonds, B), 1.0)
    angle_features = init(keys[19], (n_edges, A), 1.0)
    shared_node_weights = init(keys[20], (n_nodes, B), 1.0)

    kidx = jax.random.split(jax.random.PRNGKey(1), 4)
    graph = dict(
        bond_index=jax.random.permutation(kidx[0], num_bonds)[:n_nodes].astype(jnp.int32),
        src=jax.random.randint(kidx[1], (n_edges,), 0, n_nodes, jnp.int32),
        dst=jax.random.randint(kidx[2], (n_edges,), 0, n_nodes, jnp.int32),
        center_atom_index=jax.random.randint(kidx[3], (n_edges,), 0, num_atoms, jnp.int32),
    )

    fwd = jax.jit(chgnet_bond_graph_block)
    new_bonds, new_angles = fwd(params, graph, atom_features, bond_features,
                                angle_features, shared_node_weights)
    jax.block_until_ready((new_bonds, new_angles))

    ref_bonds, ref_angles = reference(params, graph, atom_features, bond_features,
                                      angle_features, shared_node_weights)
    assert new_bonds.shape == (num_bonds, B) and new_angles.shape == (n_edges, A)
    # bf16 streams / bf16 messages (f32 accumulation) -> compare against the
    # f32 reference with a bf16-commensurate tolerance.
    assert jnp.allclose(new_bonds, ref_bonds, atol=5e-2, rtol=5e-2)
    assert jnp.allclose(new_angles, ref_angles, atol=5e-2, rtol=5e-2)
    print("KERNEL_OK")
</pallas_src>

<mosaic_0001>
module attributes {stable_mosaic.version = 11 : i64} {
  func.func @_node_msg_kernel_w(%arg0: i32, %arg1: memref<256x32xbf16, #tpu.memory_space<vmem>>, %arg2: memref<256x16xbf16, #tpu.memory_space<vmem>>, %arg3: memref<256x16xbf16, #tpu.memory_space<vmem>>, %arg4: memref<256x32xbf16, #tpu.memory_space<vmem>>, %arg5: memref<256x32xbf16, #tpu.memory_space<vmem>>, %arg6: memref<96x128xbf16, #tpu.memory_space<vmem>>, %arg7: memref<1x128xf32, #tpu.memory_space<vmem>>, %arg8: memref<128x64xbf16, #tpu.memory_space<vmem>>, %arg9: memref<1x64xf32, #tpu.memory_space<vmem>>, %arg10: memref<256x32xbf16, #tpu.memory_space<vmem>>) attributes {dimension_semantics = [#tpu.dimension_semantics<parallel>], iteration_bounds = array<i64: 1>, scalar_prefetch = 0 : i64, scratch_operands = 0 : i64, tpu.core_type = #tpu.core_type<tc>, window_params = [{transform_indices = @transform_0, window_bounds = array<i64: 256, 32>}, {transform_indices = @transform_1, window_bounds = array<i64: 256, 16>}, {transform_indices = @transform_2, window_bounds = array<i64: 256, 16>}, {transform_indices = @transform_3, window_bounds = array<i64: 256, 32>}, {transform_indices = @transform_4, window_bounds = array<i64: 256, 32>}, {pipeline_mode = #tpu.pipeline_mode<synchronous>, transform_indices = @transform_5, window_bounds = array<i64: 96, 128>}, {pipeline_mode = #tpu.pipeline_mode<synchronous>, transform_indices = @transform_6, window_bounds = array<i64: 1, 128>}, {pipeline_mode = #tpu.pipeline_mode<synchronous>, transform_indices = @transform_7, window_bounds = array<i64: 128, 64>}, {pipeline_mode = #tpu.pipeline_mode<synchronous>, transform_indices = @transform_8, window_bounds = array<i64: 1, 64>}, {transform_indices = @transform_9, window_bounds = array<i64: 256, 32>}]} {
    %c0 = arith.constant 0 : index
    %c0_0 = arith.constant 0 : index
    %0 = vector.load %arg1[%c0, %c0_0] : memref<256x32xbf16, #tpu.memory_space<vmem>>, vector<256x32xbf16>
    %c0_1 = arith.constant 0 : index
    %c0_2 = arith.constant 0 : index
    %1 = vector.load %arg2[%c0_1, %c0_2] : memref<256x16xbf16, #tpu.memory_space<vmem>>, vector<256x16xbf16>
    %c0_3 = arith.constant 0 : index
    %c0_4 = arith.constant 0 : index
    %2 = vector.load %arg3[%c0_3, %c0_4] : memref<256x16xbf16, #tpu.memory_space<vmem>>, vector<256x16xbf16>
    %c0_5 = arith.constant 0 : index
    %c0_6 = arith.constant 0 : index
    %3 = vector.load %arg4[%c0_5, %c0_6] : memref<256x32xbf16, #tpu.memory_space<vmem>>, vector<256x32xbf16>
    %c0_7 = arith.constant 0 : index
    %c0_8 = arith.constant 0 : index
    %4 = vector.load %arg7[%c0_7, %c0_8] : memref<1x128xf32, #tpu.memory_space<vmem>>, vector<1x128xf32>
    %c0_9 = arith.constant 0 : index
    %c0_10 = arith.constant 0 : index
    %5 = vector.load %arg9[%c0_9, %c0_10] : memref<1x64xf32, #tpu.memory_space<vmem>>, vector<1x64xf32>
    %c0_11 = arith.constant 0 : index
    %c0_12 = arith.constant 0 : index
    %6 = vector.load %arg6[%c0_11, %c0_12] : memref<96x128xbf16, #tpu.memory_space<vmem>>, vector<32x128xbf16>
    %cst = arith.constant dense<0.000000e+00> : vector<256x128xf32>
    %7 = tpu.matmul %0, %6, %cst {dimension_numbers = #tpu.dot_dimension_numbers<[1], [0], [0], [1], [0, 0, 1, 1], [], []>} : vector<256x32xbf16>, vector<32x128xbf16>, vector<256x128xf32> -> vector<256x128xf32>
    %c32 = arith.constant 32 : index
    %c0_13 = arith.constant 0 : index
    %8 = vector.load %arg6[%c32, %c0_13] : memref<96x128xbf16, #tpu.memory_space<vmem>>, vector<16x128xbf16>
    %cst_14 = arith.constant dense<0.000000e+00> : vector<256x128xf32>
    %9 = tpu.matmul %1, %8, %cst_14 {dimension_numbers = #tpu.dot_dimension_numbers<[1], [0], [0], [1], [0, 0, 1, 1], [], []>} : vector<256x16xbf16>, vector<16x128xbf16>, vector<256x128xf32> -> vector<256x128xf32>
    %10 = arith.addf %7, %9 : vector<256x128xf32>
    %c48 = arith.constant 48 : index
    %c0_15 = arith.constant 0 : index
    %11 = vector.load %arg6[%c48, %c0_15] : memref<96x128xbf16, #tpu.memory_space<vmem>>, vector<16x128xbf16>
    %cst_16 = arith.constant dense<0.000000e+00> : vector<256x128xf32>
    %12 = tpu.matmul %2, %11, %cst_16 {dimension_numbers = #tpu.dot_dimension_numbers<[1], [0], [0], [1], [0, 0, 1, 1], [], []>} : vector<256x16xbf16>, vector<16x128xbf16>, vector<256x128xf32> -> vector<256x128xf32>
    %13 = arith.addf %10, %12 : vector<256x128xf32>
    %c64 = arith.constant 64 : index
    %c0_17 = arith.constant 0 : index
    %14 = vector.load %arg6[%c64, %c0_17] : memref<96x128xbf16, #tpu.memory_space<vmem>>, vector<32x128xbf16>
    %cst_18 = arith.constant dense<0.000000e+00> : vector<256x128xf32>
    %15 = tpu.matmul %3, %14, %cst_18 {dimension_numbers = #tpu.dot_dimension_numbers<[1], [0], [0], [1], [0, 0, 1, 1], [], []>} : vector<256x32xbf16>, vector<32x128xbf16>, vector<256x128xf32> -> vector<256x128xf32>
    %16 = arith.addf %13, %15 : vector<256x128xf32>
    %17 = vector.broadcast %4 : vector<1x128xf32> to vector<256x128xf32>
    %18 = arith.addf %16, %17 : vector<256x128xf32>
    %19 = arith.negf %18 : vector<256x128xf32>
    %20 = math.exp %19 : vector<256x128xf32>
    %cst_19 = arith.constant 1.000000e+00 : f32
    %21 = vector.broadcast %cst_19 : f32 to vector<256x128xf32>
    %22 = arith.addf %21, %20 : vector<256x128xf32>
    %23 = arith.divf %21, %22 : vector<256x128xf32>
    %24 = arith.mulf %18, %23 : vector<256x128xf32>
    %25 = arith.truncf %24 : vector<256x128xf32> to vector<256x128xbf16>
    %c0_20 = arith.constant 0 : index
    %c0_21 = arith.constant 0 : index
    %26 = vector.load %arg8[%c0_20, %c0_21] : memref<128x64xbf16, #tpu.memory_space<vmem>>, vector<128x64xbf16>
    %cst_22 = arith.constant dense<0.000000e+00> : vector<256x64xf32>
    %27 = tpu.matmul %25, %26, %cst_22 {dimension_numbers = #tpu.dot_dimension_numbers<[1], [0], [0], [1], [0, 0, 1, 1], [], []>} : vector<256x128xbf16>, vector<128x64xbf16>, vector<256x64xf32> -> vector<256x64xf32>
    %28 = vector.broadcast %5 : vector<1x64xf32> to vector<256x64xf32>
    %29 = arith.addf %27, %28 : vector<256x64xf32>
    %30 = vector.extract_strided_slice %29 {offsets = [0, 0], sizes = [256, 32], strides = [1, 1]} : vector<256x64xf32> to vector<256x32xf32>
    %31 = arith.negf %30 : vector<256x32xf32>
    %32 = math.exp %31 : vector<256x32xf32>
    %cst_23 = arith.constant 1.000000e+00 : f32
    %33 = vector.broadcast %cst_23 : f32 to vector<256x32xf32>
    %34 = arith.addf %33, %32 : vector<256x32xf32>
    %35 = arith.divf %33, %34 : vector<256x32xf32>
    %36 = arith.mulf %30, %35 : vector<256x32xf32>
    %37 = vector.extract_strided_slice %29 {offsets = [0, 32], sizes = [256, 32], strides = [1, 1]} : vector<256x64xf32> to vector<256x32xf32>
    %38 = arith.negf %37 : vector<256x32xf32>
    %39 = math.exp %38 : vector<256x32xf32>
    %cst_24 = arith.constant 1.000000e+00 : f32
    %40 = vector.broadcast %cst_24 : f32 to vector<256x32xf32>
    %41 = arith.addf %40, %39 : vector<256x32xf32>
    %42 = arith.divf %40, %41 : vector<256x32xf32>
    %43 = arith.mulf %36, %42 : vector<256x32xf32>
    %c0_25 = arith.constant 0 : index
    %c0_26 = arith.constant 0 : index
    %44 = vector.load %arg5[%c0_25, %c0_26] : memref<256x32xbf16, #tpu.memory_space<vmem>>, vector<256x32xbf16>
    %45 = arith.extf %44 : vector<256x32xbf16> to vector<256x32xf32>
    %46 = arith.mulf %43, %45 : vector<256x32xf32>
    %47 = arith.truncf %46 : vector<256x32xf32> to vector<256x32xbf16>
    %c0_27 = arith.constant 0 : index
    %c0_28 = arith.constant 0 : index
    %48 = vector.load %arg10[%c0_27, %c0_28] : memref<256x32xbf16, #tpu.memory_space<vmem>>, vector<256x32xbf16>
    tpu.vector_store %arg10[%c0_27, %c0_28], %47 {strides = array<i32>} : memref<256x32xbf16, #tpu.memory_space<vmem>>, vector<256x32xbf16>,
    return
  }
  func.func @transform_0(%arg0: i32) -> (i32, i32) {
    %c0_i32 = arith.constant 0 : i32
    %c0_i32_0 = arith.constant 0 : i32
    return %arg0, %c0_i32 : i32, i32
  }
  func.func @transform_1(%arg0: i32) -> (i32, i32) {
    %c0_i32 = arith.constant 0 : i32
    %c0_i32_0 = arith.constant 0 : i32
    return %arg0, %c0_i32 : i32, i32
  }
  func.func @transform_2(%arg0: i32) -> (i32, i32) {
    %c0_i32 = arith.constant 0 : i32
    %c0_i32_0 = arith.constant 0 : i32
    return %arg0, %c0_i32 : i32, i32
  }
  func.func @transform_3(%arg0: i32) -> (i32, i32) {
    %c0_i32 = arith.constant 0 : i32
    %c0_i32_0 = arith.constant 0 : i32
    return %arg0, %c0_i32 : i32, i32
  }
  func.func @transform_4(%arg0: i32) -> (i32, i32) {
    %c0_i32 = arith.constant 0 : i32
    %c0_i32_0 = arith.constant 0 : i32
    return %arg0, %c0_i32 : i32, i32
  }
  func.func @transform_5(%arg0: i32) -> (i32, i32) {
    %c0_i32 = arith.constant 0 : i32
    %c0_i32_0 = arith.constant 0 : i32
    %c0_i32_1 = arith.constant 0 : i32
    return %c0_i32, %c0_i32_0 : i32, i32
  }
  func.func @transform_6(%arg0: i32) -> (i32, i32) {
    %c0_i32 = arith.constant 0 : i32
    %c0_i32_0 = arith.constant 0 : i32
    %c0_i32_1 = arith.constant 0 : i32
    return %c0_i32, %c0_i32_0 : i32, i32
  }
  func.func @transform_7(%arg0: i32) -> (i32, i32) {
    %c0_i32 = arith.constant 0 : i32
    %c0_i32_0 = arith.constant 0 : i32
    %c0_i32_1 = arith.constant 0 : i32
    return %c0_i32, %c0_i32_0 : i32, i32
  }
  func.func @transform_8(%arg0: i32) -> (i32, i32) {
    %c0_i32 = arith.constant 0 : i32
    %c0_i32_0 = arith.constant 0 : i32
    %c0_i32_1 = arith.constant 0 : i32
    return %c0_i32, %c0_i32_0 : i32, i32
  }
  func.func @transform_9(%arg0: i32) -> (i32, i32) {
    %c0_i32 = arith.constant 0 : i32
    %c0_i32_0 = arith.constant 0 : i32
    return %arg0, %c0_i32 : i32, i32
  }
}

module attributes {stable_mosaic.version = 11 : i64} {
  func.func @_aggregate_out_kernel(%arg0: i32, %arg1: i32, %arg2: memref<1xi32, #tpu.memory_space<smem>>, %arg3: memref<1xi32, #tpu.memory_space<smem>>, %arg4: memref<1x256xi32, #tpu.memory_space<vmem>>, %arg5: memref<256x32xbf16, #tpu.memory_space<vmem>>, %arg6: memref<32x32xbf16, #tpu.memory_space<vmem>>, %arg7: memref<256x32xf32, #tpu.memory_space<vmem>>, %arg8: memref<256x32xf32, #tpu.memory_space<vmem>>, %arg9: memref<256x32xf32, #tpu.memory_space<vmem>>) attributes {dimension_semantics = [#tpu.dimension_semantics<parallel>, #tpu.dimension_semantics<arbitrary>], iteration_bounds = array<i64: 1, 1>, scalar_prefetch = 2 : i64, scratch_operands = 1 : i64, tpu.core_type = #tpu.core_type<tc>, window_params = [{transform_indices = @transform_0, window_bounds = array<i64: 1, 256>}, {transform_indices = @transform_1, window_bounds = array<i64: 256, 32>}, {pipeline_mode = #tpu.pipeline_mode<synchronous>, transform_indices = @transform_2, window_bounds = array<i64: 32, 32>}, {transform_indices = @transform_3, window_bounds = array<i64: 256, 32>}, {transform_indices = @transform_4, window_bounds = array<i64: 256, 32>}]} {
    %c0_i32 = arith.constant 0 : i32
    %0 = arith.cmpi eq, %arg1, %c0_i32 : i32
    %1 = arith.extui %0 : i1 to i32
    %c0_i32_0 = arith.constant 0 : i32
    %2 = arith.cmpi ne, %1, %c0_i32_0 : i32
    scf.if %2 {
      %cst = arith.constant 0.000000e+00 : f32
      %15 = vector.broadcast %cst : f32 to vector<256x32xf32>
      %c0 = arith.constant 0 : index
      %c0_4 = arith.constant 0 : index
      %16 = vector.load %arg9[%c0, %c0_4] : memref<256x32xf32, #tpu.memory_space<vmem>>, vector<256x32xf32>
      tpu.vector_store %arg9[%c0, %c0_4], %15 {strides = array<i32>} : memref<256x32xf32, #tpu.memory_space<vmem>>, vector<256x32xf32>,
    } else {
    }
    %3 = arith.index_cast %arg0 : i32 to index
    %4 = memref.load %arg2[%3] : memref<1xi32, #tpu.memory_space<smem>>
    %5 = arith.cmpi sge, %arg1, %4 : i32
    %6 = arith.index_cast %arg0 : i32 to index
    %7 = memref.load %arg3[%6] : memref<1xi32, #tpu.memory_space<smem>>
    %8 = arith.cmpi sle, %arg1, %7 : i32
    %9 = arith.andi %5, %8 : i1
    %10 = arith.extui %9 : i1 to i32
    %c0_i32_1 = arith.constant 0 : i32
    %11 = arith.cmpi ne, %10, %c0_i32_1 : i32
    scf.if %11 {
      %c256_i32 = arith.constant 256 : i32
      %15 = arith.muli %arg0, %c256_i32 : i32
      %16 = tpu.iota {dimensions = array<i32: 0>} : vector<256x256xi32>
      %17 = vector.broadcast %15 : i32 to vector<256x256xi32>
      %18 = arith.addi %17, %16 : vector<256x256xi32>
      %c0 = arith.constant 0 : index
      %c0_4 = arith.constant 0 : index
      %19 = vector.load %arg4[%c0, %c0_4] : memref<1x256xi32, #tpu.memory_space<vmem>>, vector<1x256xi32>
      %20 = vector.broadcast %19 : vector<1x256xi32> to vector<256x256xi32>
      %21 = arith.cmpi eq, %18, %20 : vector<256x256xi32>
      %22 = arith.extui %21 : vector<256x256xi1> to vector<256x256xi32>
      %23 = arith.sitofp %22 : vector<256x256xi32> to vector<256x256xf32>
      %24 = arith.truncf %23 : vector<256x256xf32> to vector<256x256xbf16>
      %c0_5 = arith.constant 0 : index
      %c0_6 = arith.constant 0 : index
      %25 = vector.load %arg9[%c0_5, %c0_6] : memref<256x32xf32, #tpu.memory_space<vmem>>, vector<256x32xf32>
      %c0_7 = arith.constant 0 : index
      %c0_8 = arith.constant 0 : index
      %26 = vector.load %arg5[%c0_7, %c0_8] : memref<256x32xbf16, #tpu.memory_space<vmem>>, vector<256x32xbf16>
      %cst = arith.constant dense<0.000000e+00> : vector<256x32xf32>
      %27 = tpu.matmul %24, %26, %cst {dimension_numbers = #tpu.dot_dimension_numbers<[1], [0], [0], [1], [0, 0, 1, 1], [], []>} : vector<256x256xbf16>, vector<256x32xbf16>, vector<256x32xf32> -> vector<256x32xf32>
      %28 = arith.addf %25, %27 : vector<256x32xf32>
      %c0_9 = arith.constant 0 : index
      %c0_10 = arith.constant 0 : index
      %29 = vector.load %arg9[%c0_9, %c0_10] : memref<256x32xf32, #tpu.memory_space<vmem>>, vector<256x32xf32>
      tpu.vector_store %arg9[%c0_9, %c0_10], %28 {strides = array<i32>} : memref<256x32xf32, #tpu.memory_space<vmem>>, vector<256x32xf32>,
    } else {
    }
    %c0_i32_2 = arith.constant 0 : i32
    %12 = arith.cmpi eq, %arg1, %c0_i32_2 : i32
    %13 = arith.extui %12 : i1 to i32
    %c0_i32_3 = arith.constant 0 : i32
    %14 = arith.cmpi ne, %13, %c0_i32_3 : i32
    scf.if %14 {
      %c0 = arith.constant 0 : index
      %c0_4 = arith.constant 0 : index
      %15 = vector.load %arg9[%c0, %c0_4] : memref<256x32xf32, #tpu.memory_space<vmem>>, vector<256x32xf32>
      %16 = arith.truncf %15 : vector<256x32xf32> to vector<256x32xbf16>
      %c0_5 = arith.constant 0 : index
      %c0_6 = arith.constant 0 : index
      %17 = vector.load %arg6[%c0_5, %c0_6] : memref<32x32xbf16, #tpu.memory_space<vmem>>, vector<32x32xbf16>
      %cst = arith.constant dense<0.000000e+00> : vector<256x32xf32>
      %18 = tpu.matmul %16, %17, %cst {dimension_numbers = #tpu.dot_dimension_numbers<[1], [0], [0], [1], [0, 0, 1, 1], [], []>} : vector<256x32xbf16>, vector<32x32xbf16>, vector<256x32xf32> -> vector<256x32xf32>
      %c0_7 = arith.constant 0 : index
      %c0_8 = arith.constant 0 : index
      %19 = vector.load %arg7[%c0_7, %c0_8] : memref<256x32xf32, #tpu.memory_space<vmem>>, vector<256x32xf32>
      %20 = arith.addf %19, %18 : vector<256x32xf32>
      %c0_9 = arith.constant 0 : index
      %c0_10 = arith.constant 0 : index
      %21 = vector.load %arg8[%c0_9, %c0_10] : memref<256x32xf32, #tpu.memory_space<vmem>>, vector<256x32xf32>
      tpu.vector_store %arg8[%c0_9, %c0_10], %20 {strides = array<i32>} : memref<256x32xf32, #tpu.memory_space<vmem>>, vector<256x32xf32>,
    } else {
    }
    return
  }
  func.func @transform_0(%arg0: i32, %arg1: i32, %arg2: memref<1xi32, #tpu.memory_space<smem>>, %arg3: memref<1xi32, #tpu.memory_space<smem>>) -> (i32, i32) {
    %0 = arith.index_cast %arg0 : i32 to index
    %1 = memref.load %arg2[%0] : memref<1xi32, #tpu.memory_space<smem>>
    %2 = arith.index_cast %arg0 : i32 to index
    %3 = memref.load %arg3[%2] : memref<1xi32, #tpu.memory_space<smem>>
    %4 = arith.maxsi %1, %arg1 : i32
    %5 = arith.minsi %3, %4 : i32
    %c0_i32 = arith.constant 0 : i32
    %c0_i32_0 = arith.constant 0 : i32
    return %c0_i32, %5 : i32, i32
  }
  func.func @transform_1(%arg0: i32, %arg1: i32, %arg2: memref<1xi32, #tpu.memory_space<smem>>, %arg3: memref<1xi32, #tpu.memory_space<smem>>) -> (i32, i32) {
    %0 = arith.index_cast %arg0 : i32 to index
    %1 = memref.load %arg2[%0] : memref<1xi32, #tpu.memory_space<smem>>
    %2 = arith.index_cast %arg0 : i32 to index
    %3 = memref.load %arg3[%2] : memref<1xi32, #tpu.memory_space<smem>>
    %4 = arith.maxsi %1, %arg1 : i32
    %5 = arith.minsi %3, %4 : i32
    %c0_i32 = arith.constant 0 : i32
    %c0_i32_0 = arith.constant 0 : i32
    return %5, %c0_i32 : i32, i32
  }
  func.func @transform_2(%arg0: i32, %arg1: i32, %arg2: memref<1xi32, #tpu.memory_space<smem>>, %arg3: memref<1xi32, #tpu.memory_space<smem>>) -> (i32, i32) {
    %c0_i32 = arith.constant 0 : i32
    %c0_i32_0 = arith.constant 0 : i32
    %c0_i32_1 = arith.constant 0 : i32
    return %c0_i32, %c0_i32_0 : i32, i32
  }
  func.func @transform_3(%arg0: i32, %arg1: i32, %arg2: memref<1xi32, #tpu.memory_space<smem>>, %arg3: memref<1xi32, #tpu.memory_space<smem>>) -> (i32, i32) {
    %c0_i32 = arith.constant 0 : i32
    %c0_i32_0 = arith.constant 0 : i32
    return %arg0, %c0_i32 : i32, i32
  }
  func.func @transform_4(%arg0: i32, %arg1: i32, %arg2: memref<1xi32, #tpu.memory_space<smem>>, %arg3: memref<1xi32, #tpu.memory_space<smem>>) -> (i32, i32) {
    %c0_i32 = arith.constant 0 : i32
    %c0_i32_0 = arith.constant 0 : i32
    return %arg0, %c0_i32 : i32, i32
  }
}

module attributes {stable_mosaic.version = 11 : i64} {
  func.func @_edge_update_kernel(%arg0: i32, %arg1: memref<256x32xbf16, #tpu.memory_space<vmem>>, %arg2: memref<256x16xbf16, #tpu.memory_space<vmem>>, %arg3: memref<256x16xbf16, #tpu.memory_space<vmem>>, %arg4: memref<256x32xbf16, #tpu.memory_space<vmem>>, %arg5: memref<96x128xbf16, #tpu.memory_space<vmem>>, %arg6: memref<1x128xf32, #tpu.memory_space<vmem>>, %arg7: memref<128x32xbf16, #tpu.memory_space<vmem>>, %arg8: memref<1x32xf32, #tpu.memory_space<vmem>>, %arg9: memref<256x16xf32, #tpu.memory_space<vmem>>) attributes {dimension_semantics = [#tpu.dimension_semantics<parallel>], iteration_bounds = array<i64: 1>, scalar_prefetch = 0 : i64, scratch_operands = 0 : i64, tpu.core_type = #tpu.core_type<tc>, window_params = [{transform_indices = @transform_0, window_bounds = array<i64: 256, 32>}, {transform_indices = @transform_1, window_bounds = array<i64: 256, 16>}, {transform_indices = @transform_2, window_bounds = array<i64: 256, 16>}, {transform_indices = @transform_3, window_bounds = array<i64: 256, 32>}, {pipeline_mode = #tpu.pipeline_mode<synchronous>, transform_indices = @transform_4, window_bounds = array<i64: 96, 128>}, {pipeline_mode = #tpu.pipeline_mode<synchronous>, transform_indices = @transform_5, window_bounds = array<i64: 1, 128>}, {pipeline_mode = #tpu.pipeline_mode<synchronous>, transform_indices = @transform_6, window_bounds = array<i64: 128, 32>}, {pipeline_mode = #tpu.pipeline_mode<synchronous>, transform_indices = @transform_7, window_bounds = array<i64: 1, 32>}, {transform_indices = @transform_8, window_bounds = array<i64: 256, 16>}]} {
    %c0 = arith.constant 0 : index
    %c0_0 = arith.constant 0 : index
    %0 = vector.load %arg2[%c0, %c0_0] : memref<256x16xbf16, #tpu.memory_space<vmem>>, vector<256x16xbf16>
    %c0_1 = arith.constant 0 : index
    %c0_2 = arith.constant 0 : index
    %1 = vector.load %arg1[%c0_1, %c0_2] : memref<256x32xbf16, #tpu.memory_space<vmem>>, vector<256x32xbf16>
    %c0_3 = arith.constant 0 : index
    %c0_4 = arith.constant 0 : index
    %2 = vector.load %arg3[%c0_3, %c0_4] : memref<256x16xbf16, #tpu.memory_space<vmem>>, vector<256x16xbf16>
    %c0_5 = arith.constant 0 : index
    %c0_6 = arith.constant 0 : index
    %3 = vector.load %arg4[%c0_5, %c0_6] : memref<256x32xbf16, #tpu.memory_space<vmem>>, vector<256x32xbf16>
    %c0_7 = arith.constant 0 : index
    %c0_8 = arith.constant 0 : index
    %4 = vector.load %arg6[%c0_7, %c0_8] : memref<1x128xf32, #tpu.memory_space<vmem>>, vector<1x128xf32>
    %c0_9 = arith.constant 0 : index
    %c0_10 = arith.constant 0 : index
    %5 = vector.load %arg8[%c0_9, %c0_10] : memref<1x32xf32, #tpu.memory_space<vmem>>, vector<1x32xf32>
    %c0_11 = arith.constant 0 : index
    %c0_12 = arith.constant 0 : index
    %6 = vector.load %arg5[%c0_11, %c0_12] : memref<96x128xbf16, #tpu.memory_space<vmem>>, vector<32x128xbf16>
    %cst = arith.constant dense<0.000000e+00> : vector<256x128xf32>
    %7 = tpu.matmul %1, %6, %cst {dimension_numbers = #tpu.dot_dimension_numbers<[1], [0], [0], [1], [0, 0, 1, 1], [], []>} : vector<256x32xbf16>, vector<32x128xbf16>, vector<256x128xf32> -> vector<256x128xf32>
    %c32 = arith.constant 32 : index
    %c0_13 = arith.constant 0 : index
    %8 = vector.load %arg5[%c32, %c0_13] : memref<96x128xbf16, #tpu.memory_space<vmem>>, vector<16x128xbf16>
    %cst_14 = arith.constant dense<0.000000e+00> : vector<256x128xf32>
    %9 = tpu.matmul %0, %8, %cst_14 {dimension_numbers = #tpu.dot_dimension_numbers<[1], [0], [0], [1], [0, 0, 1, 1], [], []>} : vector<256x16xbf16>, vector<16x128xbf16>, vector<256x128xf32> -> vector<256x128xf32>
    %10 = arith.addf %7, %9 : vector<256x128xf32>
    %c48 = arith.constant 48 : index
    %c0_15 = arith.constant 0 : index
    %11 = vector.load %arg5[%c48, %c0_15] : memref<96x128xbf16, #tpu.memory_space<vmem>>, vector<16x128xbf16>
    %cst_16 = arith.constant dense<0.000000e+00> : vector<256x128xf32>
    %12 = tpu.matmul %2, %11, %cst_16 {dimension_numbers = #tpu.dot_dimension_numbers<[1], [0], [0], [1], [0, 0, 1, 1], [], []>} : vector<256x16xbf16>, vector<16x128xbf16>, vector<256x128xf32> -> vector<256x128xf32>
    %13 = arith.addf %10, %12 : vector<256x128xf32>
    %c64 = arith.constant 64 : index
    %c0_17 = arith.constant 0 : index
    %14 = vector.load %arg5[%c64, %c0_17] : memref<96x128xbf16, #tpu.memory_space<vmem>>, vector<32x128xbf16>
    %cst_18 = arith.constant dense<0.000000e+00> : vector<256x128xf32>
    %15 = tpu.matmul %3, %14, %cst_18 {dimension_numbers = #tpu.dot_dimension_numbers<[1], [0], [0], [1], [0, 0, 1, 1], [], []>} : vector<256x32xbf16>, vector<32x128xbf16>, vector<256x128xf32> -> vector<256x128xf32>
    %16 = arith.addf %13, %15 : vector<256x128xf32>
    %17 = vector.broadcast %4 : vector<1x128xf32> to vector<256x128xf32>
    %18 = arith.addf %16, %17 : vector<256x128xf32>
    %19 = arith.negf %18 : vector<256x128xf32>
    %20 = math.exp %19 : vector<256x128xf32>
    %cst_19 = arith.constant 1.000000e+00 : f32
    %21 = vector.broadcast %cst_19 : f32 to vector<256x128xf32>
    %22 = arith.addf %21, %20 : vector<256x128xf32>
    %23 = arith.divf %21, %22 : vector<256x128xf32>
    %24 = arith.mulf %18, %23 : vector<256x128xf32>
    %25 = arith.truncf %24 : vector<256x128xf32> to vector<256x128xbf16>
    %c0_20 = arith.constant 0 : index
    %c0_21 = arith.constant 0 : index
    %26 = vector.load %arg7[%c0_20, %c0_21] : memref<128x32xbf16, #tpu.memory_space<vmem>>, vector<128x32xbf16>
    %cst_22 = arith.constant dense<0.000000e+00> : vector<256x32xf32>
    %27 = tpu.matmul %25, %26, %cst_22 {dimension_numbers = #tpu.dot_dimension_numbers<[1], [0], [0], [1], [0, 0, 1, 1], [], []>} : vector<256x128xbf16>, vector<128x32xbf16>, vector<256x32xf32> -> vector<256x32xf32>
    %28 = vector.broadcast %5 : vector<1x32xf32> to vector<256x32xf32>
    %29 = arith.addf %27, %28 : vector<256x32xf32>
    %30 = vector.extract_strided_slice %29 {offsets = [0, 0], sizes = [256, 16], strides = [1, 1]} : vector<256x32xf32> to vector<256x16xf32>
    %31 = arith.negf %30 : vector<256x16xf32>
    %32 = math.exp %31 : vector<256x16xf32>
    %cst_23 = arith.constant 1.000000e+00 : f32
    %33 = vector.broadcast %cst_23 : f32 to vector<256x16xf32>
    %34 = arith.addf %33, %32 : vector<256x16xf32>
    %35 = arith.divf %33, %34 : vector<256x16xf32>
    %36 = arith.mulf %30, %35 : vector<256x16xf32>
    %37 = vector.extract_strided_slice %29 {offsets = [0, 16], sizes = [256, 16], strides = [1, 1]} : vector<256x32xf32> to vector<256x16xf32>
    %38 = arith.negf %37 : vector<256x16xf32>
    %39 = math.exp %38 : vector<256x16xf32>
    %cst_24 = arith.constant 1.000000e+00 : f32
    %40 = vector.broadcast %cst_24 : f32 to vector<256x16xf32>
    %41 = arith.addf %40, %39 : vector<256x16xf32>
    %42 = arith.divf %40, %41 : vector<256x16xf32>
    %43 = arith.mulf %36, %42 : vector<256x16xf32>
    %44 = arith.extf %0 : vector<256x16xbf16> to vector<256x16xf32>
    %45 = arith.addf %44, %43 : vector<256x16xf32>
    %c0_25 = arith.constant 0 : index
    %c0_26 = arith.constant 0 : index
    %46 = vector.load %arg9[%c0_25, %c0_26] : memref<256x16xf32, #tpu.memory_space<vmem>>, vector<256x16xf32>
    tpu.vector_store %arg9[%c0_25, %c0_26], %45 {strides = array<i32>} : memref<256x16xf32, #tpu.memory_space<vmem>>, vector<256x16xf32>,
    return
  }
  func.func @transform_0(%arg0: i32) -> (i32, i32) {
    %c0_i32 = arith.constant 0 : i32
    %c0_i32_0 = arith.constant 0 : i32
    return %arg0, %c0_i32 : i32, i32
  }
  func.func @transform_1(%arg0: i32) -> (i32, i32) {
    %c0_i32 = arith.constant 0 : i32
    %c0_i32_0 = arith.constant 0 : i32
    return %arg0, %c0_i32 : i32, i32
  }
  func.func @transform_2(%arg0: i32) -> (i32, i32) {
    %c0_i32 = arith.constant 0 : i32
    %c0_i32_0 = arith.constant 0 : i32
    return %arg0, %c0_i32 : i32, i32
  }
  func.func @transform_3(%arg0: i32) -> (i32, i32) {
    %c0_i32 = arith.constant 0 : i32
    %c0_i32_0 = arith.constant 0 : i32
    return %arg0, %c0_i32 : i32, i32
  }
  func.func @transform_4(%arg0: i32) -> (i32, i32) {
    %c0_i32 = arith.constant 0 : i32
    %c0_i32_0 = arith.constant 0 : i32
    %c0_i32_1 = arith.constant 0 : i32
    return %c0_i32, %c0_i32_0 : i32, i32
  }
  func.func @transform_5(%arg0: i32) -> (i32, i32) {
    %c0_i32 = arith.constant 0 : i32
    %c0_i32_0 = arith.constant 0 : i32
    %c0_i32_1 = arith.constant 0 : i32
    return %c0_i32, %c0_i32_0 : i32, i32
  }
  func.func @transform_6(%arg0: i32) -> (i32, i32) {
    %c0_i32 = arith.constant 0 : i32
    %c0_i32_0 = arith.constant 0 : i32
    %c0_i32_1 = arith.constant 0 : i32
    return %c0_i32, %c0_i32_0 : i32, i32
  }
  func.func @transform_7(%arg0: i32) -> (i32, i32) {
    %c0_i32 = arith.constant 0 : i32
    %c0_i32_0 = arith.constant 0 : i32
    %c0_i32_1 = arith.constant 0 : i32
    return %c0_i32, %c0_i32_0 : i32, i32
  }
  func.func @transform_8(%arg0: i32) -> (i32, i32) {
    %c0_i32 = arith.constant 0 : i32
    %c0_i32_0 = arith.constant 0 : i32
    return %arg0, %c0_i32 : i32, i32
  }
}

</mosaic_0001>

<bundles_post_ra>
// kernel: custom-call
= control target key start
LH: loop header
LB: loop body
LE: loop exit
PB: predicated region body
PF: predicated region fallthrough
CT: control target
= control target key end

     0   :  { %s6_s0 = inlined_call_operand.vmem [shape: u32[2], index: 0, kind: output, shape index: {}]  }

// kernel: chgnet_bond_graph_block.4
= control target key start
LH: loop header
LB: loop body
LE: loop exit
PB: predicated region body
PF: predicated region fallthrough
CT: control target
= control target key end

     0   :  { %vm117_vm0 = vcmask 261120   ;;  %v1603_v0 = vmov 0.0   ;;  %s2147_s0 = inlined_call_operand.<no memory space> [shape: s32[1], index: 0, kind: input, shape index: {}]   ;;  %s2148_s4 = inlined_call_operand.vmem [shape: bf16[32,32], index: 4, kind: input, shape index: {}]   ;;  %s2149_s5 = inlined_call_operand.vmem [shape: f32[256,32], index: 5, kind: input, shape index: {}]   ;;  %s2150_s6 = inlined_call_operand.vmem [shape: f32[256,32], index: 6, kind: output, shape index: {}]   ;;  %s2151_s1 = inlined_call_operand.<no memory space> [shape: s32[1], index: 1, kind: input, shape index: {}]   ;;  %s2152_s2 = inlined_call_operand.vmem [shape: s32[1,256], index: 2, kind: input, shape index: {}]   ;;  %s2153_s3 = inlined_call_operand.vmem [shape: bf16[256,32], index: 3, kind: input, shape index: {}]  }
   0x1   :  { %p79_p0 = scmp.gt.s32.totalorder %s2147_s0, 0  ;;  %118 = vst.msk [vmem:[#allocation2] sm:$0xff] %vm117_vm0, %v1603_v0  ;;  %119 = vst.msk [vmem:[#allocation2 + $0x8] sm:$0xff] %vm117_vm0, %v1603_v0  ;;  %p1233_p1 = scmp.le.s32.totalorder %s2147_s0, 0 }
   0x2   :  { %120 = vst.msk [vmem:[#allocation2 + $0x10] sm:$0xff] %vm117_vm0, %v1603_v0  ;;  %121 = vst.msk [vmem:[#allocation2 + $0x18] sm:$0xff] %vm117_vm0, %v1603_v0  ;;  %p1234_p2 = scmp.ge.s32.totalorder %s2151_s1, 0 }
   0x3   :  { %122 = vst.msk [vmem:[#allocation2 + $0x20] sm:$0xff] %vm117_vm0, %v1603_v0  ;;  %123 = vst.msk [vmem:[#allocation2 + $0x28] sm:$0xff] %vm117_vm0, %v1603_v0  ;;  %s2156_s0 = smov (!%p79_p0, %s2147_s0), 0 }
   0x4   :  { %124 = vst.msk [vmem:[#allocation2 + $0x30] sm:$0xff] %vm117_vm0, %v1603_v0  ;;  %125 = vst.msk [vmem:[#allocation2 + $0x38] sm:$0xff] %vm117_vm0, %v1603_v0  ;;  %p1688_p3 = pnand %p1234_p2, %p1233_p1  ;;  %p81_p4 = scmp.lt.s32.totalorder %s2151_s1, %s2156_s0 }
   0x5   :  { %126 = vst.msk [vmem:[#allocation2 + $0x40] sm:$0xff] %vm117_vm0, %v1603_v0  ;;  %127 = vst.msk [vmem:[#allocation2 + $0x48] sm:$0xff] %vm117_vm0, %v1603_v0  ;;  %v159_v6 = vlaneseq (!%p1688_p3)  ;;  %v1604_v23 = vmov (!%p1688_p3), 1.0|1.0  }
   0x6   :  { %128 = vst.msk [vmem:[#allocation2 + $0x50] sm:$0xff] %vm117_vm0, %v1603_v0  ;;  %129 = vst.msk [vmem:[#allocation2 + $0x58] sm:$0xff] %vm117_vm0, %v1603_v0  ;;  %s2158_s1 = smov (!%p81_p4, %s2151_s1), %s2156_s0 }
   0x7   :  { %130 = vst.msk [vmem:[#allocation2 + $0x60] sm:$0xff] %vm117_vm0, %v1603_v0  ;;  %131 = vst.msk [vmem:[#allocation2 + $0x68] sm:$0xff] %vm117_vm0, %v1603_v0  ;;  %s1230_s12 = sshll.u32 %s2158_s1, 1  ;;  %s1231_s13 = sshll.u32 %s2158_s1, 5  ;;  %v1718_v9 = vshrl.u32 (!%p1688_p3), %v159_v6, 7 }
   0x8   :  { %132 = vst.msk [vmem:[#allocation2 + $0x70] sm:$0xff] %vm117_vm0, %v1603_v0  ;;  %133 = vst.msk [vmem:[#allocation2 + $0x78] sm:$0xff] %vm117_vm0, %v1603_v0  ;;  %p84_p5 = scmp.lt.s32.totalorder %s1230_s12, 1  ;;  %p101_p6 = scmp.lt.s32.totalorder %s1231_s13, 31  ;;  %v458_v58 = vld [vmem:[#allocation2] sm:$0xff] (!%p1688_p3) }
   0x9   :  { %134 = vst.msk [vmem:[#allocation2 + $0x80] sm:$0xff] %vm117_vm0, %v1603_v0  ;;  %135 = vst.msk [vmem:[#allocation2 + $0x88] sm:$0xff] %vm117_vm0, %v1603_v0  ;;  %v232_v12 = vsub.s32 (!%p1688_p3), 1, %v1718_v9  ;;  %v161_v13 = vadd.s32 (!%p1688_p3), 8, %v1718_v9  ;;  %v176_v15 = vadd.s32 (!%p1688_p3), 128, %v1718_v9  ;;  %v177_v18 = vadd.s32 (!%p1688_p3), 136, %v1718_v9 }
   0xa   :  { %136 = vst.msk [vmem:[#allocation2 + $0x90] sm:$0xff] %vm117_vm0, %v1603_v0  ;;  %137 = vst.msk [vmem:[#allocation2 + $0x98] sm:$0xff] %vm117_vm0, %v1603_v0  ;;  %s2160_s12 = smov (!%p84_p5, %s1230_s12), 1  ;;  %s2162_s13 = smov (!%p101_p6, %s1231_s13), 31 }
   0xb   :  { %138 = vst.msk [vmem:[#allocation2 + $0xa0] sm:$0xff] %vm117_vm0, %v1603_v0  ;;  %139 = vst.msk [vmem:[#allocation2 + $0xa8] sm:$0xff] %vm117_vm0, %v1603_v0  ;;  %s86_s16 = scalar_lea.vmem %s2152_s2, %s2160_s12  ;;  %s1232_s17 = sshll.u32 %s2162_s13, 2  ;;  %v228_v20 = vsub.s32 (!%p1688_p3), 0, %v1718_v9  ;;  %v162_v27 = vadd.s32 (!%p1688_p3), 16, %v1718_v9  ;;  %v163_v28 = vadd.s32 (!%p1688_p3), 24, %v1718_v9 }
   0xc   :  { %140 = vst.msk [vmem:[#allocation2 + $0xb0] sm:$0xff] %vm117_vm0, %v1603_v0  ;;  %141 = vst.msk [vmem:[#allocation2 + $0xb8] sm:$0xff] %vm117_vm0, %v1603_v0  ;;  %s1707_s20 = scalar_lea.vmem %s2153_s3, %s1232_s17  ;;  %157 = sbr.rel (%p1688_p3) target bundleno = 322 (0x142), region = 25  ;;  %v225_v17 = vld [vmem:[%s86_s16] sm:$0x3] (!%p1688_p3)  ;;  %v178_v29 = vadd.s32 (!%p1688_p3), 144, %v1718_v9 }
   0xd   :  { %142 = vst.msk [vmem:[#allocation2 + $0xc0] sm:$0xff] %vm117_vm0, %v1603_v0  ;;  %143 = vst.msk [vmem:[#allocation2 + $0xc8] sm:$0xff] %vm117_vm0, %v1603_v0  ;;  %v1585_v1 = vld [vmem:[%s1707_s20 + $0x40] sm:$0xff] (!%p1688_p3)   ;;  %v1587_v3 = vld [vmem:[%s1707_s20 + $0x48] sm:$0xff] (!%p1688_p3)   ;;  %v1733_v19 = vrot.slane (!%p1688_p3), %v225_v17, %v232_v12  ;;  %v1744_v24 = vrot.slane (!%p1688_p3), %v225_v17, %v228_v20  ;;  %v179_v30 = vadd.s32 (!%p1688_p3), 152, %v1718_v9  ;;  %v164_v32 = vadd.s32 (!%p1688_p3), 32, %v1718_v9 }
   0xe   :  { %144 = vst.msk [vmem:[#allocation2 + $0xd0] sm:$0xff] %vm117_vm0, %v1603_v0  ;;  %145 = vst.msk [vmem:[#allocation2 + $0xd8] sm:$0xff] %vm117_vm0, %v1603_v0  ;;  %v1586_v2 = vld [vmem:[%s1707_s20] sm:$0xff] (!%p1688_p3)   ;;  %1397 = vmatprep.subr.bf16.mxu0 (!%p1688_p3), %v1585_v1  ;;  %1563 = vmatprep.subr.bf16.mxu1 (!%p1688_p3), %v1585_v1  ;;  %v1588_v4 = vld [vmem:[%s1707_s20 + $0x8] sm:$0xff] (!%p1688_p3)   ;;  %v165_v33 = vadd.s32 (!%p1688_p3), 40, %v1718_v9  ;;  %v180_v34 = vadd.s32 (!%p1688_p3), 160, %v1718_v9 }
   0xf   :  { %146 = vst.msk [vmem:[#allocation2 + $0xe0] sm:$0xff] %vm117_vm0, %v1603_v0  ;;  %147 = vst.msk [vmem:[#allocation2 + $0xe8] sm:$0xff] %vm117_vm0, %v1603_v0  ;;  %1398 = vmatpush3.bf16.msra.mxu0 (!%p1688_p3), %v1586_v2  ;;  %1571 = vmatpush3.bf16.msra.mxu1 (!%p1688_p3), %v1586_v2  ;;  %v1589_v5 = vld [vmem:[%s1707_s20 + $0x50] sm:$0xff] (!%p1688_p3)   ;;  %v1591_v8 = vld [vmem:[%s1707_s20 + $0x58] sm:$0xff] (!%p1688_p3)   ;;  %vm235_vm1 = vcmp.eq.s32.totalorder (!%p1688_p3), %v1718_v9, %v1733_v19  ;;  %vm237_vm2 = vcmp.eq.s32.totalorder (!%p1688_p3), %v161_v13, %v1733_v19  ;;  %v181_v35 = vadd.s32 (!%p1688_p3), 168, %v1718_v9 }
  0x10   :  { %148 = vst.msk [vmem:[#allocation2 + $0xf0] sm:$0xff] %vm117_vm0, %v1603_v0  ;;  %149 = vst.msk [vmem:[#allocation2 + $0xf8] sm:$0xff] %vm117_vm0, %v1603_v0  ;;  %1399 = vmatprep.subr.bf16.mxu0 (!%p1688_p3), %v1587_v3  ;;  %1564 = vmatprep.subr.bf16.mxu1 (!%p1688_p3), %v1587_v3  ;;  %v1590_v7 = vld [vmem:[%s1707_s20 + $0x10] sm:$0xff] (!%p1688_p3)   ;;  %v1592_v10 = vld [vmem:[%s1707_s20 + $0x18] sm:$0xff] (!%p1688_p3)   ;;  %vm267_vm3 = vcmp.eq.s32.totalorder (!%p1688_p3), %v176_v15, %v1733_v19  ;;  %vm269_vm5 = vcmp.eq.s32.totalorder (!%p1688_p3), %v177_v18, %v1733_v19  ;;  %v166_v36 = vadd.s32 (!%p1688_p3), 48, %v1718_v9 }
  0x11   :  { %v1593_v11 = vld [vmem:[%s1707_s20 + $0x60] sm:$0xff] (!%p1688_p3)   ;;  %v1595_v16 = vld [vmem:[%s1707_s20 + $0x68] sm:$0xff] (!%p1688_p3)   ;;  %v1597_v22 = vld [vmem:[%s1707_s20 + $0x70] sm:$0xff] (!%p1688_p3)   ;;  %vm234_vm7 = vcmp.eq.s32.totalorder (!%p1688_p3), %v1718_v9, %v1744_v24  ;;  %vm236_vm8 = vcmp.eq.s32.totalorder (!%p1688_p3), %v161_v13, %v1744_v24  ;;  %vm266_vm9 = vcmp.eq.s32.totalorder (!%p1688_p3), %v176_v15, %v1744_v24  ;;  %vm268_vm10 = vcmp.eq.s32.totalorder (!%p1688_p3), %v177_v18, %v1744_v24 }
  0x12   :  { %v1594_v14 = vld [vmem:[%s1707_s20 + $0x20] sm:$0xff] (!%p1688_p3)   ;;  %v1596_v21 = vld [vmem:[%s1707_s20 + $0x28] sm:$0xff] (!%p1688_p3)   ;;  %vm1315_vm4 = vmpackc.low (!%p1688_p3), %vm237_vm2, %vm235_vm1  ;;  %vm239_vm11 = vcmp.eq.s32.totalorder (!%p1688_p3), %v162_v27, %v1733_v19  ;;  %vm241_vm12 = vcmp.eq.s32.totalorder (!%p1688_p3), %v163_v28, %v1733_v19  ;;  %vm271_vm14 = vcmp.eq.s32.totalorder (!%p1688_p3), %v178_v29, %v1733_v19  ;;  %vm273_vm15 = vcmp.eq.s32.totalorder (!%p1688_p3), %v179_v30, %v1733_v19 }
  0x13   :  { %1400 = vmatpush3.bf16.msra.mxu0 %v1588_v4  ;;  %1572 = vmatpush3.bf16.msra.mxu1 %v1588_v4  ;;  %vm1347_vm6 = vmpackc.low %vm269_vm5, %vm267_vm3  ;;  %v1598_v25 = vld [vmem:[%s1707_s20 + $0x30] sm:$0xff]   ;;  %v1599_v26 = vld [vmem:[%s1707_s20 + $0x78] sm:$0xff]   ;;  %vm240_vm5 = vcmp.eq.s32.totalorder %v163_v28, %v1744_v24  ;;  %v167_v37 = vadd.s32 56, %v1718_v9  ;;  %v182_v38 = vadd.s32 176, %v1718_v9  ;;  %v183_v39 = vadd.s32 184, %v1718_v9 }
  0x14   :  { %1401 = vmatprep.subr.bf16.mxu0 %v1589_v5  ;;  %1565 = vmatprep.subr.bf16.mxu1 %v1589_v5  ;;  %v1600_v31 = vld [vmem:[%s1707_s20 + $0x38] sm:$0xff]   ;;  %vm1317_vm13 = vmpackc.low %vm236_vm8, %vm234_vm7  ;;  %vm272_vm7 = vcmp.eq.s32.totalorder %v179_v30, %v1744_v24  ;;  %vm243_vm8 = vcmp.eq.s32.totalorder %v164_v32, %v1733_v19  ;;  %v168_v40 = vadd.s32 64, %v1718_v9  ;;  %v169_v41 = vadd.s32 72, %v1718_v9  ;;  %v474_v60 = vld [vmem:[#allocation2 + $0x80] sm:$0xff] }
  0x15   :  { %1316 = vmatprep.mubr.msk.bf16.mxu0 %vm1315_vm4, %v1604_v23  ;;  %1348 = vmatprep.mubr.msk.bf16.mxu1 %vm1347_vm6, %v1604_v23  ;;  %vm1349_vm1 = vmpackc.low %vm268_vm10, %vm266_vm9  ;;  %vm238_vm4 = vcmp.eq.s32.totalorder %v162_v27, %v1744_v24  ;;  %vm270_vm6 = vcmp.eq.s32.totalorder %v178_v29, %v1744_v24  ;;  %vm245_vm9 = vcmp.eq.s32.totalorder %v165_v33, %v1733_v19  ;;  %v184_v42 = vadd.s32 192, %v1718_v9  ;;  %v459_v2 = vld [vmem:[#allocation2 + $0x8] sm:$0xff] }
  0x16   :  { %vm1319_vm2 = vmpackc.low %vm241_vm12, %vm239_vm11  ;;  %vm275_vm11 = vcmp.eq.s32.totalorder %v180_v34, %v1733_v19  ;;  %vm277_vm12 = vcmp.eq.s32.totalorder %v181_v35, %v1733_v19  ;;  %v185_v43 = vadd.s32 200, %v1718_v9  ;;  %v170_v44 = vadd.s32 80, %v1718_v9  ;;  %v475_v4 = vld [vmem:[#allocation2 + $0x88] sm:$0xff] }
  0x17   :  { %1402 = vmatpush3.bf16.msra.mxu0 %v1590_v7  ;;  %1573 = vmatpush3.bf16.msra.mxu1 %v1590_v7  ;;  %vm1351_vm3 = vmpackc.low %vm273_vm15, %vm271_vm14  ;;  %v171_v45 = vadd.s32 88, %v1718_v9  ;;  %v186_v46 = vadd.s32 208, %v1718_v9  ;;  %v187_v47 = vadd.s32 216, %v1718_v9  ;;  %v172_v48 = vadd.s32 96, %v1718_v9 }
  0x18   :  { %1403 = vmatprep.subr.bf16.mxu0 %v1591_v8  ;;  %1566 = vmatprep.subr.bf16.mxu1 %v1591_v8  ;;  %vm1321_vm10 = vmpackc.low %vm240_vm5, %vm238_vm4  ;;  %vm276_vm4 = vcmp.eq.s32.totalorder %v181_v35, %v1744_v24  ;;  %vm247_vm5 = vcmp.eq.s32.totalorder %v166_v36, %v1733_v19  ;;  %v173_v49 = vadd.s32 104, %v1718_v9  ;;  %v188_v50 = vadd.s32 224, %v1718_v9 }
  0x19   :  { %vm1323_vm14 = vmpackc.low %vm245_vm9, %vm243_vm8  ;;  %vm279_vm8 = vcmp.eq.s32.totalorder %v182_v38, %v1733_v19  ;;  %vm281_vm9 = vcmp.eq.s32.totalorder %v183_v39, %v1733_v19  ;;  %v189_v51 = vadd.s32 232, %v1718_v9  ;;  %v174_v52 = vadd.s32 112, %v1718_v9 }
  0x1a   :  { %vm1355_vm15 = vmpackc.low %vm277_vm12, %vm275_vm11  ;;  %v175_v53 = vadd.s32 120, %v1718_v9  ;;  %v190_v54 = vadd.s32 240, %v1718_v9  ;;  %v191_v55 = vadd.s32 248, %v1718_v9 }
  0x1b   :  { %1404 = vmatpush3.bf16.msra.mxu0 %v1592_v10  ;;  %1574 = vmatpush3.bf16.msra.mxu1 %v1592_v10  ;;  %vm1359_vm12 = vmpackc.low %vm281_vm9, %vm279_vm8 }
  0x1c   :  { %1405 = vmatprep.subr.bf16.mxu0 %v1593_v11  ;;  %1567 = vmatprep.subr.bf16.mxu1 %v1593_v11 }
  0x1f   :  { %1406 = vmatpush3.bf16.msra.mxu0 %v1594_v14  ;;  %1575 = vmatpush3.bf16.msra.mxu1 %v1594_v14  ;;  %v460_v14 = vld [vmem:[#allocation2 + $0x10] sm:$0xff] }
  0x20   :  { %1407 = vmatprep.subr.bf16.mxu0 %v1595_v16  ;;  %1568 = vmatprep.subr.bf16.mxu1 %v1595_v16  ;;  %v476_v16 = vld [vmem:[#allocation2 + $0x90] sm:$0xff] }
  0x23   :  { %1408 = vmatpush3.bf16.msra.mxu0 %v1596_v21  ;;  %1576 = vmatpush3.bf16.msra.mxu1 %v1596_v21 }
  0x24   :  { %1409 = vmatprep.subr.bf16.mxu0 %v1597_v22  ;;  %1569 = vmatprep.subr.bf16.mxu1 %v1597_v22  ;;  %v461_v22 = vld [vmem:[#allocation2 + $0x18] sm:$0xff] }
  0x27   :  { %1410 = vmatpush3.bf16.msra.mxu0 %v1598_v25  ;;  %1577 = vmatpush3.bf16.msra.mxu1 %v1598_v25 }
  0x28   :  { %1411 = vmatprep.subr.bf16.mxu0 %v1599_v26  ;;  %1570 = vmatprep.subr.bf16.mxu1 %v1599_v26 }
  0x2b   :  { %1412 = vmatpush3.bf16.msra.mxu0 %v1600_v31  ;;  %1578 = vmatpush3.bf16.msra.mxu1 %v1600_v31 }
  0x2e   :  { %1318 = vmatmul.mubr.msk.bf16.vlgmr.msra.gmra.mrb[0].mxu0 %vm1317_vm13, %v1604_v23  ;;  %1350 = vmatmul.mubr.msk.bf16.vlgmr.msra.gmra.mrb[0].mxu1 %vm1349_vm1, %v1604_v23  ;;  %vm1353_vm13 = vmpackc.low %vm272_vm7, %vm270_vm6  ;;  %vm242_vm1 = vcmp.eq.s32.totalorder %v164_v32, %v1744_v24  ;;  %vm249_vm6 = vcmp.eq.s32.totalorder %v167_v37, %v1733_v19 }
  0x2f   :  { %1320 = vmatprep.mubr.msk.bf16.mxu0 %vm1319_vm2, %v1604_v23  ;;  %1352 = vmatprep.mubr.msk.bf16.mxu1 %vm1351_vm3, %v1604_v23  ;;  %vm244_vm2 = vcmp.eq.s32.totalorder %v165_v33, %v1744_v24  ;;  %vm274_vm3 = vcmp.eq.s32.totalorder %v180_v34, %v1744_v24  ;;  %vm1327_vm11 = vmpackc.low %vm249_vm6, %vm247_vm5  ;;  %vm283_vm5 = vcmp.eq.s32.totalorder %v184_v42, %v1733_v19  ;;  %v462_v34 = vld [vmem:[#allocation2 + $0x20] sm:$0xff] }
  0x30   :  { %vm1325_vm7 = vmpackc.low %vm244_vm2, %vm242_vm1  ;;  %vm280_vm1 = vcmp.eq.s32.totalorder %v183_v39, %v1744_v24  ;;  %vm251_vm2 = vcmp.eq.s32.totalorder %v168_v40, %v1733_v19  ;;  %vm285_vm6 = vcmp.eq.s32.totalorder %v185_v43, %v1733_v19 }
  0x31   :  { %vm1363_vm9 = vmpackc.low %vm285_vm6, %vm283_vm5 }
  0x36   :  { %1322 = vmatmul.mubr.msk.bf16.gmra.mrb[4].mxu0 %vm1321_vm10, %v1604_v23  ;;  %1354 = vmatmul.mubr.msk.bf16.gmra.mrb[4].mxu1 %vm1353_vm13, %v1604_v23  ;;  %vm1357_vm10 = vmpackc.low %vm276_vm4, %vm274_vm3  ;;  %vm246_vm13 = vcmp.eq.s32.totalorder %v166_v36, %v1744_v24  ;;  %vm253_vm3 = vcmp.eq.s32.totalorder %v169_v41, %v1733_v19  ;;  %v478_v36 = vld [vmem:[#allocation2 + $0xa0] sm:$0xff] }
  0x37   :  { %1324 = vmatprep.mubr.msk.bf16.mxu0 %vm1323_vm14, %v1604_v23  ;;  %1356 = vmatprep.mubr.msk.bf16.mxu1 %vm1355_vm15, %v1604_v23  ;;  %vm248_vm14 = vcmp.eq.s32.totalorder %v167_v37, %v1744_v24  ;;  %vm278_vm15 = vcmp.eq.s32.totalorder %v182_v38, %v1744_v24  ;;  %vm1331_vm8 = vmpackc.low %vm253_vm3, %vm251_vm2  ;;  %vm287_vm2 = vcmp.eq.s32.totalorder %v186_v46, %v1733_v19 }
  0x38   :  { %vm1329_vm4 = vmpackc.low %vm248_vm14, %vm246_vm13  ;;  %vm284_vm13 = vcmp.eq.s32.totalorder %v185_v43, %v1744_v24  ;;  %vm255_vm14 = vcmp.eq.s32.totalorder %v170_v44, %v1733_v19  ;;  %vm289_vm3 = vcmp.eq.s32.totalorder %v187_v47, %v1733_v19 }
  0x39   :  { %vm1367_vm6 = vmpackc.low %vm289_vm3, %vm287_vm2 }
  0x3e   :  { %1326 = vmatmul.mubr.msk.bf16.gmra.mrb[8].mxu0 %vm1325_vm7, %v1604_v23  ;;  %1358 = vmatmul.mubr.msk.bf16.gmra.mrb[8].mxu1 %vm1357_vm10, %v1604_v23  ;;  %vm1361_vm7 = vmpackc.low %vm280_vm1, %vm278_vm15  ;;  %vm250_vm10 = vcmp.eq.s32.totalorder %v168_v40, %v1744_v24  ;;  %vm257_vm15 = vcmp.eq.s32.totalorder %v171_v45, %v1733_v19 }
  0x3f   :  { %1328 = vmatprep.mubr.msk.bf16.mxu0 %vm1327_vm11, %v1604_v23  ;;  %1360 = vmatprep.mubr.msk.bf16.mxu1 %vm1359_vm12, %v1604_v23  ;;  %vm252_vm11 = vcmp.eq.s32.totalorder %v169_v41, %v1744_v24  ;;  %vm282_vm12 = vcmp.eq.s32.totalorder %v184_v42, %v1744_v24  ;;  %vm1335_vm5 = vmpackc.low %vm257_vm15, %vm255_vm14  ;;  %vm291_vm14 = vcmp.eq.s32.totalorder %v188_v50, %v1733_v19  ;;  %v463_v42 = vld [vmem:[#allocation2 + $0x28] sm:$0xff] }
  0x40   :  { %vm1333_vm1 = vmpackc.low %vm252_vm11, %vm250_vm10  ;;  %vm288_vm10 = vcmp.eq.s32.totalorder %v187_v47, %v1744_v24  ;;  %vm259_vm11 = vcmp.eq.s32.totalorder %v172_v48, %v1733_v19  ;;  %vm293_vm15 = vcmp.eq.s32.totalorder %v189_v51, %v1733_v19 }
  0x41   :  { %vm1371_vm3 = vmpackc.low %vm293_vm15, %vm291_vm14 }
  0x46   :  { %1330 = vmatmul.mubr.msk.bf16.gmra.mrb[12].mxu0 %vm1329_vm4, %v1604_v23  ;;  %1362 = vmatmul.mubr.msk.bf16.gmra.mrb[12].mxu1 %vm1361_vm7, %v1604_v23  ;;  %vm1365_vm4 = vmpackc.low %vm284_vm13, %vm282_vm12  ;;  %vm254_vm7 = vcmp.eq.s32.totalorder %v170_v44, %v1744_v24  ;;  %vm261_vm12 = vcmp.eq.s32.totalorder %v173_v49, %v1733_v19  ;;  %v479_v44 = vld [vmem:[#allocation2 + $0xa8] sm:$0xff] }
  0x47   :  { %1332 = vmatprep.mubr.msk.bf16.mxu0 %vm1331_vm8, %v1604_v23  ;;  %1364 = vmatprep.mubr.msk.bf16.mxu1 %vm1363_vm9, %v1604_v23  ;;  %vm256_vm8 = vcmp.eq.s32.totalorder %v171_v45, %v1744_v24  ;;  %vm286_vm9 = vcmp.eq.s32.totalorder %v186_v46, %v1744_v24  ;;  %vm1339_vm2 = vmpackc.low %vm261_vm12, %vm259_vm11  ;;  %vm295_vm11 = vcmp.eq.s32.totalorder %v190_v54, %v1733_v19 }
  0x48   :  { %vm1337_vm13 = vmpackc.low %vm256_vm8, %vm254_vm7  ;;  %vm292_vm7 = vcmp.eq.s32.totalorder %v189_v51, %v1744_v24  ;;  %vm263_vm8 = vcmp.eq.s32.totalorder %v174_v52, %v1733_v19  ;;  %vm297_vm12 = vcmp.eq.s32.totalorder %v191_v55, %v1733_v19 }
  0x49   :  { %vm1375_vm15 = vmpackc.low %vm297_vm12, %vm295_vm11 }
  0x4e   :  { %1334 = vmatmul.mubr.msk.bf16.gmra.mrb[16].mxu0 %vm1333_vm1, %v1604_v23  ;;  %1366 = vmatmul.mubr.msk.bf16.gmra.mrb[16].mxu1 %vm1365_vm4, %v1604_v23  ;;  %vm1369_vm1 = vmpackc.low %vm288_vm10, %vm286_vm9  ;;  %vm258_vm4 = vcmp.eq.s32.totalorder %v172_v48, %v1744_v24  ;;  %vm265_vm9 = vcmp.eq.s32.totalorder %v175_v53, %v1733_v19 }
  0x4f   :  { %1336 = vmatprep.mubr.msk.bf16.mxu0 %vm1335_vm5, %v1604_v23  ;;  %1368 = vmatprep.mubr.msk.bf16.mxu1 %vm1367_vm6, %v1604_v23  ;;  %vm260_vm5 = vcmp.eq.s32.totalorder %v173_v49, %v1744_v24  ;;  %vm290_vm6 = vcmp.eq.s32.totalorder %v188_v50, %v1744_v24  ;;  %vm1343_vm14 = vmpackc.low %vm265_vm9, %vm263_vm8 }
  0x50   :  { %vm1341_vm10 = vmpackc.low %vm260_vm5, %vm258_vm4  ;;  %vm296_vm4 = vcmp.eq.s32.totalorder %v191_v55, %v1744_v24 }
  0x56   :  { %1338 = vmatmul.mubr.msk.bf16.gmra.mrb[20].mxu0 %vm1337_vm13, %v1604_v23  ;;  %1370 = vmatmul.mubr.msk.bf16.gmra.mrb[20].mxu1 %vm1369_vm1, %v1604_v23  ;;  %vm1373_vm13 = vmpackc.low %vm292_vm7, %vm290_vm6  ;;  %vm262_vm1 = vcmp.eq.s32.totalorder %v174_v52, %v1744_v24 }
  0x57   :  { %1340 = vmatprep.mubr.msk.bf16.mxu0 %vm1339_vm2, %v1604_v23  ;;  %1372 = vmatprep.mubr.msk.bf16.mxu1 %vm1371_vm3, %v1604_v23  ;;  %vm264_vm2 = vcmp.eq.s32.totalorder %v175_v53, %v1744_v24  ;;  %vm294_vm3 = vcmp.eq.s32.totalorder %v190_v54, %v1744_v24  ;;  %v477_v24 = vld [vmem:[#allocation2 + $0x98] sm:$0xff]  ;;  %v464_v54 = vld [vmem:[#allocation2 + $0x30] sm:$0xff] }
  0x58   :  { %vm1345_vm5 = vmpackc.low %vm264_vm2, %vm262_vm1 }
  0x59   :  { %vm1377_vm6 = vmpackc.low %vm296_vm4, %vm294_vm3 }
  0x5e   :  { %1342 = vmatmul.mubr.msk.bf16.gmra.mrb[24].mxu0 %vm1341_vm10, %v1604_v23  ;;  %1374 = vmatmul.mubr.msk.bf16.gmra.mrb[24].mxu1 %vm1373_vm13, %v1604_v23 }
  0x5f   :  { %1344 = vmatprep.mubr.msk.bf16.mxu0 %vm1343_vm14, %v1604_v23  ;;  %1376 = vmatprep.mubr.msk.bf16.mxu1 %vm1375_vm15, %v1604_v23 }
  0x66   :  { %1346 = vmatmul.mubr.msk.bf16.gmra.mrb[28].mxu0 %vm1345_vm5, %v1604_v23  ;;  %1378 = vmatmul.mubr.msk.bf16.gmra.mrb[28].mxu1 %vm1377_vm6, %v1604_v23 }
 0x101   :  { %v1413_v56 = vpop.f32.mrb[0].mxu0  ;;  %v1461_v57 = vpop.f32.mrb[0].mxu1 }
 0x102   :  { %v1414_v59 = vpop.f32.mrb[1].mxu0  ;;  %v1462_v61 = vpop.f32.mrb[1].mxu1 }
 0x103   :  { %v1415_v62 = vadd.f32 %v1414_v59, %v1413_v56  ;;  %v1463_v63 = vadd.f32 %v1462_v61, %v1461_v57  ;;  %v1416_v0 = vpop.f32.mrb[2].mxu0  ;;  %v1464_v1 = vpop.f32.mrb[2].mxu1  ;;  %v480_v56 = vld [vmem:[#allocation2 + $0xb0] sm:$0xff] }
 0x104   :  { %v1417_v3 = vpop.f32.mrb[3].mxu0  ;;  %v1465_v5 = vpop.f32.mrb[3].mxu1 }
 0x105   :  { %v779_v6 = vadd.f32 %v1415_v62, %v458_v58  ;;  %v795_v7 = vadd.f32 %v1463_v63, %v474_v60  ;;  %v1418_v8 = vadd.f32 %v1417_v3, %v1416_v0  ;;  %v1466_v9 = vadd.f32 %v1465_v5, %v1464_v1  ;;  %v465_v62 = vld [vmem:[#allocation2 + $0x38] sm:$0xff] }
 0x106   :  { %v481_v0 = vld [vmem:[#allocation2 + $0xb8] sm:$0xff] }
 0x107   :  { %812 = vst.msk [vmem:[#allocation2] sm:$0xff] %vm117_vm0, %v779_v6  ;;  %828 = vst.msk [vmem:[#allocation2 + $0x80] sm:$0xff] %vm117_vm0, %v795_v7  ;;  %v780_v10 = vadd.f32 %v1418_v8, %v459_v2  ;;  %v796_v11 = vadd.f32 %v1466_v9, %v475_v4 }
 0x109   :  { %813 = vst.msk [vmem:[#allocation2 + $0x8] sm:$0xff] %vm117_vm0, %v780_v10  ;;  %829 = vst.msk [vmem:[#allocation2 + $0x88] sm:$0xff] %vm117_vm0, %v796_v11  ;;  %v1419_v12 = vpop.f32.mrb[4].mxu0  ;;  %v1467_v13 = vpop.f32.mrb[4].mxu1  ;;  %v466_v10 = vld [vmem:[#allocation2 + $0x40] sm:$0xff] }
 0x10a   :  { %v1420_v15 = vpop.f32.mrb[5].mxu0  ;;  %v1468_v17 = vpop.f32.mrb[5].mxu1 }
 0x10b   :  { %v1421_v18 = vadd.f32 %v1420_v15, %v1419_v12  ;;  %v1469_v19 = vadd.f32 %v1468_v17, %v1467_v13  ;;  %v1422_v20 = vpop.f32.mrb[6].mxu0  ;;  %v1470_v21 = vpop.f32.mrb[6].mxu1  ;;  %v482_v12 = vld [vmem:[#allocation2 + $0xc0] sm:$0xff] }
 0x10c   :  { %v1423_v23 = vpop.f32.mrb[7].mxu0  ;;  %v1471_v25 = vpop.f32.mrb[7].mxu1 }
 0x10d   :  { %v781_v26 = vadd.f32 %v1421_v18, %v460_v14  ;;  %v797_v27 = vadd.f32 %v1469_v19, %v476_v16  ;;  %v1424_v28 = vadd.f32 %v1423_v23, %v1422_v20  ;;  %v1472_v29 = vadd.f32 %v1471_v25, %v1470_v21  ;;  %v467_v18 = vld [vmem:[#allocation2 + $0x48] sm:$0xff] }
 0x10e   :  { %v483_v20 = vld [vmem:[#allocation2 + $0xc8] sm:$0xff] }
 0x10f   :  { %814 = vst.msk [vmem:[#allocation2 + $0x10] sm:$0xff] %vm117_vm0, %v781_v26  ;;  %830 = vst.msk [vmem:[#allocation2 + $0x90] sm:$0xff] %vm117_vm0, %v797_v27  ;;  %v782_v30 = vadd.f32 %v1424_v28, %v461_v22  ;;  %v798_v31 = vadd.f32 %v1472_v29, %v477_v24 }
 0x111   :  { %815 = vst.msk [vmem:[#allocation2 + $0x18] sm:$0xff] %vm117_vm0, %v782_v30  ;;  %831 = vst.msk [vmem:[#allocation2 + $0x98] sm:$0xff] %vm117_vm0, %v798_v31  ;;  %v1425_v32 = vpop.f32.mrb[8].mxu0  ;;  %v1473_v33 = vpop.f32.mrb[8].mxu1  ;;  %v468_v30 = vld [vmem:[#allocation2 + $0x50] sm:$0xff] }
 0x112   :  { %v1426_v35 = vpop.f32.mrb[9].mxu0  ;;  %v1474_v37 = vpop.f32.mrb[9].mxu1 }
 0x113   :  { %v1427_v38 = vadd.f32 %v1426_v35, %v1425_v32  ;;  %v1475_v39 = vadd.f32 %v1474_v37, %v1473_v33  ;;  %v1428_v40 = vpop.f32.mrb[10].mxu0  ;;  %v1476_v41 = vpop.f32.mrb[10].mxu1  ;;  %v484_v32 = vld [vmem:[#allocation2 + $0xd0] sm:$0xff] }
 0x114   :  { %v1429_v43 = vpop.f32.mrb[11].mxu0  ;;  %v1477_v45 = vpop.f32.mrb[11].mxu1 }
 0x115   :  { %v783_v46 = vadd.f32 %v1427_v38, %v462_v34  ;;  %v799_v47 = vadd.f32 %v1475_v39, %v478_v36  ;;  %v1430_v48 = vadd.f32 %v1429_v43, %v1428_v40  ;;  %v1478_v49 = vadd.f32 %v1477_v45, %v1476_v41  ;;  %v469_v38 = vld [vmem:[#allocation2 + $0x58] sm:$0xff] }
 0x116   :  { %v485_v40 = vld [vmem:[#allocation2 + $0xd8] sm:$0xff] }
 0x117   :  { %816 = vst.msk [vmem:[#allocation2 + $0x20] sm:$0xff] %vm117_vm0, %v783_v46  ;;  %832 = vst.msk [vmem:[#allocation2 + $0xa0] sm:$0xff] %vm117_vm0, %v799_v47  ;;  %v784_v50 = vadd.f32 %v1430_v48, %v463_v42  ;;  %v800_v51 = vadd.f32 %v1478_v49, %v479_v44 }
 0x119   :  { %817 = vst.msk [vmem:[#allocation2 + $0x28] sm:$0xff] %vm117_vm0, %v784_v50  ;;  %833 = vst.msk [vmem:[#allocation2 + $0xa8] sm:$0xff] %vm117_vm0, %v800_v51  ;;  %v1431_v52 = vpop.f32.mrb[12].mxu0  ;;  %v1479_v53 = vpop.f32.mrb[12].mxu1  ;;  %v470_v50 = vld [vmem:[#allocation2 + $0x60] sm:$0xff] }
 0x11a   :  { %v1432_v55 = vpop.f32.mrb[13].mxu0  ;;  %v1480_v57 = vpop.f32.mrb[13].mxu1 }
 0x11b   :  { %v1433_v58 = vadd.f32 %v1432_v55, %v1431_v52  ;;  %v1481_v59 = vadd.f32 %v1480_v57, %v1479_v53  ;;  %v1434_v60 = vpop.f32.mrb[14].mxu0  ;;  %v1482_v61 = vpop.f32.mrb[14].mxu1  ;;  %v486_v52 = vld [vmem:[#allocation2 + $0xe0] sm:$0xff] }
 0x11c   :  { %v1435_v63 = vpop.f32.mrb[15].mxu0  ;;  %v1483_v1 = vpop.f32.mrb[15].mxu1 }
 0x11d   :  { %v785_v2 = vadd.f32 %v1433_v58, %v464_v54  ;;  %v801_v3 = vadd.f32 %v1481_v59, %v480_v56  ;;  %v1436_v4 = vadd.f32 %v1435_v63, %v1434_v60  ;;  %v1484_v5 = vadd.f32 %v1483_v1, %v1482_v61  ;;  %v471_v58 = vld [vmem:[#allocation2 + $0x68] sm:$0xff] }
 0x11e   :  { %v487_v60 = vld [vmem:[#allocation2 + $0xe8] sm:$0xff] }
 0x11f   :  { %818 = vst.msk [vmem:[#allocation2 + $0x30] sm:$0xff] %vm117_vm0, %v785_v2  ;;  %834 = vst.msk [vmem:[#allocation2 + $0xb0] sm:$0xff] %vm117_vm0, %v801_v3  ;;  %v786_v6 = vadd.f32 %v1436_v4, %v465_v62  ;;  %v802_v7 = vadd.f32 %v1484_v5, %v481_v0 }
 0x121   :  { %819 = vst.msk [vmem:[#allocation2 + $0x38] sm:$0xff] %vm117_vm0, %v786_v6  ;;  %835 = vst.msk [vmem:[#allocation2 + $0xb8] sm:$0xff] %vm117_vm0, %v802_v7  ;;  %v1437_v8 = vpop.f32.mrb[16].mxu0  ;;  %v1485_v9 = vpop.f32.mrb[16].mxu1  ;;  %v472_v6 = vld [vmem:[#allocation2 + $0x70] sm:$0xff] }
 0x122   :  { %v1438_v11 = vpop.f32.mrb[17].mxu0  ;;  %v1486_v13 = vpop.f32.mrb[17].mxu1 }
 0x123   :  { %v1439_v14 = vadd.f32 %v1438_v11, %v1437_v8  ;;  %v1487_v15 = vadd.f32 %v1486_v13, %v1485_v9  ;;  %v1440_v16 = vpop.f32.mrb[18].mxu0  ;;  %v1488_v17 = vpop.f32.mrb[18].mxu1  ;;  %v488_v8 = vld [vmem:[#allocation2 + $0xf0] sm:$0xff] }
 0x124   :  { %v1441_v19 = vpop.f32.mrb[19].mxu0  ;;  %v1489_v21 = vpop.f32.mrb[19].mxu1 }
 0x125   :  { %v787_v22 = vadd.f32 %v1439_v14, %v466_v10  ;;  %v803_v23 = vadd.f32 %v1487_v15, %v482_v12  ;;  %v1442_v24 = vadd.f32 %v1441_v19, %v1440_v16  ;;  %v1490_v25 = vadd.f32 %v1489_v21, %v1488_v17  ;;  %v473_v14 = vld [vmem:[#allocation2 + $0x78] sm:$0xff] }
 0x126   :  { %v489_v16 = vld [vmem:[#allocation2 + $0xf8] sm:$0xff] }
 0x127   :  { %820 = vst.msk [vmem:[#allocation2 + $0x40] sm:$0xff] %vm117_vm0, %v787_v22  ;;  %836 = vst.msk [vmem:[#allocation2 + $0xc0] sm:$0xff] %vm117_vm0, %v803_v23  ;;  %v788_v26 = vadd.f32 %v1442_v24, %v467_v18  ;;  %v804_v27 = vadd.f32 %v1490_v25, %v483_v20 }
 0x129   :  { %821 = vst.msk [vmem:[#allocation2 + $0x48] sm:$0xff] %vm117_vm0, %v788_v26  ;;  %837 = vst.msk [vmem:[#allocation2 + $0xc8] sm:$0xff] %vm117_vm0, %v804_v27  ;;  %v1443_v28 = vpop.f32.mrb[20].mxu0  ;;  %v1491_v29 = vpop.f32.mrb[20].mxu1 }
 0x12a   :  { %v1444_v31 = vpop.f32.mrb[21].mxu0  ;;  %v1492_v33 = vpop.f32.mrb[21].mxu1 }
 0x12b   :  { %v1445_v34 = vadd.f32 %v1444_v31, %v1443_v28  ;;  %v1493_v35 = vadd.f32 %v1492_v33, %v1491_v29  ;;  %v1446_v36 = vpop.f32.mrb[22].mxu0  ;;  %v1494_v37 = vpop.f32.mrb[22].mxu1 }
 0x12c   :  { %v1447_v39 = vpop.f32.mrb[23].mxu0  ;;  %v1495_v41 = vpop.f32.mrb[23].mxu1 }
 0x12d   :  { %v789_v42 = vadd.f32 %v1445_v34, %v468_v30  ;;  %v805_v43 = vadd.f32 %v1493_v35, %v484_v32  ;;  %v1448_v44 = vadd.f32 %v1447_v39, %v1446_v36  ;;  %v1496_v45 = vadd.f32 %v1495_v41, %v1494_v37 }
 0x12f   :  { %822 = vst.msk [vmem:[#allocation2 + $0x50] sm:$0xff] %vm117_vm0, %v789_v42  ;;  %838 = vst.msk [vmem:[#allocation2 + $0xd0] sm:$0xff] %vm117_vm0, %v805_v43  ;;  %v790_v46 = vadd.f32 %v1448_v44, %v469_v38  ;;  %v806_v47 = vadd.f32 %v1496_v45, %v485_v40 }
 0x131   :  { %823 = vst.msk [vmem:[#allocation2 + $0x58] sm:$0xff] %vm117_vm0, %v790_v46  ;;  %839 = vst.msk [vmem:[#allocation2 + $0xd8] sm:$0xff] %vm117_vm0, %v806_v47  ;;  %v1449_v48 = vpop.f32.mrb[24].mxu0  ;;  %v1497_v49 = vpop.f32.mrb[24].mxu1 }
 0x132   :  { %v1450_v51 = vpop.f32.mrb[25].mxu0  ;;  %v1498_v53 = vpop.f32.mrb[25].mxu1 }
 0x133   :  { %v1451_v54 = vadd.f32 %v1450_v51, %v1449_v48  ;;  %v1499_v55 = vadd.f32 %v1498_v53, %v1497_v49  ;;  %v1452_v56 = vpop.f32.mrb[26].mxu0  ;;  %v1500_v57 = vpop.f32.mrb[26].mxu1 }
 0x134   :  { %v1453_v59 = vpop.f32.mrb[27].mxu0  ;;  %v1501_v61 = vpop.f32.mrb[27].mxu1 }
 0x135   :  { %v791_v62 = vadd.f32 %v1451_v54, %v470_v50  ;;  %v807_v63 = vadd.f32 %v1499_v55, %v486_v52  ;;  %v1454_v0 = vadd.f32 %v1453_v59, %v1452_v56  ;;  %v1502_v1 = vadd.f32 %v1501_v61, %v1500_v57 }
 0x137   :  { %824 = vst.msk [vmem:[#allocation2 + $0x60] sm:$0xff] %vm117_vm0, %v791_v62  ;;  %840 = vst.msk [vmem:[#allocation2 + $0xe0] sm:$0xff] %vm117_vm0, %v807_v63  ;;  %v792_v2 = vadd.f32 %v1454_v0, %v471_v58  ;;  %v808_v3 = vadd.f32 %v1502_v1, %v487_v60 }
 0x139   :  { %825 = vst.msk [vmem:[#allocation2 + $0x68] sm:$0xff] %vm117_vm0, %v792_v2  ;;  %841 = vst.msk [vmem:[#allocation2 + $0xe8] sm:$0xff] %vm117_vm0, %v808_v3  ;;  %v1455_v4 = vpop.f32.mrb[28].mxu0  ;;  %v1503_v5 = vpop.f32.mrb[28].mxu1 }
 0x13a   :  { %v1456_v7 = vpop.f32.mrb[29].mxu0  ;;  %v1504_v9 = vpop.f32.mrb[29].mxu1 }
 0x13b   :  { %v1457_v10 = vadd.f32 %v1456_v7, %v1455_v4  ;;  %v1505_v11 = vadd.f32 %v1504_v9, %v1503_v5  ;;  %v1458_v12 = vpop.f32.mrb[30].mxu0  ;;  %v1506_v13 = vpop.f32.mrb[30].mxu1 }
 0x13c   :  { %v1459_v15 = vpop.f32.mrb[31].mxu0  ;;  %v1507_v17 = vpop.f32.mrb[31].mxu1 }
 0x13d   :  { %v793_v18 = vadd.f32 %v1457_v10, %v472_v6  ;;  %v809_v19 = vadd.f32 %v1505_v11, %v488_v8  ;;  %v1460_v20 = vadd.f32 %v1459_v15, %v1458_v12  ;;  %v1508_v21 = vadd.f32 %v1507_v17, %v1506_v13 }
 0x13f   :  { %826 = vst.msk [vmem:[#allocation2 + $0x70] sm:$0xff] %vm117_vm0, %v793_v18  ;;  %842 = vst.msk [vmem:[#allocation2 + $0xf0] sm:$0xff] %vm117_vm0, %v809_v19  ;;  %v794_v22 = vadd.f32 %v1460_v20, %v473_v14  ;;  %v810_v23 = vadd.f32 %v1508_v21, %v489_v16 }
 0x141   :  { %827 = vst.msk [vmem:[#allocation2 + $0x78] sm:$0xff] %vm117_vm0, %v794_v22  ;;  %843 = vst.msk [vmem:[#allocation2 + $0xf8] sm:$0xff] %vm117_vm0, %v810_v23 }
 0x142 PF:  { %v1601_v24 = vld [vmem:[%s2148_s4] sm:$0xff]   ;;  %v1602_v25 = vld [vmem:[%s2148_s4 + $0x8] sm:$0xff]   ;;  %v849_v31 = vld [vmem:[#allocation2 + $0x10] sm:$0xff] }
 0x143   :  { %1527 = vmatprep.subr.bf16.mxu0 %v1601_v24  ;;  %1579 = vmatprep.subr.bf16.mxu1 %v1601_v24  ;;  %v847_v26 = vld [vmem:[#allocation2] sm:$0xff]  ;;  %v848_v27 = vld [vmem:[#allocation2 + $0x8] sm:$0xff]  ;;  %v850_v32 = vld [vmem:[#allocation2 + $0x18] sm:$0xff] }
 0x144   :  { %v863_v28 = vld [vmem:[#allocation2 + $0x80] sm:$0xff]  ;;  %1528 = vmatpush3.bf16.msra.mxu0 %v1601_v24  ;;  %1581 = vmatpush3.bf16.msra.mxu1 %v1601_v24  ;;  %v879_v29 = vpack.c.bf16 %v848_v27, %v847_v26  ;;  %v864_v30 = vld [vmem:[#allocation2 + $0x88] sm:$0xff]  ;;  %v865_v34 = vld [vmem:[#allocation2 + $0x90] sm:$0xff]  ;;  %v880_v40 = vpack.c.bf16 %v850_v32, %v849_v31 }
 0x145   :  { %1529 = vmatprep.subr.bf16.mxu0 %v1602_v25  ;;  %1580 = vmatprep.subr.bf16.mxu1 %v1602_v25  ;;  %v887_v33 = vpack.c.bf16 %v864_v30, %v863_v28  ;;  %v866_v35 = vld [vmem:[#allocation2 + $0x98] sm:$0xff]  ;;  %v851_v36 = vld [vmem:[#allocation2 + $0x20] sm:$0xff]  ;;  %v852_v37 = vld [vmem:[#allocation2 + $0x28] sm:$0xff] }
 0x146   :  { %1531 = vmatprep.mubr.msk.bf16.mxu0 %vm117_vm0, %v879_v29  ;;  %v867_v38 = vld [vmem:[#allocation2 + $0xa0] sm:$0xff]  ;;  %v868_v39 = vld [vmem:[#allocation2 + $0xa8] sm:$0xff]  ;;  %v888_v41 = vpack.c.bf16 %v866_v35, %v865_v34  ;;  %v881_v42 = vpack.c.bf16 %v852_v37, %v851_v36  ;;  %v853_v44 = vld [vmem:[#allocation2 + $0x30] sm:$0xff] }
 0x147   :  { %1547 = vmatprep.mubr.msk.bf16.mxu1 %vm117_vm0, %v887_v33  ;;  %v889_v43 = vpack.c.bf16 %v868_v39, %v867_v38  ;;  %v854_v45 = vld [vmem:[#allocation2 + $0x38] sm:$0xff]  ;;  %v869_v46 = vld [vmem:[#allocation2 + $0xb0] sm:$0xff]  ;;  %v855_v48 = vld [vmem:[#allocation2 + $0x40] sm:$0xff] }
 0x148   :  { %1530 = vmatpush3.bf16.msra.mxu0 %v1602_v25  ;;  %1582 = vmatpush3.bf16.msra.mxu1 %v1602_v25  ;;  %v870_v47 = vld [vmem:[#allocation2 + $0xb8] sm:$0xff]  ;;  %v856_v49 = vld [vmem:[#allocation2 + $0x48] sm:$0xff]  ;;  %v871_v50 = vld [vmem:[#allocation2 + $0xc0] sm:$0xff]  ;;  %v882_v52 = vpack.c.bf16 %v854_v45, %v853_v44 }
 0x149   :  { %v872_v51 = vld [vmem:[#allocation2 + $0xc8] sm:$0xff]  ;;  %v890_v53 = vpack.c.bf16 %v870_v47, %v869_v46  ;;  %v883_v54 = vpack.c.bf16 %v856_v49, %v855_v48  ;;  %v857_v56 = vld [vmem:[#allocation2 + $0x50] sm:$0xff]  ;;  %v858_v57 = vld [vmem:[#allocation2 + $0x58] sm:$0xff] }
 0x14a   :  { %v891_v55 = vpack.c.bf16 %v872_v51, %v871_v50  ;;  %v873_v58 = vld [vmem:[#allocation2 + $0xd0] sm:$0xff]  ;;  %v874_v59 = vld [vmem:[#allocation2 + $0xd8] sm:$0xff]  ;;  %v859_v60 = vld [vmem:[#allocation2 + $0x60] sm:$0xff]  ;;  %v884_v0 = vpack.c.bf16 %v858_v57, %v857_v56 }
 0x14b   :  { %1532 = vmatmul.mubr.msk.bf16.vlgmr.msra.gmra.mrb[0].mxu0 %vm117_vm0, %v880_v40  ;;  %1548 = vmatmul.mubr.msk.bf16.vlgmr.msra.gmra.mrb[0].mxu1 %vm117_vm0, %v888_v41  ;;  %v860_v61 = vld [vmem:[#allocation2 + $0x68] sm:$0xff]  ;;  %v875_v62 = vld [vmem:[#allocation2 + $0xe0] sm:$0xff]  ;;  %v892_v1 = vpack.c.bf16 %v874_v59, %v873_v58  ;;  %v861_v4 = vld [vmem:[#allocation2 + $0x70] sm:$0xff] }
 0x14c   :  { %1535 = vmatprep.mubr.msk.bf16.mxu0 %vm117_vm0, %v881_v42  ;;  %1551 = vmatprep.mubr.msk.bf16.mxu1 %vm117_vm0, %v889_v43  ;;  %v876_v63 = vld [vmem:[#allocation2 + $0xe8] sm:$0xff]  ;;  %v885_v2 = vpack.c.bf16 %v860_v61, %v859_v60  ;;  %v862_v5 = vld [vmem:[#allocation2 + $0x78] sm:$0xff]  ;;  %v877_v6 = vld [vmem:[#allocation2 + $0xf0] sm:$0xff] }
 0x14d   :  { %v893_v3 = vpack.c.bf16 %v876_v63, %v875_v62  ;;  %v878_v7 = vld [vmem:[#allocation2 + $0xf8] sm:$0xff]  ;;  %v886_v8 = vpack.c.bf16 %v862_v5, %v861_v4  ;;  %v1123_v10 = vld [vmem:[%s2149_s5 + $0x10] sm:$0xff]  ;;  %v1121_v12 = vld [vmem:[%s2149_s5] sm:$0xff] }
 0x14e   :  { %v894_v9 = vpack.c.bf16 %v878_v7, %v877_v6  ;;  %v1139_v11 = vld [vmem:[%s2149_s5 + $0x90] sm:$0xff]  ;;  %v1137_v13 = vld [vmem:[%s2149_s5 + $0x80] sm:$0xff]  ;;  %v1124_v16 = vld [vmem:[%s2149_s5 + $0x18] sm:$0xff] }
 0x14f   :  { %v1140_v17 = vld [vmem:[%s2149_s5 + $0x98] sm:$0xff]  ;;  %v1122_v22 = vld [vmem:[%s2149_s5 + $0x8] sm:$0xff]  ;;  %v1127_v34 = vld [vmem:[%s2149_s5 + $0x30] sm:$0xff] }
 0x150   :  { %v1138_v23 = vld [vmem:[%s2149_s5 + $0x88] sm:$0xff]  ;;  %v1143_v35 = vld [vmem:[%s2149_s5 + $0xb0] sm:$0xff]  ;;  %v1125_v36 = vld [vmem:[%s2149_s5 + $0x20] sm:$0xff] }
 0x151   :  { %v1141_v37 = vld [vmem:[%s2149_s5 + $0xa0] sm:$0xff]  ;;  %v1128_v40 = vld [vmem:[%s2149_s5 + $0x38] sm:$0xff]  ;;  %v1126_v46 = vld [vmem:[%s2149_s5 + $0x28] sm:$0xff] }
 0x152   :  { %v1144_v41 = vld [vmem:[%s2149_s5 + $0xb8] sm:$0xff]  ;;  %v1142_v47 = vld [vmem:[%s2149_s5 + $0xa8] sm:$0xff]  ;;  %v1131_v58 = vld [vmem:[%s2149_s5 + $0x50] sm:$0xff] }
 0x153   :  { %1536 = vmatmul.mubr.msk.bf16.gmra.mrb[4].mxu0 %vm117_vm0, %v882_v52  ;;  %1552 = vmatmul.mubr.msk.bf16.gmra.mrb[4].mxu1 %vm117_vm0, %v890_v53  ;;  %v1147_v59 = vld [vmem:[%s2149_s5 + $0xd0] sm:$0xff]  ;;  %v1129_v60 = vld [vmem:[%s2149_s5 + $0x40] sm:$0xff]  ;;  %v1130_v6 = vld [vmem:[%s2149_s5 + $0x48] sm:$0xff] }
 0x154   :  { %1539 = vmatprep.mubr.msk.bf16.mxu0 %vm117_vm0, %v883_v54  ;;  %1555 = vmatprep.mubr.msk.bf16.mxu1 %vm117_vm0, %v891_v55  ;;  %v1145_v61 = vld [vmem:[%s2149_s5 + $0xc0] sm:$0xff]  ;;  %v1146_v7 = vld [vmem:[%s2149_s5 + $0xc8] sm:$0xff] }
 0x15b   :  { %1540 = vmatmul.mubr.msk.bf16.gmra.mrb[8].mxu0 %vm117_vm0, %v884_v0  ;;  %1556 = vmatmul.mubr.msk.bf16.gmra.mrb[8].mxu1 %vm117_vm0, %v892_v1  ;;  %v1132_v0 = vld [vmem:[%s2149_s5 + $0x58] sm:$0xff] }
 0x15c   :  { %1543 = vmatprep.mubr.msk.bf16.mxu0 %vm117_vm0, %v885_v2  ;;  %1559 = vmatprep.mubr.msk.bf16.mxu1 %vm117_vm0, %v893_v3  ;;  %v1148_v1 = vld [vmem:[%s2149_s5 + $0xd8] sm:$0xff] }
 0x163   :  { %1544 = vmatmul.mubr.msk.bf16.gmra.mrb[12].mxu0 %vm117_vm0, %v886_v8  ;;  %1560 = vmatmul.mubr.msk.bf16.gmra.mrb[12].mxu1 %vm117_vm0, %v894_v9 }
 0x21e   :  { %v1533_v14 = vpop.f32.mrb[0].mxu0  ;;  %v1549_v15 = vpop.f32.mrb[0].mxu1 }
 0x21f   :  { %v1155_v18 = vadd.f32 %v1533_v14, %v1123_v10  ;;  %v1171_v19 = vadd.f32 %v1549_v15, %v1139_v11  ;;  %v994_v20 = vpop.f32.mrb[1].mxu0  ;;  %v1058_v21 = vpop.f32.mrb[1].mxu1 }
 0x220   :  { %v1153_v24 = vadd.f32 %v1121_v12, %v994_v20  ;;  %v1169_v25 = vadd.f32 %v1137_v13, %v1058_v21  ;;  %v1534_v26 = vpop.f32.mrb[2].mxu0  ;;  %v1550_v27 = vpop.f32.mrb[2].mxu1  ;;  %v1133_v20 = vld [vmem:[%s2149_s5 + $0x60] sm:$0xff] }
 0x221   :  { %1187 = vst.msk [vmem:[%s2150_s6 + $0x10] sm:$0xff] %vm117_vm0, %v1155_v18  ;;  %1203 = vst.msk [vmem:[%s2150_s6 + $0x90] sm:$0xff] %vm117_vm0, %v1171_v19  ;;  %v1156_v28 = vadd.f32 %v1534_v26, %v1124_v16  ;;  %v1172_v29 = vadd.f32 %v1550_v27, %v1140_v17  ;;  %v997_v30 = vpop.f32.mrb[3].mxu0  ;;  %v1061_v31 = vpop.f32.mrb[3].mxu1  ;;  %v1135_v18 = vld [vmem:[%s2149_s5 + $0x70] sm:$0xff]  ;;  %v1149_v21 = vld [vmem:[%s2149_s5 + $0xe0] sm:$0xff] }
 0x222   :  { %1185 = vst.msk [vmem:[%s2150_s6] sm:$0xff] %vm117_vm0, %v1153_v24  ;;  %1201 = vst.msk [vmem:[%s2150_s6 + $0x80] sm:$0xff] %vm117_vm0, %v1169_v25  ;;  %v1154_v32 = vadd.f32 %v1122_v22, %v997_v30  ;;  %v1170_v33 = vadd.f32 %v1138_v23, %v1061_v31  ;;  %v1151_v19 = vld [vmem:[%s2149_s5 + $0xf0] sm:$0xff]  ;;  %v1136_v24 = vld [vmem:[%s2149_s5 + $0x78] sm:$0xff] }
 0x223   :  { %1188 = vst.msk [vmem:[%s2150_s6 + $0x18] sm:$0xff] %vm117_vm0, %v1156_v28  ;;  %1204 = vst.msk [vmem:[%s2150_s6 + $0x98] sm:$0xff] %vm117_vm0, %v1172_v29  ;;  %v1152_v25 = vld [vmem:[%s2149_s5 + $0xf8] sm:$0xff]  ;;  %v1134_v30 = vld [vmem:[%s2149_s5 + $0x68] sm:$0xff] }
 0x224   :  { %1186 = vst.msk [vmem:[%s2150_s6 + $0x8] sm:$0xff] %vm117_vm0, %v1154_v32  ;;  %1202 = vst.msk [vmem:[%s2150_s6 + $0x88] sm:$0xff] %vm117_vm0, %v1170_v33  ;;  %v1150_v31 = vld [vmem:[%s2149_s5 + $0xe8] sm:$0xff] }
 0x226   :  { %v1537_v38 = vpop.f32.mrb[4].mxu0  ;;  %v1553_v39 = vpop.f32.mrb[4].mxu1 }
 0x227   :  { %v1159_v42 = vadd.f32 %v1537_v38, %v1127_v34  ;;  %v1175_v43 = vadd.f32 %v1553_v39, %v1143_v35  ;;  %v1010_v44 = vpop.f32.mrb[5].mxu0  ;;  %v1074_v45 = vpop.f32.mrb[5].mxu1 }
 0x228   :  { %v1157_v48 = vadd.f32 %v1125_v36, %v1010_v44  ;;  %v1173_v49 = vadd.f32 %v1141_v37, %v1074_v45  ;;  %v1538_v50 = vpop.f32.mrb[6].mxu0  ;;  %v1554_v51 = vpop.f32.mrb[6].mxu1 }
 0x229   :  { %1191 = vst.msk [vmem:[%s2150_s6 + $0x30] sm:$0xff] %vm117_vm0, %v1159_v42  ;;  %1207 = vst.msk [vmem:[%s2150_s6 + $0xb0] sm:$0xff] %vm117_vm0, %v1175_v43  ;;  %v1160_v52 = vadd.f32 %v1538_v50, %v1128_v40  ;;  %v1176_v53 = vadd.f32 %v1554_v51, %v1144_v41  ;;  %v1013_v54 = vpop.f32.mrb[7].mxu0  ;;  %v1077_v55 = vpop.f32.mrb[7].mxu1 }
 0x22a   :  { %1189 = vst.msk [vmem:[%s2150_s6 + $0x20] sm:$0xff] %vm117_vm0, %v1157_v48  ;;  %1205 = vst.msk [vmem:[%s2150_s6 + $0xa0] sm:$0xff] %vm117_vm0, %v1173_v49  ;;  %v1158_v56 = vadd.f32 %v1126_v46, %v1013_v54  ;;  %v1174_v57 = vadd.f32 %v1142_v47, %v1077_v55 }
 0x22b   :  { %1192 = vst.msk [vmem:[%s2150_s6 + $0x38] sm:$0xff] %vm117_vm0, %v1160_v52  ;;  %1208 = vst.msk [vmem:[%s2150_s6 + $0xb8] sm:$0xff] %vm117_vm0, %v1176_v53 }
 0x22c   :  { %1190 = vst.msk [vmem:[%s2150_s6 + $0x28] sm:$0xff] %vm117_vm0, %v1158_v56  ;;  %1206 = vst.msk [vmem:[%s2150_s6 + $0xa8] sm:$0xff] %vm117_vm0, %v1174_v57 }
 0x22e   :  { %v1541_v62 = vpop.f32.mrb[8].mxu0  ;;  %v1557_v63 = vpop.f32.mrb[8].mxu1 }
 0x22f   :  { %v1163_v2 = vadd.f32 %v1541_v62, %v1131_v58  ;;  %v1179_v3 = vadd.f32 %v1557_v63, %v1147_v59  ;;  %v1026_v4 = vpop.f32.mrb[9].mxu0  ;;  %v1090_v5 = vpop.f32.mrb[9].mxu1 }
 0x230   :  { %v1161_v8 = vadd.f32 %v1129_v60, %v1026_v4  ;;  %v1177_v9 = vadd.f32 %v1145_v61, %v1090_v5  ;;  %v1542_v10 = vpop.f32.mrb[10].mxu0  ;;  %v1558_v11 = vpop.f32.mrb[10].mxu1 }
 0x231   :  { %1195 = vst.msk [vmem:[%s2150_s6 + $0x50] sm:$0xff] %vm117_vm0, %v1163_v2  ;;  %1211 = vst.msk [vmem:[%s2150_s6 + $0xd0] sm:$0xff] %vm117_vm0, %v1179_v3  ;;  %v1164_v12 = vadd.f32 %v1542_v10, %v1132_v0  ;;  %v1180_v13 = vadd.f32 %v1558_v11, %v1148_v1  ;;  %v1029_v14 = vpop.f32.mrb[11].mxu0  ;;  %v1093_v15 = vpop.f32.mrb[11].mxu1 }
 0x232   :  { %1193 = vst.msk [vmem:[%s2150_s6 + $0x40] sm:$0xff] %vm117_vm0, %v1161_v8  ;;  %1209 = vst.msk [vmem:[%s2150_s6 + $0xc0] sm:$0xff] %vm117_vm0, %v1177_v9  ;;  %v1162_v16 = vadd.f32 %v1130_v6, %v1029_v14  ;;  %v1178_v17 = vadd.f32 %v1146_v7, %v1093_v15 }
 0x233   :  { %1196 = vst.msk [vmem:[%s2150_s6 + $0x58] sm:$0xff] %vm117_vm0, %v1164_v12  ;;  %1212 = vst.msk [vmem:[%s2150_s6 + $0xd8] sm:$0xff] %vm117_vm0, %v1180_v13 }
 0x234   :  { %1194 = vst.msk [vmem:[%s2150_s6 + $0x48] sm:$0xff] %vm117_vm0, %v1162_v16  ;;  %1210 = vst.msk [vmem:[%s2150_s6 + $0xc8] sm:$0xff] %vm117_vm0, %v1178_v17 }
 0x236   :  { %v1545_v22 = vpop.f32.mrb[12].mxu0  ;;  %v1561_v23 = vpop.f32.mrb[12].mxu1 }
 0x237   :  { %v1167_v26 = vadd.f32 %v1545_v22, %v1135_v18  ;;  %v1183_v27 = vadd.f32 %v1561_v23, %v1151_v19  ;;  %v1042_v28 = vpop.f32.mrb[13].mxu0  ;;  %v1106_v29 = vpop.f32.mrb[13].mxu1 }
 0x238   :  { %v1165_v32 = vadd.f32 %v1133_v20, %v1042_v28  ;;  %v1181_v33 = vadd.f32 %v1149_v21, %v1106_v29  ;;  %v1546_v34 = vpop.f32.mrb[14].mxu0  ;;  %v1562_v35 = vpop.f32.mrb[14].mxu1 }
 0x239   :  { %1199 = vst.msk [vmem:[%s2150_s6 + $0x70] sm:$0xff] %vm117_vm0, %v1167_v26  ;;  %1215 = vst.msk [vmem:[%s2150_s6 + $0xf0] sm:$0xff] %vm117_vm0, %v1183_v27  ;;  %v1168_v36 = vadd.f32 %v1546_v34, %v1136_v24  ;;  %v1184_v37 = vadd.f32 %v1562_v35, %v1152_v25  ;;  %v1045_v38 = vpop.f32.mrb[15].mxu0  ;;  %v1109_v39 = vpop.f32.mrb[15].mxu1 }
 0x23a   :  { %1197 = vst.msk [vmem:[%s2150_s6 + $0x60] sm:$0xff] %vm117_vm0, %v1165_v32  ;;  %1213 = vst.msk [vmem:[%s2150_s6 + $0xe0] sm:$0xff] %vm117_vm0, %v1181_v33  ;;  %v1166_v40 = vadd.f32 %v1134_v30, %v1045_v38  ;;  %v1182_v41 = vadd.f32 %v1150_v31, %v1109_v39 }
 0x23b   :  { %1200 = vst.msk [vmem:[%s2150_s6 + $0x78] sm:$0xff] %vm117_vm0, %v1168_v36  ;;  %1216 = vst.msk [vmem:[%s2150_s6 + $0xf8] sm:$0xff] %vm117_vm0, %v1184_v37 }
 0x23c   :  { %1198 = vst.msk [vmem:[%s2150_s6 + $0x68] sm:$0xff] %vm117_vm0, %v1166_v40  ;;  %1214 = vst.msk [vmem:[%s2150_s6 + $0xe8] sm:$0xff] %vm117_vm0, %v1182_v41 }

// kernel: chgnet_bond_graph_block.3
= control target key start
LH: loop header
LB: loop body
LE: loop exit
PB: predicated region body
PF: predicated region fallthrough
CT: control target
= control target key end

     0   :  { %vm255_vm0 = vcmask 130048   ;;  %vm557_vm1 = vcmask 261120   ;;  %vm2550_vm2 = vcmask 257024   ;;  %s4714_s5 = inlined_call_operand.vmem [shape: bf16[96,128], index: 5, kind: input, shape index: {}]   ;;  %s4715_s1 = inlined_call_operand.vmem [shape: bf16[256,16], index: 1, kind: input, shape index: {}]   ;;  %s4716_s0 = inlined_call_operand.vmem [shape: bf16[256,32], index: 0, kind: input, shape index: {}]   ;;  %s4717_s2 = inlined_call_operand.vmem [shape: bf16[256,16], index: 2, kind: input, shape index: {}]   ;;  %s4718_s3 = inlined_call_operand.vmem [shape: bf16[256,32], index: 3, kind: input, shape index: {}]   ;;  %s4719_s7 = inlined_call_operand.vmem [shape: bf16[128,64], index: 7, kind: input, shape index: {}]   ;;  %s4720_s6 = inlined_call_operand.vmem [shape: f32[1,128], index: 6, kind: input, shape index: {}]   ;;  %s4721_s8 = inlined_call_operand.vmem [shape: f32[1,64], index: 8, kind: input, shape index: {}]   ;;  %s4722_s4 = inlined_call_operand.vmem [shape: bf16[256,32], index: 4, kind: input, shape index: {}]   ;;  %s4723_s9 = inlined_call_operand.vmem [shape: bf16[256,32], index: 9, kind: output, shape index: {}]  }
   0x1   :  { %v3319_v0 = vld [vmem:[%s4714_s5 + $0x10] sm:$0xff]   ;;  %v3320_v1 = vld [vmem:[%s4715_s1] sm:$0xff]   ;;  %v3322_v3 = vld [vmem:[%s4715_s1 + $0x8] sm:$0xff]  }
   0x2   :  { %3032 = vmatprep.subr.bf16.mxu0 %v3319_v0  ;;  %3220 = vmatprep.subr.bf16.mxu1 %v3319_v0  ;;  %v3321_v2 = vld [vmem:[%s4715_s1 + $0x40] sm:$0xff]   ;;  %v3323_v4 = vld [vmem:[%s4715_s1 + $0x48] sm:$0xff]   ;;  %v3324_v5 = vld [vmem:[%s4714_s5 + $0x18] sm:$0xff]  }
   0x3   :  { %3033 = vmatpush3.bf16.msra.mxu0 %v3319_v0  ;;  %3221 = vmatpush3.bf16.msra.mxu1 %v3319_v0  ;;  %v3325_v6 = vld [vmem:[%s4715_s1 + $0x10] sm:$0xff]   ;;  %v3327_v8 = vld [vmem:[%s4715_s1 + $0x18] sm:$0xff]   ;;  %v3329_v10 = vld [vmem:[%s4715_s1 + $0x20] sm:$0xff]  }
   0x4   :  { %3034 = vmatprep.mubr.msk.bf16.mxu0 %vm255_vm0, %v3320_v1  ;;  %3050 = vmatprep.mubr.msk.bf16.mxu1 %vm255_vm0, %v3321_v2  ;;  %v3326_v7 = vld [vmem:[%s4715_s1 + $0x50] sm:$0xff]   ;;  %v3328_v9 = vld [vmem:[%s4715_s1 + $0x58] sm:$0xff]   ;;  %v3330_v11 = vld [vmem:[%s4715_s1 + $0x60] sm:$0xff]  }
   0x5   :  { %3102 = vmatprep.subr.bf16.mxu0 %v3324_v5  ;;  %v3331_v12 = vld [vmem:[%s4715_s1 + $0x28] sm:$0xff]   ;;  %v3333_v14 = vld [vmem:[%s4715_s1 + $0x30] sm:$0xff]   ;;  %v3337_v15 = vld [vmem:[%s4714_s5] sm:$0xff]  }
   0x6   :  { %3035 = vmatmul.mubr.msk.bf16.vlgmr.msra.gmra.mrb[0].mxu0 %vm255_vm0, %v3322_v3  ;;  %3051 = vmatmul.mubr.msk.bf16.vlgmr.msra.gmra.mrb[0].mxu1 %vm255_vm0, %v3323_v4  ;;  %v3332_v13 = vld [vmem:[%s4715_s1 + $0x68] sm:$0xff]   ;;  %v3334_v16 = vld [vmem:[%s4715_s1 + $0x70] sm:$0xff]   ;;  %v3335_v18 = vld [vmem:[%s4715_s1 + $0x38] sm:$0xff]  }
   0x7   :  { %3103 = vmatpush3.bf16.msra.mxu0 %v3324_v5  ;;  %3038 = vmatprep.mubr.msk.bf16.mxu0 %vm255_vm0, %v3325_v6  ;;  %v3338_v17 = vld [vmem:[%s4714_s5 + $0x8] sm:$0xff]   ;;  %v3343_v19 = vld [vmem:[%s4714_s5 + $0x20] sm:$0xff]   ;;  %v3336_v20 = vld [vmem:[%s4715_s1 + $0x78] sm:$0xff]  }
   0x8   :  { %3054 = vmatprep.mubr.msk.bf16.mxu1 %vm255_vm0, %v3326_v7  ;;  %3066 = vmatprep.subr.bf16.mxu1 %v3337_v15  ;;  %v3339_v21 = vld [vmem:[%s4716_s0] sm:$0xff]   ;;  %v3341_v23 = vld [vmem:[%s4716_s0 + $0x8] sm:$0xff]   ;;  %v3344_v25 = vld [vmem:[%s4716_s0 + $0x10] sm:$0xff]  }
   0x9   :  { %3067 = vmatpush3.bf16.msra.mxu1 %v3337_v15  ;;  %3136 = vmatprep.subr.bf16.mxu0 %v3343_v19  ;;  %v3340_v22 = vld [vmem:[%s4717_s2] sm:$0xff]   ;;  %v3342_v24 = vld [vmem:[%s4717_s2 + $0x8] sm:$0xff]   ;;  %v3345_v26 = vld [vmem:[%s4717_s2 + $0x10] sm:$0xff]  }
   0xa   :  { %3068 = vmatprep.subr.bf16.mxu1 %v3338_v17  ;;  %v3346_v27 = vld [vmem:[%s4716_s0 + $0x18] sm:$0xff]   ;;  %v3360_v29 = vld [vmem:[%s4714_s5 + $0x28] sm:$0xff]   ;;  %v3348_v30 = vld [vmem:[%s4716_s0 + $0x20] sm:$0xff]  }
   0xb   :  { %v3347_v28 = vld [vmem:[%s4717_s2 + $0x18] sm:$0xff]   ;;  %v3349_v31 = vld [vmem:[%s4717_s2 + $0x20] sm:$0xff]   ;;  %v3350_v32 = vld [vmem:[%s4716_s0 + $0x28] sm:$0xff]  }
   0xc   :  { %v3351_v33 = vld [vmem:[%s4717_s2 + $0x28] sm:$0xff]   ;;  %v3352_v34 = vld [vmem:[%s4716_s0 + $0x30] sm:$0xff]   ;;  %v3354_v36 = vld [vmem:[%s4716_s0 + $0x38] sm:$0xff]  }
   0xd   :  { %3069 = vmatpush3.bf16.msra.mxu1 %v3338_v17  ;;  %v3353_v35 = vld [vmem:[%s4717_s2 + $0x30] sm:$0xff]   ;;  %v3355_v37 = vld [vmem:[%s4717_s2 + $0x38] sm:$0xff]   ;;  %v3356_v38 = vld [vmem:[%s4716_s0 + $0x40] sm:$0xff]  }
   0xe   :  { %3039 = vmatmul.mubr.msk.bf16.gmra.mrb[4].mxu0 %vm255_vm0, %v3327_v8  ;;  %3055 = vmatmul.mubr.msk.bf16.gmra.mrb[4].mxu1 %vm255_vm0, %v3328_v9  ;;  %v3357_v39 = vld [vmem:[%s4717_s2 + $0x40] sm:$0xff]   ;;  %v3358_v40 = vld [vmem:[%s4716_s0 + $0x48] sm:$0xff]   ;;  %v3361_v42 = vld [vmem:[%s4716_s0 + $0x50] sm:$0xff]  }
   0xf   :  { %3042 = vmatprep.mubr.msk.bf16.mxu0 %vm255_vm0, %v3329_v10  ;;  %3058 = vmatprep.mubr.msk.bf16.mxu1 %vm255_vm0, %v3330_v11  ;;  %v3359_v41 = vld [vmem:[%s4717_s2 + $0x48] sm:$0xff]   ;;  %v3362_v43 = vld [vmem:[%s4717_s2 + $0x50] sm:$0xff]   ;;  %v3363_v44 = vld [vmem:[%s4716_s0 + $0x58] sm:$0xff]  }
  0x10   :  { %v3364_v45 = vld [vmem:[%s4717_s2 + $0x58] sm:$0xff]   ;;  %v3365_v46 = vld [vmem:[%s4716_s0 + $0x60] sm:$0xff]   ;;  %v3367_v48 = vld [vmem:[%s4716_s0 + $0x68] sm:$0xff]  }
  0x11   :  { %v3366_v47 = vld [vmem:[%s4717_s2 + $0x60] sm:$0xff]   ;;  %v3368_v49 = vld [vmem:[%s4717_s2 + $0x68] sm:$0xff]   ;;  %v3369_v50 = vld [vmem:[%s4716_s0 + $0x70] sm:$0xff]  }
  0x12   :  { %v3370_v51 = vld [vmem:[%s4717_s2 + $0x70] sm:$0xff]   ;;  %v3371_v52 = vld [vmem:[%s4716_s0 + $0x78] sm:$0xff]   ;;  %v3373_v54 = vld [vmem:[%s4718_s3] sm:$0xff]  }
  0x13   :  { %v3372_v53 = vld [vmem:[%s4717_s2 + $0x78] sm:$0xff]   ;;  %v3374_v55 = vld [vmem:[%s4718_s3 + $0x8] sm:$0xff]   ;;  %v3375_v56 = vld [vmem:[%s4718_s3 + $0x10] sm:$0xff]  }
  0x14   :  { %v3376_v57 = vld [vmem:[%s4718_s3 + $0x18] sm:$0xff]   ;;  %v3377_v58 = vld [vmem:[%s4718_s3 + $0x20] sm:$0xff]   ;;  %v3378_v59 = vld [vmem:[%s4718_s3 + $0x28] sm:$0xff]  }
  0x15   :  { %v3379_v60 = vld [vmem:[%s4718_s3 + $0x30] sm:$0xff]   ;;  %v3380_v61 = vld [vmem:[%s4718_s3 + $0x38] sm:$0xff]   ;;  %v3381_v62 = vld [vmem:[%s4718_s3 + $0x40] sm:$0xff]  }
  0x16   :  { %3043 = vmatmul.mubr.msk.bf16.gmra.mrb[8].mxu0 %vm255_vm0, %v3331_v12  ;;  %3059 = vmatmul.mubr.msk.bf16.gmra.mrb[8].mxu1 %vm255_vm0, %v3332_v13  ;;  %v3382_v63 = vld [vmem:[%s4718_s3 + $0x48] sm:$0xff]   ;;  %v3383_v0 = vld [vmem:[%s4718_s3 + $0x50] sm:$0xff]   ;;  %v3384_v1 = vld [vmem:[%s4718_s3 + $0x58] sm:$0xff]  }
  0x17   :  { %3046 = vmatprep.mubr.msk.bf16.mxu0 %vm255_vm0, %v3333_v14  ;;  %3062 = vmatprep.mubr.msk.bf16.mxu1 %vm255_vm0, %v3334_v16  ;;  %v3385_v2 = vld [vmem:[%s4718_s3 + $0x60] sm:$0xff]   ;;  %v3386_v3 = vld [vmem:[%s4718_s3 + $0x68] sm:$0xff]   ;;  %v3387_v4 = vld [vmem:[%s4718_s3 + $0x70] sm:$0xff]  }
  0x18   :  { %v3388_v5 = vld [vmem:[%s4718_s3 + $0x78] sm:$0xff]   ;;  %v3389_v6 = vld [vmem:[%s4719_s7] sm:$0xff]   ;;  %v3390_v7 = vld [vmem:[%s4719_s7 + $0x8] sm:$0xff]  }
  0x19   :  { %3172 = vmatprep.subr.bf16.mxu1 %v3389_v6  ;;  %v3391_v8 = vld [vmem:[%s4719_s7 + $0x10] sm:$0xff]   ;;  %v3392_v9 = vld [vmem:[%s4719_s7 + $0x18] sm:$0xff]   ;;  %v3393_v10 = vld [vmem:[%s4719_s7 + $0x20] sm:$0xff]  }
  0x1a   :  { %v3394_v11 = vld [vmem:[%s4719_s7 + $0x28] sm:$0xff]   ;;  %v3395_v12 = vld [vmem:[%s4719_s7 + $0x30] sm:$0xff]   ;;  %v3396_v16 = vld [vmem:[%s4719_s7 + $0x38] sm:$0xff]  }
  0x1e   :  { %3047 = vmatmul.mubr.msk.bf16.gmra.mrb[12].mxu0 %vm255_vm0, %v3335_v18  ;;  %3063 = vmatmul.mubr.msk.bf16.gmra.mrb[12].mxu1 %vm255_vm0, %v3336_v20 }
  0x1f   :  { %3070 = vmatprep.mubr.msk.bf16.mxu1 %vm557_vm1, %v3339_v21  ;;  %3104 = vmatprep.mubr.msk.bf16.mxu0 %vm255_vm0, %v3340_v22 }
  0x26   :  { %3071 = vmatmul.mubr.msk.bf16.vlgmr.msra.gmra.mrb[16].mxu1 %vm557_vm1, %v3341_v23  ;;  %3105 = vmatmul.mubr.msk.bf16.vlgmr.msra.gmra.mrb[16].mxu0 %vm255_vm0, %v3342_v24 }
  0x27   :  { %3137 = vmatpush3.bf16.msra.mxu0 %v3343_v19  ;;  %3074 = vmatprep.mubr.msk.bf16.mxu1 %vm557_vm1, %v3344_v25 }
  0x28   :  { %3108 = vmatprep.mubr.msk.bf16.mxu0 %vm255_vm0, %v3345_v26  ;;  %3138 = vmatprep.subr.bf16.mxu0 %v3360_v29 }
  0x29   :  { %3173 = vmatpush3.bf16.msra.mxu1 %v3389_v6 }
  0x2a   :  { %3174 = vmatprep.subr.bf16.mxu1 %v3390_v7 }
  0x2b   :  { %3139 = vmatpush3.bf16.msra.mxu0 %v3360_v29 }
  0x2d   :  { %3175 = vmatpush3.bf16.msra.mxu1 %v3390_v7 }
  0x2e   :  { %3075 = vmatmul.mubr.msk.bf16.gmra.mrb[20].mxu1 %vm557_vm1, %v3346_v27  ;;  %3109 = vmatmul.mubr.msk.bf16.gmra.mrb[20].mxu0 %vm255_vm0, %v3347_v28 }
  0x2f   :  { %3078 = vmatprep.mubr.msk.bf16.mxu1 %vm557_vm1, %v3348_v30  ;;  %3112 = vmatprep.mubr.msk.bf16.mxu0 %vm255_vm0, %v3349_v31 }
  0x30   :  { %3176 = vmatprep.subr.bf16.mxu1 %v3391_v8 }
  0x31   :  { %3177 = vmatpush3.bf16.msra.mxu1 %v3391_v8 }
  0x32   :  { %3178 = vmatprep.subr.bf16.mxu1 %v3392_v9 }
  0x35   :  { %3179 = vmatpush3.bf16.msra.mxu1 %v3392_v9 }
  0x36   :  { %3079 = vmatmul.mubr.msk.bf16.gmra.mrb[24].mxu1 %vm557_vm1, %v3350_v32  ;;  %3113 = vmatmul.mubr.msk.bf16.gmra.mrb[24].mxu0 %vm255_vm0, %v3351_v33 }
  0x37   :  { %3082 = vmatprep.mubr.msk.bf16.mxu1 %vm557_vm1, %v3352_v34  ;;  %3116 = vmatprep.mubr.msk.bf16.mxu0 %vm255_vm0, %v3353_v35 }
  0x38   :  { %3180 = vmatprep.subr.bf16.mxu1 %v3393_v10 }
  0x39   :  { %3181 = vmatpush3.bf16.msra.mxu1 %v3393_v10 }
  0x3a   :  { %3182 = vmatprep.subr.bf16.mxu1 %v3394_v11 }
  0x3d   :  { %3183 = vmatpush3.bf16.msra.mxu1 %v3394_v11 }
  0x3e   :  { %3083 = vmatmul.mubr.msk.bf16.gmra.mrb[28].mxu1 %vm557_vm1, %v3354_v36  ;;  %3117 = vmatmul.mubr.msk.bf16.gmra.mrb[28].mxu0 %vm255_vm0, %v3355_v37 }
  0x3f   :  { %3086 = vmatprep.mubr.msk.bf16.mxu1 %vm557_vm1, %v3356_v38  ;;  %3120 = vmatprep.mubr.msk.bf16.mxu0 %vm255_vm0, %v3357_v39 }
  0x40   :  { %3184 = vmatprep.subr.bf16.mxu1 %v3395_v12 }
  0x41   :  { %3185 = vmatpush3.bf16.msra.mxu1 %v3395_v12 }
  0x42   :  { %3186 = vmatprep.subr.bf16.mxu1 %v3396_v16 }
  0x45   :  { %3187 = vmatpush3.bf16.msra.mxu1 %v3396_v16 }
  0x46   :  { %3087 = vmatmul.mubr.msk.bf16.gmra.mrb[0].mxu1 %vm557_vm1, %v3358_v40  ;;  %3121 = vmatmul.mubr.msk.bf16.gmra.mrb[32].mxu0 %vm255_vm0, %v3359_v41 }
  0x47   :  { %3090 = vmatprep.mubr.msk.bf16.mxu1 %vm557_vm1, %v3361_v42  ;;  %3124 = vmatprep.mubr.msk.bf16.mxu0 %vm255_vm0, %v3362_v43 }
  0x4e   :  { %3091 = vmatmul.mubr.msk.bf16.gmra.mrb[4].mxu1 %vm557_vm1, %v3363_v44  ;;  %3125 = vmatmul.mubr.msk.bf16.gmra.mrb[36].mxu0 %vm255_vm0, %v3364_v45 }
  0x4f   :  { %3094 = vmatprep.mubr.msk.bf16.mxu1 %vm557_vm1, %v3365_v46  ;;  %3128 = vmatprep.mubr.msk.bf16.mxu0 %vm255_vm0, %v3366_v47 }
  0x56   :  { %3095 = vmatmul.mubr.msk.bf16.gmra.mrb[8].mxu1 %vm557_vm1, %v3367_v48  ;;  %3129 = vmatmul.mubr.msk.bf16.gmra.mrb[40].mxu0 %vm255_vm0, %v3368_v49 }
  0x57   :  { %3098 = vmatprep.mubr.msk.bf16.mxu1 %vm557_vm1, %v3369_v50  ;;  %3132 = vmatprep.mubr.msk.bf16.mxu0 %vm255_vm0, %v3370_v51 }
  0x5e   :  { %3099 = vmatmul.mubr.msk.bf16.gmra.mrb[12].mxu1 %vm557_vm1, %v3371_v52  ;;  %3133 = vmatmul.mubr.msk.bf16.gmra.mrb[44].mxu0 %vm255_vm0, %v3372_v53 }
  0x5f   :  { %3140 = vmatprep.mubr.msk.bf16.mxu0 %vm557_vm1, %v3373_v54 }
  0x66   :  { %3141 = vmatmul.mubr.msk.bf16.vlgmr.msra.gmra.mrb[16].mxu0 %vm557_vm1, %v3374_v55 }
  0x67   :  { %3144 = vmatprep.mubr.msk.bf16.mxu0 %vm557_vm1, %v3375_v56 }
  0x6e   :  { %3145 = vmatmul.mubr.msk.bf16.gmra.mrb[20].mxu0 %vm557_vm1, %v3376_v57 }
  0x6f   :  { %3148 = vmatprep.mubr.msk.bf16.mxu0 %vm557_vm1, %v3377_v58 }
  0x76   :  { %3149 = vmatmul.mubr.msk.bf16.gmra.mrb[24].mxu0 %vm557_vm1, %v3378_v59 }
  0x77   :  { %3152 = vmatprep.mubr.msk.bf16.mxu0 %vm557_vm1, %v3379_v60 }
  0x7e   :  { %3153 = vmatmul.mubr.msk.bf16.gmra.mrb[28].mxu0 %vm557_vm1, %v3380_v61 }
  0x7f   :  { %3156 = vmatprep.mubr.msk.bf16.mxu0 %vm557_vm1, %v3381_v62 }
  0x86   :  { %3157 = vmatmul.mubr.msk.bf16.gmra.mrb[32].mxu0 %vm557_vm1, %v3382_v63 }
  0x87   :  { %3160 = vmatprep.mubr.msk.bf16.mxu0 %vm557_vm1, %v3383_v0 }
  0x8e   :  { %3161 = vmatmul.mubr.msk.bf16.gmra.mrb[36].mxu0 %vm557_vm1, %v3384_v1 }
  0x8f   :  { %3164 = vmatprep.mubr.msk.bf16.mxu0 %vm557_vm1, %v3385_v2 }
  0x96   :  { %3165 = vmatmul.mubr.msk.bf16.gmra.mrb[40].mxu0 %vm557_vm1, %v3386_v3 }
  0x97   :  { %3168 = vmatprep.mubr.msk.bf16.mxu0 %vm557_vm1, %v3387_v4 }
  0x9e   :  { %3169 = vmatmul.mubr.msk.bf16.gmra.mrb[44].mxu0 %vm557_vm1, %v3388_v5 }
  0xd9   :  { %v3036_v13 = vpop.f32.mrb[0].mxu0 }
  0xda   :  { %v338_v14 = vpop.f32.mrb[1].mxu0 }
  0xdb   :  { %v3037_v15 = vpop.f32.mrb[2].mxu0 }
  0xdc   :  { %v341_v17 = vpop.f32.mrb[3].mxu0 }
  0xe1   :  { %v3040_v18 = vpop.f32.mrb[4].mxu0 }
  0xe2   :  { %v354_v19 = vpop.f32.mrb[5].mxu0 }
  0xe3   :  { %v3041_v20 = vpop.f32.mrb[6].mxu0 }
  0xe4   :  { %v357_v21 = vpop.f32.mrb[7].mxu0 }
  0xe9   :  { %v3044_v22 = vpop.f32.mrb[8].mxu0 }
  0xea   :  { %v370_v23 = vpop.f32.mrb[9].mxu0 }
  0xeb   :  { %v3045_v24 = vpop.f32.mrb[10].mxu0 }
  0xec   :  { %v373_v25 = vpop.f32.mrb[11].mxu0 }
  0xf1   :  { %v3048_v26 = vpop.f32.mrb[12].mxu0 }
  0xf2   :  { %v386_v27 = vpop.f32.mrb[13].mxu0 }
  0xf3   :  { %v3049_v28 = vpop.f32.mrb[14].mxu0 }
  0xf4   :  { %v389_v29 = vpop.f32.mrb[15].mxu0 }
  0xf9   :  { %v3072_v30 = vpop.f32.mrb[16].mxu1 }
  0xfa   :  { %v649_v31 = vadd.f32 %v3072_v30, %v3036_v13  ;;  %v640_v32 = vpop.f32.mrb[17].mxu1 }
  0xfb   :  { %v641_v33 = vadd.f32 %v640_v32, %v338_v14  ;;  %v3073_v34 = vpop.f32.mrb[18].mxu1  ;;  %v4057_v14 = vld [vmem:[%s4720_s6] ss:$0 sm:$0xff] }
  0xfc   :  { %v652_v35 = vadd.f32 %v3073_v34, %v3037_v15  ;;  %v643_v36 = vpop.f32.mrb[19].mxu1 }
  0xfd   :  { %v644_v37 = vadd.f32 %v643_v36, %v341_v17 }
 0x101   :  { %v3076_v38 = vpop.f32.mrb[20].mxu1 }
 0x102   :  { %v665_v39 = vadd.f32 %v3076_v38, %v3040_v18  ;;  %v656_v40 = vpop.f32.mrb[21].mxu1 }
 0x103   :  { %v657_v41 = vadd.f32 %v656_v40, %v354_v19  ;;  %v3077_v42 = vpop.f32.mrb[22].mxu1 }
 0x104   :  { %v4002_v43 = vadd.f32 %v3077_v42, %v3041_v20  ;;  %v659_v44 = vpop.f32.mrb[23].mxu1 }
 0x105   :  { %v4004_v45 = vadd.f32 %v659_v44, %v357_v21 }
 0x109   :  { %v3080_v46 = vpop.f32.mrb[24].mxu1 }
 0x10a   :  { %v4006_v47 = vadd.f32 %v3080_v46, %v3044_v22  ;;  %v672_v48 = vpop.f32.mrb[25].mxu1 }
 0x10b   :  { %v4008_v49 = vadd.f32 %v672_v48, %v370_v23  ;;  %v3081_v50 = vpop.f32.mrb[26].mxu1 }
 0x10c   :  { %v4010_v51 = vadd.f32 %v3081_v50, %v3045_v24  ;;  %v675_v52 = vpop.f32.mrb[27].mxu1 }
 0x10d   :  { %v4012_v53 = vadd.f32 %v675_v52, %v373_v25 }
 0x111   :  { %v3084_v54 = vpop.f32.mrb[28].mxu1 }
 0x112   :  { %v4014_v55 = vadd.f32 %v3084_v54, %v3048_v26  ;;  %v688_v56 = vpop.f32.mrb[29].mxu1 }
 0x113   :  { %v4016_v57 = vadd.f32 %v688_v56, %v386_v27  ;;  %v3085_v58 = vpop.f32.mrb[30].mxu1 }
 0x114   :  { %v4018_v59 = vadd.f32 %v3085_v58, %v3049_v28  ;;  %v691_v60 = vpop.f32.mrb[31].mxu1 }
 0x115   :  { %v4020_v61 = vadd.f32 %v691_v60, %v389_v29 }
 0x119   :  { %v4022_v62 = vpop.f32.mrb[0].mxu1 }
 0x11a   :  { %v4024_v63 = vpop.f32.mrb[1].mxu1 }
 0x11b   :  { %v4026_v0 = vpop.f32.mrb[2].mxu1 }
 0x11c   :  { %v4028_v1 = vpop.f32.mrb[3].mxu1 }
 0x121   :  { %v4030_v2 = vpop.f32.mrb[4].mxu1 }
 0x122   :  { %v4032_v3 = vpop.f32.mrb[5].mxu1 }
 0x123   :  { %v4034_v4 = vpop.f32.mrb[6].mxu1 }
 0x124   :  { %v4036_v5 = vpop.f32.mrb[7].mxu1 }
 0x129   :  { %v4038_v6 = vpop.f32.mrb[8].mxu1 }
 0x12a   :  { %v4040_v7 = vpop.f32.mrb[9].mxu1 }
 0x12b   :  { %v4042_v8 = vpop.f32.mrb[10].mxu1 }
 0x12c   :  { %v4044_v9 = vpop.f32.mrb[11].mxu1 }
 0x131   :  { %v4046_v10 = vpop.f32.mrb[12].mxu1 }
 0x132   :  { %v4048_v11 = vpop.f32.mrb[13].mxu1 }
 0x133   :  { %v4050_v12 = vpop.f32.mrb[14].mxu1 }
 0x134   :  { %v4052_v13 = vpop.f32.mrb[15].mxu1 }
 0x139   :  { %v3142_v15 = vpop.f32.mrb[16].mxu0 }
 0x13a   :  { %v3223_v16 = vadd.f32 %v3142_v15, %v649_v31  ;;  %v1274_v17 = vpop.f32.mrb[17].mxu0 }
 0x13b   :  { %v3225_v18 = vadd.f32 %v1274_v17, %v641_v33  ;;  %v3143_v19 = vpop.f32.mrb[18].mxu0 }
 0x13c   :  { %v4060_v20 = vadd.f32 %v3223_v16, %v4057_v14  ;;  %v3227_v21 = vadd.f32 %v3143_v19, %v652_v35  ;;  %v1277_v22 = vpop.f32.mrb[19].mxu0 }
 0x13d   :  { %v4063_v23 = vadd.f32 %v3225_v18, %v4057_v14  ;;  %v3229_v24 = vadd.f32 %v1277_v22, %v644_v37 }
 0x13e   :  { %v2724_v25 = vmul.f32 -1.442695, %v4060_v20  ;;  %v4067_v26 = vadd.f32 %v3227_v21, %v4057_v14 }
 0x13f   :  { %v2722_v27 = vmul.f32 -1.442695, %v4063_v23  ;;  %v4071_v28 = vadd.f32 %v3229_v24, %v4057_v14 }
 0x140   :  { %3397 = vpow2.f32 %v2724_v25  ;;  %v2725_v29 = vmul.f32 -1.442695, %v4067_v26 }
 0x141   :  { %3399 = vpow2.f32 %v2722_v27  ;;  %v2723_v30 = vmul.f32 -1.442695, %v4071_v28  ;;  %v3146_v31 = vpop.f32.mrb[20].mxu0 }
 0x142   :  { %3401 = vpow2.f32 %v2725_v29  ;;  %v3231_v32 = vadd.f32 %v3146_v31, %v665_v39  ;;  %v1290_v33 = vpop.f32.mrb[21].mxu0 }
 0x143   :  { %3403 = vpow2.f32 %v2723_v30  ;;  %v3233_v34 = vadd.f32 %v1290_v33, %v657_v41  ;;  %v3147_v35 = vpop.f32.mrb[22].mxu0 }
 0x144   :  { %v4076_v36 = vadd.f32 %v3231_v32, %v4057_v14  ;;  %v3235_v37 = vadd.f32 %v3147_v35, %v4002_v43  ;;  %v1293_v38 = vpop.f32.mrb[23].mxu0 }
 0x145   :  { %v4080_v40 = vadd.f32 %v3233_v34, %v4057_v14  ;;  %v3237_v42 = vadd.f32 %v1293_v38, %v4004_v45 }
 0x146   :  { %v2728_v44 = vmul.f32 -1.442695, %v4076_v36  ;;  %v4085_v46 = vadd.f32 %v3235_v37, %v4057_v14 }
 0x147   :  { %v2726_v39 = vmul.f32 -1.442695, %v4080_v40  ;;  %v4089_v41 = vadd.f32 %v3237_v42, %v4057_v14 }
 0x148   :  { %3405 = vpow2.f32 %v2728_v44  ;;  %v2729_v48 = vmul.f32 -1.442695, %v4085_v46 }
 0x149   :  { %3407 = vpow2.f32 %v2726_v39  ;;  %v2727_v43 = vmul.f32 -1.442695, %v4089_v41  ;;  %v3150_v50 = vpop.f32.mrb[24].mxu0 }
 0x14a   :  { %v3398_v52 = vpop.eup %3397  ;;  %3409 = vpow2.f32 %v2729_v48  ;;  %v3239_v45 = vadd.f32 %v3150_v50, %v4006_v47  ;;  %v1306_v54 = vpop.f32.mrb[25].mxu0 }
 0x14b   :  { %v3400_v56 = vpop.eup %3399  ;;  %v1569_v58 = vadd.f32 1.0, %v3398_v52  ;;  %3411 = vpow2.f32 %v2727_v43  ;;  %v3241_v60 = vadd.f32 %v1306_v54, %v4008_v49  ;;  %v3151_v15 = vpop.f32.mrb[26].mxu0 }
 0x14c   :  { %v3402_v16 = vpop.eup %3401  ;;  %v1567_v17 = vadd.f32 1.0, %v3400_v56  ;;  %v4096_v18 = vadd.f32 %v3239_v45, %v4057_v14  ;;  %v3243_v19 = vadd.f32 %v3151_v15, %v4010_v51  ;;  %v1309_v21 = vpop.f32.mrb[27].mxu0 }
 0x14d   :  { %v3404_v22 = vpop.eup %3403  ;;  %3413 = vrcp.f32 %v1569_v58  ;;  %v1570_v24 = vadd.f32 1.0, %v3402_v16  ;;  %v4100_v47 = vadd.f32 %v3241_v60, %v4057_v14  ;;  %v3245_v25 = vadd.f32 %v1309_v21, %v4012_v53 }
 0x14e   :  { %3415 = vrcp.f32 %v1567_v17  ;;  %v1568_v27 = vadd.f32 1.0, %v3404_v22  ;;  %v2732_v49 = vmul.f32 -1.442695, %v4096_v18  ;;  %v4105_v29 = vadd.f32 %v3243_v19, %v4057_v14 }
 0x14f   :  { %3417 = vrcp.f32 %v1570_v24  ;;  %v2730_v30 = vmul.f32 -1.442695, %v4100_v47  ;;  %v4109_v51 = vadd.f32 %v3245_v25, %v4057_v14 }
 0x150   :  { %3419 = vrcp.f32 %v1568_v27  ;;  %v2733_v31 = vmul.f32 -1.442695, %v4105_v29 }
 0x151   :  { %3421 = vpow2.f32 %v2732_v49  ;;  %v2731_v32 = vmul.f32 -1.442695, %v4109_v51  ;;  %v3154_v53 = vpop.f32.mrb[28].mxu0 }
 0x152   :  { %v3406_v33 = vpop.eup %3405  ;;  %3423 = vpow2.f32 %v2730_v30  ;;  %v3247_v34 = vadd.f32 %v3154_v53, %v4014_v55  ;;  %v1322_v35 = vpop.f32.mrb[29].mxu0 }
 0x153   :  { %v3408_v37 = vpop.eup %3407  ;;  %v1573_v38 = vadd.f32 1.0, %v3406_v33  ;;  %3425 = vpow2.f32 %v2733_v31  ;;  %v3249_v42 = vadd.f32 %v1322_v35, %v4016_v57  ;;  %v3155_v44 = vpop.f32.mrb[30].mxu0 }
 0x154   :  { %v3410_v39 = vpop.eup %3409  ;;  %v1571_v48 = vadd.f32 1.0, %v3408_v37  ;;  %3427 = vpow2.f32 %v2731_v32  ;;  %v4116_v43 = vadd.f32 %v3247_v34, %v4057_v14  ;;  %v3251_v50 = vadd.f32 %v3155_v44, %v4018_v59  ;;  %v1325_v52 = vpop.f32.mrb[31].mxu0 }
 0x155   :  { %v3412_v45 = vpop.eup %3411  ;;  %3429 = vrcp.f32 %v1573_v38  ;;  %v1574_v54 = vadd.f32 1.0, %v3410_v39  ;;  %v4120_v55 = vadd.f32 %v3249_v42, %v4057_v14  ;;  %v3253_v56 = vadd.f32 %v1325_v52, %v4020_v61 }
 0x156   :  { %3431 = vrcp.f32 %v1571_v48  ;;  %v1572_v57 = vadd.f32 1.0, %v3412_v45  ;;  %v2736_v58 = vmul.f32 -1.442695, %v4116_v43  ;;  %v4125_v60 = vadd.f32 %v3251_v50, %v4057_v14 }
 0x157   :  { %v3414_v15 = vpop.eup %3413  ;;  %3433 = vrcp.f32 %v1574_v54  ;;  %v2734_v59 = vmul.f32 -1.442695, %v4120_v55  ;;  %v4129_v16 = vadd.f32 %v3253_v56, %v4057_v14 }
 0x158   :  { %v3416_v17 = vpop.eup %3415  ;;  %3435 = vrcp.f32 %v1572_v57  ;;  %v2737_v19 = vmul.f32 -1.442695, %v4125_v60  ;;  %v1665_v25 = vmul.f32 %v3414_v15, %v4060_v20 }
 0x159   :  { %v3418_v21 = vpop.eup %3417  ;;  %3437 = vpow2.f32 %v2736_v58  ;;  %v2735_v61 = vmul.f32 -1.442695, %v4129_v16  ;;  %v3158_v22 = vpop.f32.mrb[32].mxu0  ;;  %v1663_v32 = vmul.f32 %v3416_v17, %v4063_v23 }
 0x15a   :  { %v3420_v24 = vpop.eup %3419  ;;  %v1666_v27 = vmul.f32 %v3418_v21, %v4067_v26  ;;  %3439 = vpow2.f32 %v2734_v59  ;;  %v3254_v49 = vadd.f32 %v3158_v22, %v4022_v62  ;;  %v1338_v30 = vpop.f32.mrb[33].mxu0 }
 0x15b   :  { %v3422_v31 = vpop.eup %3421  ;;  %v1664_v53 = vmul.f32 %v3420_v24, %v4071_v28  ;;  %3441 = vpow2.f32 %v2737_v19  ;;  %v3255_v33 = vadd.f32 %v1338_v30, %v4024_v63  ;;  %v3159_v34 = vpop.f32.mrb[34].mxu0 }
 0x15c   :  { %v3424_v35 = vpop.eup %3423  ;;  %v1696_v37 = vpack.c.bf16 %v1666_v27, %v1665_v25  ;;  %v1577_v38 = vadd.f32 1.0, %v3422_v31  ;;  %3443 = vpow2.f32 %v2735_v61  ;;  %v4140_v20 = vadd.f32 %v3254_v49, %v4057_v14  ;;  %v1341_v26 = vpop.f32.mrb[35].mxu0 }
 0x15d   :  { %v3426_v42 = vpop.eup %3425  ;;  %v1575_v62 = vadd.f32 1.0, %v3424_v35  ;;  %v4143_v44 = vadd.f32 %v3255_v33, %v4057_v14  ;;  %v3256_v23 = vadd.f32 %v3159_v34, %v4026_v0  ;;  %v3257_v28 = vadd.f32 %v1341_v26, %v4028_v1 }
 0x15e   :  { %v3428_v39 = vpop.eup %3427  ;;  %3445 = vrcp.f32 %v1577_v38  ;;  %v1578_v63 = vadd.f32 1.0, %v3426_v42  ;;  %v2740_v48 = vmul.f32 -1.442695, %v4140_v20  ;;  %v1695_v50 = vpack.c.bf16 %v1664_v53, %v1663_v32 }
 0x15f   :  { %v3430_v52 = vpop.eup %3429  ;;  %3447 = vrcp.f32 %v1575_v62  ;;  %v1576_v45 = vadd.f32 1.0, %v3428_v39  ;;  %v2738_v54 = vmul.f32 -1.442695, %v4143_v44  ;;  %v4150_v56 = vadd.f32 %v3256_v23, %v4057_v14 }
 0x160   :  { %v3432_v57 = vpop.eup %3431  ;;  %3449 = vrcp.f32 %v1578_v63  ;;  %v4153_v0 = vadd.f32 %v3257_v28, %v4057_v14  ;;  %3188 = vmatprep.mubr.bf16.mxu1 %v1695_v50  ;;  %v1669_v58 = vmul.f32 %v3430_v52, %v4076_v36 }
 0x161   :  { %v3434_v1 = vpop.eup %3433  ;;  %3451 = vrcp.f32 %v1576_v45  ;;  %v2741_v15 = vmul.f32 -1.442695, %v4150_v56  ;;  %3189 = vmatmul.mubr.bf16.vlgmr.msra.gmra.mrb[32].mxu1 %v1696_v37  ;;  %v3162_v59 = vpop.f32.mrb[36].mxu0  ;;  %v1667_v19 = vmul.f32 %v3432_v57, %v4080_v40 }
 0x162   :  { %v3436_v17 = vpop.eup %3435  ;;  %3453 = vpow2.f32 %v2740_v48  ;;  %v2739_v21 = vmul.f32 -1.442695, %v4153_v0  ;;  %v3258_v61 = vadd.f32 %v3162_v59, %v4030_v2  ;;  %v1354_v22 = vpop.f32.mrb[37].mxu0  ;;  %v1670_v25 = vmul.f32 %v3434_v1, %v4085_v46 }
 0x163   :  { %v3438_v24 = vpop.eup %3437  ;;  %v1668_v27 = vmul.f32 %v3436_v17, %v4089_v41  ;;  %3455 = vpow2.f32 %v2738_v54  ;;  %v3259_v36 = vadd.f32 %v1354_v22, %v4032_v3  ;;  %v3163_v49 = vpop.f32.mrb[38].mxu0 }
 0x164   :  { %v3440_v30 = vpop.eup %3439  ;;  %v1581_v31 = vadd.f32 1.0, %v3438_v24  ;;  %3457 = vpow2.f32 %v2741_v15  ;;  %v4164_v40 = vadd.f32 %v3258_v61, %v4057_v14  ;;  %v3260_v32 = vadd.f32 %v3163_v49, %v4034_v4  ;;  %v1357_v53 = vpop.f32.mrb[39].mxu0 }
 0x165   :  { %v3442_v2 = vpop.eup %3441  ;;  %v1579_v33 = vadd.f32 1.0, %v3440_v30  ;;  %3459 = vpow2.f32 %v2739_v21  ;;  %v4168_v46 = vadd.f32 %v3259_v36, %v4057_v14  ;;  %v3261_v41 = vadd.f32 %v1357_v53, %v4036_v5 }
 0x166   :  { %v3444_v34 = vpop.eup %3443  ;;  %3461 = vrcp.f32 %v1581_v31  ;;  %v1582_v3 = vadd.f32 1.0, %v3442_v2  ;;  %v2744_v35 = vmul.f32 -1.442695, %v4164_v40  ;;  %v4173_v37 = vadd.f32 %v3260_v32, %v4057_v14 }
 0x167   :  { %3463 = vrcp.f32 %v1579_v33  ;;  %v1580_v38 = vadd.f32 1.0, %v3444_v34  ;;  %v2742_v4 = vmul.f32 -1.442695, %v4168_v46  ;;  %v4177_v26 = vadd.f32 %v3261_v41, %v4057_v14 }
 0x168   :  { %v3446_v42 = vpop.eup %3445  ;;  %3465 = vrcp.f32 %v1582_v3  ;;  %v2745_v62 = vmul.f32 -1.442695, %v4173_v37  ;;  %v1697_v5 = vpack.c.bf16 %v1668_v27, %v1667_v19  ;;  %v1698_v23 = vpack.c.bf16 %v1670_v25, %v1669_v58 }
 0x169   :  { %v3448_v28 = vpop.eup %3447  ;;  %3467 = vrcp.f32 %v1580_v38  ;;  %v2743_v39 = vmul.f32 -1.442695, %v4177_v26  ;;  %v3166_v63 = vpop.f32.mrb[40].mxu0  ;;  %v1673_v22 = vmul.f32 %v3446_v42, %v4096_v18 }
 0x16a   :  { %v3450_v48 = vpop.eup %3449  ;;  %3469 = vpow2.f32 %v2744_v35  ;;  %3192 = vmatprep.mubr.bf16.mxu1 %v1697_v5  ;;  %v3262_v50 = vadd.f32 %v3166_v63, %v4038_v6  ;;  %v1370_v52 = vpop.f32.mrb[41].mxu0  ;;  %v1671_v54 = vmul.f32 %v3448_v28, %v4100_v47 }
 0x16b   :  { %v3452_v45 = vpop.eup %3451  ;;  %v1674_v57 = vmul.f32 %v3450_v48, %v4105_v29  ;;  %3471 = vpow2.f32 %v2742_v4  ;;  %3193 = vmatmul.mubr.bf16.gmra.mrb[36].mxu1 %v1698_v23  ;;  %v3263_v1 = vadd.f32 %v1370_v52, %v4040_v7  ;;  %v3167_v58 = vpop.f32.mrb[42].mxu0 }
 0x16c   :  { %v3454_v15 = vpop.eup %3453  ;;  %v1672_v59 = vmul.f32 %v3452_v45, %v4109_v51  ;;  %3473 = vpow2.f32 %v2745_v62  ;;  %v4187_v17 = vadd.f32 %v3262_v50, %v4057_v14  ;;  %v3264_v6 = vadd.f32 %v3167_v58, %v4042_v8  ;;  %v1373_v19 = vpop.f32.mrb[43].mxu0 }
 0x16d   :  { %v3456_v21 = vpop.eup %3455  ;;  %v1585_v61 = vadd.f32 1.0, %v3454_v15  ;;  %3475 = vpow2.f32 %v2743_v39  ;;  %v4191_v47 = vadd.f32 %v3263_v1, %v4057_v14  ;;  %v3265_v29 = vadd.f32 %v1373_v19, %v4044_v9 }
 0x16e   :  { %v3458_v7 = vpop.eup %3457  ;;  %v1583_v24 = vadd.f32 1.0, %v3456_v21  ;;  %v4196_v51 = vadd.f32 %v3264_v6, %v4057_v14  ;;  %v1699_v25 = vpack.c.bf16 %v1672_v59, %v1671_v54  ;;  %v2748_v36 = vmul.f32 -1.442695, %v4187_v17 }
 0x16f   :  { %v3460_v27 = vpop.eup %3459  ;;  %3477 = vrcp.f32 %v1585_v61  ;;  %v1586_v8 = vadd.f32 1.0, %v3458_v7  ;;  %v4200_v49 = vadd.f32 %v3265_v29, %v4057_v14  ;;  %v2746_v9 = vmul.f32 -1.442695, %v4191_v47 }
 0x170   :  { %v3462_v30 = vpop.eup %3461  ;;  %3479 = vrcp.f32 %v1583_v24  ;;  %v1584_v31 = vadd.f32 1.0, %v3460_v27  ;;  %3196 = vmatprep.mubr.bf16.mxu1 %v1699_v25  ;;  %v1700_v18 = vpack.c.bf16 %v1674_v57, %v1673_v22  ;;  %v2749_v53 = vmul.f32 -1.442695, %v4196_v51 }
 0x171   :  { %v3464_v32 = vpop.eup %3463  ;;  %3481 = vrcp.f32 %v1586_v8  ;;  %v3170_v2 = vpop.f32.mrb[44].mxu0  ;;  %v2747_v41 = vmul.f32 -1.442695, %v4200_v49  ;;  %v1677_v38 = vmul.f32 %v3462_v30, %v4116_v43 }
 0x172   :  { %v3466_v33 = vpop.eup %3465  ;;  %3483 = vrcp.f32 %v1584_v31  ;;  %v3266_v34 = vadd.f32 %v3170_v2, %v4046_v10  ;;  %v1386_v3 = vpop.f32.mrb[45].mxu0  ;;  %v1675_v50 = vmul.f32 %v3464_v32, %v4120_v55 }
 0x173   :  { %v3468_v35 = vpop.eup %3467  ;;  %v1678_v4 = vmul.f32 %v3466_v33, %v4125_v60  ;;  %3485 = vpow2.f32 %v2748_v36  ;;  %3197 = vmatmul.mubr.bf16.gmra.mrb[40].mxu1 %v1700_v18  ;;  %v3267_v42 = vadd.f32 %v1386_v3, %v4048_v11  ;;  %v3171_v62 = vpop.f32.mrb[46].mxu0 }
 0x174   :  { %v3470_v5 = vpop.eup %3469  ;;  %v1676_v23 = vmul.f32 %v3468_v35, %v4129_v16  ;;  %3487 = vpow2.f32 %v2746_v9  ;;  %v4211_v28 = vadd.f32 %v3266_v34, %v4057_v14  ;;  %v3268_v10 = vadd.f32 %v3171_v62, %v4050_v12  ;;  %v1389_v39 = vpop.f32.mrb[47].mxu0 }
 0x175   :  { %v3472_v63 = vpop.eup %3471  ;;  %v1589_v48 = vadd.f32 1.0, %v3470_v5  ;;  %3489 = vpow2.f32 %v2749_v53  ;;  %v4215_v43 = vadd.f32 %v3267_v42, %v4057_v14  ;;  %v3269_v60 = vadd.f32 %v1389_v39, %v4052_v13 }
 0x176   :  { %v3474_v11 = vpop.eup %3473  ;;  %v1587_v52 = vadd.f32 1.0, %v3472_v63  ;;  %3491 = vpow2.f32 %v2747_v41  ;;  %v4220_v16 = vadd.f32 %v3268_v10, %v4057_v14  ;;  %v2752_v54 = vmul.f32 -1.442695, %v4211_v28 }
 0x177   :  { %v3476_v45 = vpop.eup %3475  ;;  %3493 = vrcp.f32 %v1589_v48  ;;  %v1590_v12 = vadd.f32 1.0, %v3474_v11  ;;  %v4224_v57 = vadd.f32 %v3269_v60, %v4057_v14  ;;  %v2750_v13 = vmul.f32 -1.442695, %v4215_v43 }
 0x178   :  { %3495 = vrcp.f32 %v1587_v52  ;;  %v1588_v1 = vadd.f32 1.0, %v3476_v45  ;;  %v1701_v58 = vpack.c.bf16 %v1676_v23, %v1675_v50  ;;  %v2753_v55 = vmul.f32 -1.442695, %v4220_v16 }
 0x179   :  { %v3478_v15 = vpop.eup %3477  ;;  %3497 = vrcp.f32 %v1590_v12  ;;  %v1702_v59 = vpack.c.bf16 %v1678_v4, %v1677_v38  ;;  %v2751_v19 = vmul.f32 -1.442695, %v4224_v57 }
 0x17a   :  { %v3480_v6 = vpop.eup %3479  ;;  %3499 = vrcp.f32 %v1588_v1  ;;  %3200 = vmatprep.mubr.bf16.mxu1 %v1701_v58  ;;  %v1681_v61 = vmul.f32 %v3478_v15, %v4140_v20 }
 0x17b   :  { %v3482_v21 = vpop.eup %3481  ;;  %3501 = vpow2.f32 %v2752_v54  ;;  %3201 = vmatmul.mubr.bf16.gmra.mrb[44].mxu1 %v1702_v59  ;;  %v1679_v22 = vmul.f32 %v3480_v6, %v4143_v44 }
 0x17c   :  { %v3484_v14 = vpop.eup %3483  ;;  %v1682_v29 = vmul.f32 %v3482_v21, %v4150_v56  ;;  %3503 = vpow2.f32 %v2750_v13 }
 0x17d   :  { %v3486_v7 = vpop.eup %3485  ;;  %v1680_v24 = vmul.f32 %v3484_v14, %v4153_v0  ;;  %3505 = vpow2.f32 %v2753_v55 }
 0x17e   :  { %v3488_v25 = vpop.eup %3487  ;;  %v1593_v27 = vadd.f32 1.0, %v3486_v7  ;;  %3507 = vpow2.f32 %v2751_v19  ;;  %v1704_v8 = vpack.c.bf16 %v1682_v29, %v1681_v61 }
 0x17f   :  { %v3490_v36 = vpop.eup %3489  ;;  %v1591_v30 = vadd.f32 1.0, %v3488_v25  ;;  %v1703_v31 = vpack.c.bf16 %v1680_v24, %v1679_v22 }
 0x180   :  { %v3492_v9 = vpop.eup %3491  ;;  %3509 = vrcp.f32 %v1593_v27  ;;  %v1594_v18 = vadd.f32 1.0, %v3490_v36 }
 0x181   :  { %v3494_v20 = vpop.eup %3493  ;;  %3511 = vrcp.f32 %v1591_v30  ;;  %v1592_v56 = vadd.f32 1.0, %v3492_v9  ;;  %3204 = vmatprep.mubr.bf16.mxu1 %v1703_v31 }
 0x182   :  { %v3496_v32 = vpop.eup %3495  ;;  %3513 = vrcp.f32 %v1594_v18  ;;  %v1685_v53 = vmul.f32 %v3494_v20, %v4164_v40 }
 0x183   :  { %v3498_v44 = vpop.eup %3497  ;;  %3515 = vrcp.f32 %v1592_v56  ;;  %3205 = vmatmul.mubr.bf16.gmra.mrb[48].mxu1 %v1704_v8  ;;  %v1683_v41 = vmul.f32 %v3496_v32, %v4168_v46 }
 0x184   :  { %v3500_v0 = vpop.eup %3499  ;;  %v1686_v2 = vmul.f32 %v3498_v44, %v4173_v37 }
 0x185   :  { %v3502_v33 = vpop.eup %3501  ;;  %v1684_v34 = vmul.f32 %v3500_v0, %v4177_v26 }
 0x186   :  { %v3504_v3 = vpop.eup %3503  ;;  %v1597_v35 = vadd.f32 1.0, %v3502_v33  ;;  %v1706_v38 = vpack.c.bf16 %v1686_v2, %v1685_v53 }
 0x187   :  { %v3506_v4 = vpop.eup %3505  ;;  %v1595_v42 = vadd.f32 1.0, %v3504_v3  ;;  %v1705_v62 = vpack.c.bf16 %v1684_v34, %v1683_v41 }
 0x188   :  { %v3508_v5 = vpop.eup %3507  ;;  %3517 = vrcp.f32 %v1597_v35  ;;  %v1598_v23 = vadd.f32 1.0, %v3506_v4 }
 0x189   :  { %3519 = vrcp.f32 %v1595_v42  ;;  %v1596_v10 = vadd.f32 1.0, %v3508_v5  ;;  %3208 = vmatprep.mubr.bf16.mxu1 %v1705_v62 }
 0x18a   :  { %v3510_v40 = vpop.eup %3509  ;;  %3521 = vrcp.f32 %v1598_v23 }
 0x18b   :  { %v3512_v37 = vpop.eup %3511  ;;  %3523 = vrcp.f32 %v1596_v10  ;;  %3209 = vmatmul.mubr.bf16.gmra.mrb[52].mxu1 %v1706_v38  ;;  %v1689_v26 = vmul.f32 %v3510_v40, %v4187_v17 }
 0x18c   :  { %v3514_v46 = vpop.eup %3513  ;;  %v1687_v48 = vmul.f32 %v3512_v37, %v4191_v47 }
 0x18d   :  { %v3516_v39 = vpop.eup %3515  ;;  %v1690_v63 = vmul.f32 %v3514_v46, %v4196_v51 }
 0x18e   :  { %v1688_v60 = vmul.f32 %v3516_v39, %v4200_v49  ;;  %v4248_v49 = vld [vmem:[%s4721_s8] ss:$0 sm:$0xff]  ;;  %s3653_s8 = smov 96  }
 0x18f   :  { %v1708_v11 = vpack.c.bf16 %v1690_v63, %v1689_v26 }
 0x190   :  { %v1707_v50 = vpack.c.bf16 %v1688_v60, %v1687_v48 }
 0x192   :  { %v3518_v52 = vpop.eup %3517  ;;  %3212 = vmatprep.mubr.bf16.mxu1 %v1707_v50 }
 0x193   :  { %v3520_v45 = vpop.eup %3519  ;;  %3213 = vmatmul.mubr.bf16.gmra.mrb[56].mxu1 %v1708_v11  ;;  %v1693_v1 = vmul.f32 %v3518_v52, %v4211_v28 }
 0x194   :  { %v3522_v12 = vpop.eup %3521  ;;  %v1691_v17 = vmul.f32 %v3520_v45, %v4215_v43 }
 0x195   :  { %v3524_v54 = vpop.eup %3523  ;;  %v1694_v13 = vmul.f32 %v3522_v12, %v4220_v16 }
 0x196   :  { %v1692_v51 = vmul.f32 %v3524_v54, %v4224_v57 }
 0x197   :  { %v1710_v58 = vpack.c.bf16 %v1694_v13, %v1693_v1 }
 0x198   :  { %v1709_v47 = vpack.c.bf16 %v1692_v51, %v1691_v17 }
 0x19a   :  { %3216 = vmatprep.mubr.bf16.mxu1 %v1709_v47 }
 0x19b   :  { %3217 = vmatmul.mubr.bf16.gmra.mrb[60].mxu1 %v1710_v58 }
 0x234   :  { %v3190_v15 = vpop.f32.mrb[32].mxu1 }
 0x235   :  { %v4251_v55 = vadd.f32 %v3190_v15, %v4248_v49  ;;  %v1815_v28 = vpop.f32.mrb[33].mxu1 }
 0x236   :  { %v4254_v16 = vadd.f32 %v4248_v49, %v1815_v28  ;;  %v3191_v43 = vpop.f32.mrb[34].mxu1 }
 0x237   :  { %v2765_v57 = vmul.f32 -1.442695, %v4251_v55  ;;  %v4258_v59 = vadd.f32 %v3191_v43, %v4248_v49  ;;  %v1818_v6 = vpop.f32.mrb[35].mxu1 }
 0x238   :  { %v2763_v19 = vmul.f32 -1.442695, %v4254_v16  ;;  %v4262_v21 = vadd.f32 %v4248_v49, %v1818_v6 }
 0x239   :  { %3525 = vpow2.f32 %v2765_v57  ;;  %v2766_v14 = vmul.f32 -1.442695, %v4258_v59 }
 0x23a   :  { %3527 = vpow2.f32 %v2763_v19  ;;  %v2764_v61 = vmul.f32 -1.442695, %v4262_v21 }
 0x23b   :  { %3529 = vpow2.f32 %v2766_v14 }
 0x23c   :  { %3531 = vpow2.f32 %v2764_v61 }
 0x23e   :  { %v3194_v29 = vpop.f32.mrb[36].mxu1 }
 0x23f   :  { %v4267_v7 = vadd.f32 %v3194_v29, %v4248_v49  ;;  %v1831_v22 = vpop.f32.mrb[37].mxu1 }
 0x240   :  { %v4270_v24 = vadd.f32 %v4248_v49, %v1831_v22  ;;  %v3195_v25 = vpop.f32.mrb[38].mxu1 }
 0x241   :  { %v2769_v27 = vmul.f32 -1.442695, %v4267_v7  ;;  %v4274_v8 = vadd.f32 %v3195_v25, %v4248_v49  ;;  %v1834_v36 = vpop.f32.mrb[39].mxu1 }
 0x242   :  { %v2767_v30 = vmul.f32 -1.442695, %v4270_v24  ;;  %v4278_v31 = vadd.f32 %v4248_v49, %v1834_v36 }
 0x243   :  { %v3526_v9 = vpop.eup %3525  ;;  %3533 = vpow2.f32 %v2769_v27  ;;  %v2770_v18 = vmul.f32 -1.442695, %v4274_v8 }
 0x244   :  { %v3528_v20 = vpop.eup %3527  ;;  %v2040_v56 = vadd.f32 1.0, %v3526_v9  ;;  %3535 = vpow2.f32 %v2767_v30  ;;  %v2768_v2 = vmul.f32 -1.442695, %v4278_v31 }
 0x245   :  { %v3530_v32 = vpop.eup %3529  ;;  %v2038_v44 = vadd.f32 1.0, %v3528_v20  ;;  %3537 = vpow2.f32 %v2770_v18 }
 0x246   :  { %v3532_v0 = vpop.eup %3531  ;;  %3539 = vrcp.f32 %v2040_v56  ;;  %v2041_v53 = vadd.f32 1.0, %v3530_v32  ;;  %v3198_v33 = vpop.f32.mrb[40].mxu1 }
 0x247   :  { %3541 = vrcp.f32 %v2038_v44  ;;  %v2039_v41 = vadd.f32 1.0, %v3532_v0  ;;  %v4283_v34 = vadd.f32 %v3198_v33, %v4248_v49  ;;  %v1847_v3 = vpop.f32.mrb[41].mxu1 }
 0x248   :  { %3543 = vrcp.f32 %v2041_v53  ;;  %v4286_v35 = vadd.f32 %v4248_v49, %v1847_v3  ;;  %v3199_v38 = vpop.f32.mrb[42].mxu1 }
 0x249   :  { %3545 = vrcp.f32 %v2039_v41  ;;  %v2773_v4 = vmul.f32 -1.442695, %v4283_v34  ;;  %v4290_v42 = vadd.f32 %v3199_v38, %v4248_v49  ;;  %v1850_v62 = vpop.f32.mrb[43].mxu1 }
 0x24a   :  { %3547 = vpow2.f32 %v2768_v2  ;;  %v2771_v5 = vmul.f32 -1.442695, %v4286_v35  ;;  %v4294_v23 = vadd.f32 %v4248_v49, %v1850_v62 }
 0x24b   :  { %3549 = vpow2.f32 %v2773_v4  ;;  %v2774_v10 = vmul.f32 -1.442695, %v4290_v42 }
 0x24c   :  { %3551 = vpow2.f32 %v2771_v5  ;;  %v2772_v40 = vmul.f32 -1.442695, %v4294_v23 }
 0x24d   :  { %v3534_v37 = vpop.eup %3533  ;;  %3553 = vpow2.f32 %v2774_v10 }
 0x24e   :  { %v3536_v46 = vpop.eup %3535  ;;  %v2044_v39 = vadd.f32 1.0, %v3534_v37  ;;  %3555 = vpow2.f32 %v2772_v40  ;;  %v3202_v26 = vpop.f32.mrb[44].mxu1 }
 0x24f   :  { %v3538_v63 = vpop.eup %3537  ;;  %v2042_v48 = vadd.f32 1.0, %v3536_v46  ;;  %v4299_v60 = vadd.f32 %v3202_v26, %v4248_v49  ;;  %v1863_v11 = vpop.f32.mrb[45].mxu1 }
 0x250   :  { %v3540_v50 = vpop.eup %3539  ;;  %3557 = vrcp.f32 %v2044_v39  ;;  %v2045_v52 = vadd.f32 1.0, %v3538_v63  ;;  %v4302_v45 = vadd.f32 %v4248_v49, %v1863_v11  ;;  %v3203_v12 = vpop.f32.mrb[46].mxu1 }
 0x251   :  { %v3542_v54 = vpop.eup %3541  ;;  %3559 = vrcp.f32 %v2042_v48  ;;  %v2777_v1 = vmul.f32 -1.442695, %v4299_v60  ;;  %v4306_v13 = vadd.f32 %v3203_v12, %v4248_v49  ;;  %v1866_v17 = vpop.f32.mrb[47].mxu1  ;;  %2202 = vrot.lane.b32.xlu1 %v3540_v50, %s3653_s8  ;;  %v4310_v51 = vmul.f32 %v3540_v50, %v4251_v55 }
 0x252   :  { %v3544_v58 = vpop.eup %3543  ;;  %3561 = vrcp.f32 %v2045_v52  ;;  %v2775_v47 = vmul.f32 -1.442695, %v4302_v45  ;;  %v4314_v15 = vadd.f32 %v4248_v49, %v1866_v17  ;;  %2198 = vrot.lane.b32.xlu0 %v3542_v54, %s3653_s8  ;;  %v4318_v28 = vmul.f32 %v3542_v54, %v4254_v16 }
 0x253   :  { %v3546_v43 = vpop.eup %3545  ;;  %3563 = vpow2.f32 %v2777_v1  ;;  %v2778_v57 = vmul.f32 -1.442695, %v4306_v13  ;;  %v4322_v6 = vmul.f32 %v3544_v58, %v4258_v59 }
 0x254   :  { %v3548_v55 = vpop.eup %3547  ;;  %3565 = vpow2.f32 %v2775_v47  ;;  %v2776_v19 = vmul.f32 -1.442695, %v4314_v15  ;;  %v4326_v14 = vmul.f32 %v3546_v43, %v4262_v21 }
 0x255   :  { %v3550_v61 = vpop.eup %3549  ;;  %v2043_v29 = vadd.f32 1.0, %v3548_v55  ;;  %3567 = vpow2.f32 %v2778_v57  ;;  %2204 = vrot.lane.b32.xlu1 %v3544_v58, %s3653_s8 }
 0x256   :  { %v3552_v16 = vpop.eup %3551  ;;  %v2048_v22 = vadd.f32 1.0, %v3550_v61  ;;  %3569 = vpow2.f32 %v2776_v19  ;;  %v3206_v25 = vpop.f32.mrb[48].mxu1  ;;  %2200 = vrot.lane.b32.xlu0 %v3546_v43, %s3653_s8 }
 0x257   :  { %v3554_v59 = vpop.eup %3553  ;;  %3571 = vrcp.f32 %v2043_v29  ;;  %v2046_v27 = vadd.f32 1.0, %v3552_v16  ;;  %v4331_v36 = vadd.f32 %v3206_v25, %v4248_v49  ;;  %v1879_v30 = vpop.f32.mrb[49].mxu1 }
 0x258   :  { %v3556_v21 = vpop.eup %3555  ;;  %3573 = vrcp.f32 %v2048_v22  ;;  %v2049_v9 = vadd.f32 1.0, %v3554_v59  ;;  %v4334_v18 = vadd.f32 %v4248_v49, %v1879_v30  ;;  %v3207_v20 = vpop.f32.mrb[50].mxu1 }
 0x259   :  { %3575 = vrcp.f32 %v2046_v27  ;;  %v2047_v56 = vadd.f32 1.0, %v3556_v21  ;;  %v2781_v32 = vmul.f32 -1.442695, %v4331_v36  ;;  %v4338_v44 = vadd.f32 %v3207_v20, %v4248_v49  ;;  %v1882_v0 = vpop.f32.mrb[51].mxu1 }
 0x25a   :  { %v3558_v53 = vpop.eup %3557  ;;  %3577 = vrcp.f32 %v2049_v9  ;;  %v2779_v2 = vmul.f32 -1.442695, %v4334_v18  ;;  %v4342_v33 = vadd.f32 %v4248_v49, %v1882_v0 }
 0x25b   :  { %v3560_v41 = vpop.eup %3559  ;;  %3579 = vrcp.f32 %v2047_v56  ;;  %v2782_v3 = vmul.f32 -1.442695, %v4338_v44  ;;  %2210 = vrot.lane.b32.xlu0 %v3558_v53, %s3653_s8  ;;  %v4347_v38 = vmul.f32 %v3558_v53, %v4267_v7 }
 0x25c   :  { %v3562_v4 = vpop.eup %3561  ;;  %3581 = vpow2.f32 %v2781_v32  ;;  %v2780_v62 = vmul.f32 -1.442695, %v4342_v33  ;;  %v4351_v5 = vmul.f32 %v3560_v41, %v4270_v24 }
 0x25d   :  { %v3564_v10 = vpop.eup %3563  ;;  %3583 = vpow2.f32 %v2779_v2  ;;  %2212 = vrot.lane.b32.xlu1 %v3562_v4, %s3653_s8  ;;  %v4355_v40 = vmul.f32 %v3562_v4, %v4274_v8 }
 0x25e   :  { %v3566_v37 = vpop.eup %3565  ;;  %v2052_v46 = vadd.f32 1.0, %v3564_v10  ;;  %3585 = vpow2.f32 %v2782_v3  ;;  %v3210_v39 = vpop.f32.mrb[52].mxu1 }
 0x25f   :  { %v3568_v7 = vpop.eup %3567  ;;  %v2050_v26 = vadd.f32 1.0, %v3566_v37  ;;  %3587 = vpow2.f32 %v2780_v62  ;;  %v4358_v63 = vadd.f32 %v3210_v39, %v4248_v49  ;;  %v1895_v48 = vpop.f32.mrb[53].mxu1  ;;  %2206 = vrot.lane.b32.xlu0 %v3560_v41, %s3653_s8 }
 0x260   :  { %v3570_v24 = vpop.eup %3569  ;;  %3589 = vrcp.f32 %v2052_v46  ;;  %v2053_v11 = vadd.f32 1.0, %v3568_v7  ;;  %v4362_v50 = vadd.f32 %v4248_v49, %v1895_v48  ;;  %v3211_v8 = vpop.f32.mrb[54].mxu1 }
 0x261   :  { %v3572_v52 = vpop.eup %3571  ;;  %3591 = vrcp.f32 %v2050_v26  ;;  %v2051_v12 = vadd.f32 1.0, %v3570_v24  ;;  %v2785_v54 = vmul.f32 -1.442695, %v4358_v63  ;;  %v4366_v1 = vadd.f32 %v3211_v8, %v4248_v49  ;;  %v1898_v17 = vpop.f32.mrb[55].mxu1 }
 0x262   :  { %v3574_v58 = vpop.eup %3573  ;;  %3593 = vrcp.f32 %v2053_v11  ;;  %v2783_v47 = vmul.f32 -1.442695, %v4362_v50  ;;  %v4370_v43 = vadd.f32 %v4248_v49, %v1898_v17  ;;  %2208 = vrot.lane.b32.xlu1 %v3572_v52, %s3653_s8  ;;  %v4374_v57 = vmul.f32 %v3572_v52, %v4278_v31 }
 0x263   :  { %v3576_v55 = vpop.eup %3575  ;;  %3595 = vrcp.f32 %v2051_v12  ;;  %v2786_v19 = vmul.f32 -1.442695, %v4366_v1  ;;  %2218 = vrot.lane.b32.xlu0 %v3574_v58, %s3653_s8  ;;  %v4379_v61 = vmul.f32 %v3574_v58, %v4283_v34 }
 0x264   :  { %v3578_v29 = vpop.eup %3577  ;;  %3597 = vpow2.f32 %v2785_v54  ;;  %v2784_v16 = vmul.f32 -1.442695, %v4370_v43  ;;  %v4383_v22 = vmul.f32 %v3576_v55, %v4286_v35 }
 0x265   :  { %v3580_v25 = vpop.eup %3579  ;;  %3599 = vpow2.f32 %v2783_v47  ;;  %v4386_v31 = vmul.f32 %v3578_v29, %v4290_v42 }
 0x266   :  { %v3582_v59 = vpop.eup %3581  ;;  %3601 = vpow2.f32 %v2786_v19  ;;  %2220 = vrot.lane.b32.xlu1 %v3578_v29, %s3653_s8  ;;  %v3214_v27 = vpop.f32.mrb[56].mxu1  ;;  %v4390_v34 = vmul.f32 %v3580_v25, %v4294_v23 }
 0x267   :  { %v3584_v30 = vpop.eup %3583  ;;  %v2056_v21 = vadd.f32 1.0, %v3582_v59  ;;  %3603 = vpow2.f32 %v2784_v16  ;;  %v4393_v9 = vadd.f32 %v3214_v27, %v4248_v49  ;;  %v1911_v35 = vpop.f32.mrb[57].mxu1  ;;  %2214 = vrot.lane.b32.xlu0 %v3576_v55, %s3653_s8 }
 0x268   :  { %v3586_v20 = vpop.eup %3585  ;;  %v2054_v42 = vadd.f32 1.0, %v3584_v30  ;;  %v4397_v56 = vadd.f32 %v4248_v49, %v1911_v35  ;;  %v3215_v32 = vpop.f32.mrb[58].mxu1 }
 0x269   :  { %v3588_v0 = vpop.eup %3587  ;;  %3605 = vrcp.f32 %v2056_v21  ;;  %v2057_v53 = vadd.f32 1.0, %v3586_v20  ;;  %v2789_v23 = vmul.f32 -1.442695, %v4393_v9  ;;  %v4401_v2 = vadd.f32 %v3215_v32, %v4248_v49  ;;  %v1914_v41 = vpop.f32.mrb[59].mxu1 }
 0x26a   :  { %v3590_v3 = vpop.eup %3589  ;;  %3607 = vrcp.f32 %v2054_v42  ;;  %v2055_v4 = vadd.f32 1.0, %v3588_v0  ;;  %v2787_v62 = vmul.f32 -1.442695, %v4397_v56  ;;  %v4405_v10 = vadd.f32 %v4248_v49, %v1914_v41  ;;  %2216 = vrot.lane.b32.xlu1 %v3580_v25, %s3653_s8 }
 0x26b   :  { %v3592_v37 = vpop.eup %3591  ;;  %3609 = vrcp.f32 %v2057_v53  ;;  %v2790_v46 = vmul.f32 -1.442695, %v4401_v2  ;;  %2226 = vrot.lane.b32.xlu0 %v3590_v3, %s3653_s8  ;;  %v4411_v39 = vmul.f32 %v3590_v3, %v4299_v60 }
 0x26c   :  { %v3594_v7 = vpop.eup %3593  ;;  %3611 = vrcp.f32 %v2055_v4  ;;  %v2788_v26 = vmul.f32 -1.442695, %v4405_v10  ;;  %v4415_v48 = vmul.f32 %v3592_v37, %v4302_v45 }
 0x26d   :  { %v3596_v24 = vpop.eup %3595  ;;  %3613 = vpow2.f32 %v2789_v23  ;;  %v4418_v11 = vmul.f32 %v3594_v7, %v4306_v13 }
 0x26e   :  { %v3598_v8 = vpop.eup %3597  ;;  %3615 = vpow2.f32 %v2787_v62  ;;  %2228 = vrot.lane.b32.xlu1 %v3594_v7, %s3653_s8  ;;  %v3218_v52 = vpop.f32.mrb[60].mxu1  ;;  %v4422_v60 = vmul.f32 %v3596_v24, %v4314_v15 }
 0x26f   :  { %v3600_v12 = vpop.eup %3599  ;;  %v2060_v54 = vadd.f32 1.0, %v3598_v8  ;;  %3617 = vpow2.f32 %v2790_v46  ;;  %v4425_v17 = vadd.f32 %v3218_v52, %v4248_v49  ;;  %v1927_v45 = vpop.f32.mrb[61].mxu1  ;;  %2222 = vrot.lane.b32.xlu0 %v3592_v37, %s3653_s8 }
 0x270   :  { %v3602_v58 = vpop.eup %3601  ;;  %v2058_v13 = vadd.f32 1.0, %v3600_v12  ;;  %3619 = vpow2.f32 %v2788_v26  ;;  %v4429_v47 = vadd.f32 %v4248_v49, %v1927_v45  ;;  %v3219_v55 = vpop.f32.mrb[62].mxu1 }
 0x271   :  { %v3604_v19 = vpop.eup %3603  ;;  %3621 = vrcp.f32 %v2060_v54  ;;  %v2061_v15 = vadd.f32 1.0, %v3602_v58  ;;  %v2793_v29 = vmul.f32 -1.442695, %v4425_v17  ;;  %v4433_v16 = vadd.f32 %v3219_v55, %v4248_v49  ;;  %v1930_v25 = vpop.f32.mrb[63].mxu1 }
 0x272   :  { %3623 = vrcp.f32 %v2058_v13  ;;  %v2059_v59 = vadd.f32 1.0, %v3604_v19  ;;  %v2791_v27 = vmul.f32 -1.442695, %v4429_v47  ;;  %v4437_v30 = vadd.f32 %v4248_v49, %v1930_v25  ;;  %2224 = vrot.lane.b32.xlu1 %v3596_v24, %s3653_s8 }
 0x273   :  { %v3606_v21 = vpop.eup %3605  ;;  %3625 = vrcp.f32 %v2061_v15  ;;  %v2794_v35 = vmul.f32 -1.442695, %v4433_v16 }
 0x274   :  { %v3608_v20 = vpop.eup %3607  ;;  %3627 = vrcp.f32 %v2059_v59  ;;  %v2792_v42 = vmul.f32 -1.442695, %v4437_v30  ;;  %2234 = vrot.lane.b32.xlu0 %v3606_v21, %s3653_s8  ;;  %v4444_v32 = vmul.f32 %v3606_v21, %v4331_v36 }
 0x275   :  { %v3610_v0 = vpop.eup %3609  ;;  %3629 = vpow2.f32 %v2793_v29  ;;  %v4447_v49 = vmul.f32 %v3608_v20, %v4334_v18 }
 0x276   :  { %v3612_v53 = vpop.eup %3611  ;;  %3631 = vpow2.f32 %v2791_v27  ;;  %2236 = vrot.lane.b32.xlu1 %v3610_v0, %s3653_s8  ;;  %v4451_v23 = vmul.f32 %v3610_v0, %v4338_v44 }
 0x277   :  { %v3614_v41 = vpop.eup %3613  ;;  %3633 = vpow2.f32 %v2794_v35  ;;  %v4454_v3 = vmul.f32 %v3612_v53, %v4342_v33 }
 0x278   :  { %v3616_v4 = vpop.eup %3615  ;;  %v2064_v36 = vadd.f32 1.0, %v3614_v41  ;;  %3635 = vpow2.f32 %v2792_v42  ;;  %2230 = vrot.lane.b32.xlu0 %v3608_v20, %s3653_s8 }
 0x279   :  { %v3618_v62 = vpop.eup %3617  ;;  %v2062_v18 = vadd.f32 1.0, %v3616_v4 }
 0x27a   :  { %v3620_v37 = vpop.eup %3619  ;;  %3637 = vrcp.f32 %v2064_v36  ;;  %v2065_v46 = vadd.f32 1.0, %v3618_v62  ;;  %2232 = vrot.lane.b32.xlu1 %v3612_v53, %s3653_s8 }
 0x27b   :  { %v3622_v7 = vpop.eup %3621  ;;  %3639 = vrcp.f32 %v2062_v18  ;;  %v2063_v44 = vadd.f32 1.0, %v3620_v37 }
 0x27c   :  { %v3624_v26 = vpop.eup %3623  ;;  %3641 = vrcp.f32 %v2065_v46  ;;  %2242 = vrot.lane.b32.xlu0 %v3622_v7, %s3653_s8  ;;  %v4460_v33 = vmul.f32 %v3622_v7, %v4358_v63 }
 0x27d   :  { %v3626_v24 = vpop.eup %3625  ;;  %3643 = vrcp.f32 %v2063_v44  ;;  %v4463_v8 = vmul.f32 %v3624_v26, %v4362_v50 }
 0x27e   :  { %v3628_v52 = vpop.eup %3627  ;;  %2244 = vrot.lane.b32.xlu1 %v3626_v24, %s3653_s8  ;;  %v4467_v12 = vmul.f32 %v3626_v24, %v4366_v1 }
 0x27f   :  { %v3630_v54 = vpop.eup %3629  ;;  %v4470_v45 = vmul.f32 %v3628_v52, %v4370_v43 }
 0x280   :  { %v3632_v58 = vpop.eup %3631  ;;  %v2068_v13 = vadd.f32 1.0, %v3630_v54  ;;  %2238 = vrot.lane.b32.xlu0 %v3624_v26, %s3653_s8 }
 0x281   :  { %v3634_v63 = vpop.eup %3633  ;;  %v2066_v55 = vadd.f32 1.0, %v3632_v58 }
 0x282   :  { %v3636_v19 = vpop.eup %3635  ;;  %3645 = vrcp.f32 %v2068_v13  ;;  %v2069_v50 = vadd.f32 1.0, %v3634_v63  ;;  %2240 = vrot.lane.b32.xlu1 %v3628_v52, %s3653_s8 }
 0x283   :  { %3647 = vrcp.f32 %v2066_v55  ;;  %v2067_v15 = vadd.f32 1.0, %v3636_v19  ;;  %v2924_v19 = vld [vmem:[%s4722_s4 + $0x10] sm:$0xff]  }
 0x284   :  { %v3638_v29 = vpop.eup %3637  ;;  %3649 = vrcp.f32 %v2069_v50 }
 0x285   :  { %v3640_v1 = vpop.eup %3639  ;;  %3651 = vrcp.f32 %v2067_v15  ;;  %2250 = vrot.lane.b32.xlu0 %v3638_v29, %s3653_s8  ;;  %v4476_v43 = vmul.f32 %v3638_v29, %v4393_v9 }
 0x286   :  { %v3642_v25 = vpop.eup %3641  ;;  %v4479_v59 = vmul.f32 %v3640_v1, %v4397_v56 }
 0x287   :  { %v3644_v27 = vpop.eup %3643  ;;  %2252 = vrot.lane.b32.xlu1 %v3642_v25, %s3653_s8  ;;  %v4483_v21 = vmul.f32 %v3642_v25, %v4401_v2 }
 0x288   :  { %v4486_v35 = vmul.f32 %v3644_v27, %v4405_v10 }
 0x289   :  { %2246 = vrot.lane.b32.xlu0 %v3640_v1, %s3653_s8 }
 0x28b   :  { %2248 = vrot.lane.b32.xlu1 %v3644_v27, %s3653_s8  ;;  %v2869_v27 = vunpack.c.l.bf16 %v2924_v19 }
 0x28c   :  { %v3646_v20 = vpop.eup %3645 }
 0x28d   :  { %v3648_v9 = vpop.eup %3647  ;;  %v4491_v42 = vmul.f32 %v3646_v20, %v4425_v17  ;;  %v2923_v17 = vld [vmem:[%s4722_s4 + $0x8] sm:$0xff]  }
 0x28e   :  { %v3650_v56 = vpop.eup %3649  ;;  %2254 = vrot.lane.b32.xlu0 %v3648_v9, %s3653_s8  ;;  %v4495_v0 = vmul.f32 %v3648_v9, %v4429_v47  ;;  %v2860_v47 = vld [vmem:[%s4722_s4] sm:$0xff]   ;;  %v2865_v41 = vunpack.c.l.bf16 %v2923_v17  ;;  %v2866_v37 = vunpack.c.h.bf16 %v2923_v17  ;;  %v2927_v9 = vld [vmem:[%s4722_s4 + $0x28] sm:$0xff]   ;;  %v2870_v17 = vunpack.c.h.bf16 %v2924_v19 }
 0x28f   :  { %v3652_v2 = vpop.eup %3651  ;;  %v4498_v53 = vmul.f32 %v3650_v56, %v4433_v16  ;;  %v2861_v4 = vunpack.c.l.bf16 %v2860_v47  ;;  %v2862_v44 = vunpack.c.h.bf16 %v2860_v47 }
 0x290   :  { %2256 = vrot.lane.b32.xlu1 %v3652_v2, %s3653_s8  ;;  %v4502_v10 = vmul.f32 %v3652_v2, %v4437_v30 }
 0x292   :  { %2258 = vrot.lane.b32.xlu0 %v3646_v20, %s3653_s8 }
 0x294   :  { %2260 = vrot.lane.b32.xlu1 %v3650_v56, %s3653_s8 }
 0x2c3   :  { %v2203_v16 = vpop.permute.xlu1 %2202 }
 0x2c4   :  { %v2296_v36 = vmul.f32 %v2203_v16, %v4310_v51  ;;  %v2199_v62 = vpop.permute.xlu0 %2198  ;;  %v2925_v51 = vld [vmem:[%s4722_s4 + $0x18] sm:$0xff]  }
 0x2c5   :  { %v2294_v30 = vmul.f32 %v2199_v62, %v4318_v28  ;;  %v2873_v63 = vunpack.c.l.bf16 %v2925_v51  ;;  %v2874_v15 = vunpack.c.h.bf16 %v2925_v51  ;;  %v2926_v62 = vld [vmem:[%s4722_s4 + $0x20] sm:$0xff]  }
 0x2c6   :  { %v2392_v18 = vmul.f32 %v2865_v41, %v2296_v36  ;;  %v2878_v51 = vunpack.c.h.bf16 %v2926_v62 }
 0x2c7   :  { %v2390_v46 = vmul.f32 %v2861_v4, %v2294_v30  ;;  %v2205_v7 = vpop.permute.xlu1 %2204 }
 0x2c8   :  { %v2829_v26 = vpack.c.bf16 %v2392_v18, %v2392_v18  ;;  %v2297_v24 = vmul.f32 %v2205_v7, %v4322_v6  ;;  %v2201_v52 = vpop.permute.xlu0 %2200  ;;  %v2877_v7 = vunpack.c.l.bf16 %v2926_v62 }
 0x2c9   :  { %v2827_v54 = vpack.c.bf16 %v2390_v46, %v2390_v46  ;;  %v2295_v58 = vmul.f32 %v2201_v52, %v4326_v14  ;;  %v2929_v52 = vld [vmem:[%s4722_s4 + $0x38] sm:$0xff]  }
 0x2ca   :  { %2553 = vst.msk [vmem:[%s4723_s9 + $0x8] sm:$0xf] %vm2550_vm2, %v2829_v26  ;;  %v2393_v28 = vmul.f32 %v2866_v37, %v2297_v24  ;;  %v2882_v37 = vunpack.c.h.bf16 %v2927_v9 }
 0x2cb   :  { %2551 = vst.msk [vmem:[%s4723_s9] sm:$0xf] %vm2550_vm2, %v2827_v54  ;;  %v2391_v6 = vmul.f32 %v2862_v44, %v2295_v58 }
 0x2cc   :  { %v2830_v13 = vpack.c.bf16 %v2393_v28, %v2393_v28 }
 0x2cd   :  { %v2828_v55 = vpack.c.bf16 %v2391_v6, %v2391_v6  ;;  %v2211_v14 = vpop.permute.xlu0 %2210  ;;  %v2889_v6 = vunpack.c.l.bf16 %v2929_v52 }
 0x2ce   :  { %2554 = vst.msk [vmem:[%s4723_s9 + $0xc] sm:$0xf] %vm2550_vm2, %v2830_v13  ;;  %v2300_v50 = vmul.f32 %v2211_v14, %v4347_v38 }
 0x2cf   :  { %2552 = vst.msk [vmem:[%s4723_s9 + $0x4] sm:$0xf] %vm2550_vm2, %v2828_v55  ;;  %v2213_v29 = vpop.permute.xlu1 %2212 }
 0x2d0   :  { %v2396_v1 = vmul.f32 %v2873_v63, %v2300_v50  ;;  %v2301_v25 = vmul.f32 %v2213_v29, %v4355_v40  ;;  %v2881_v40 = vunpack.c.l.bf16 %v2927_v9 }
 0x2d1   :  { %v2207_v20 = vpop.permute.xlu0 %2206 }
 0x2d2   :  { %v2833_v56 = vpack.c.bf16 %v2396_v1, %v2396_v1  ;;  %v2397_v2 = vmul.f32 %v2874_v15, %v2301_v25  ;;  %v2298_v38 = vmul.f32 %v2207_v20, %v4351_v5  ;;  %v2890_v15 = vunpack.c.h.bf16 %v2929_v52 }
 0x2d4   :  { %2557 = vst.msk [vmem:[%s4723_s9 + $0x18] sm:$0xf] %vm2550_vm2, %v2833_v56  ;;  %v2834_v47 = vpack.c.bf16 %v2397_v2, %v2397_v2  ;;  %v2394_v41 = vmul.f32 %v2869_v27, %v2298_v38  ;;  %v2209_v16 = vpop.permute.xlu1 %2208  ;;  %v2931_v56 = vld [vmem:[%s4722_s4 + $0x48] sm:$0xff]  }
 0x2d5   :  { %v2299_v4 = vmul.f32 %v2209_v16, %v4374_v57  ;;  %v2219_v36 = vpop.permute.xlu0 %2218 }
 0x2d6   :  { %2558 = vst.msk [vmem:[%s4723_s9 + $0x1c] sm:$0xf] %vm2550_vm2, %v2834_v47  ;;  %v2831_v5 = vpack.c.bf16 %v2394_v41, %v2394_v41  ;;  %v2304_v30 = vmul.f32 %v2219_v36, %v4379_v61  ;;  %v2897_v41 = vunpack.c.l.bf16 %v2931_v56 }
 0x2d7   :  { %v2395_v18 = vmul.f32 %v2870_v17, %v2299_v4  ;;  %v2930_v4 = vld [vmem:[%s4722_s4 + $0x40] sm:$0xff]  }
 0x2d8   :  { %2555 = vst.msk [vmem:[%s4723_s9 + $0x10] sm:$0xf] %vm2550_vm2, %v2831_v5  ;;  %v2400_v57 = vmul.f32 %v2881_v40, %v2304_v30  ;;  %v2221_v46 = vpop.permute.xlu1 %2220  ;;  %v2898_v5 = vunpack.c.h.bf16 %v2931_v56  ;;  %v2934_v56 = vld [vmem:[%s4722_s4 + $0x60] sm:$0xff]  }
 0x2d9   :  { %v2832_v44 = vpack.c.bf16 %v2395_v18, %v2395_v18  ;;  %v2305_v26 = vmul.f32 %v2221_v46, %v4386_v31  ;;  %v2215_v24 = vpop.permute.xlu0 %2214 }
 0x2da   :  { %v2837_v54 = vpack.c.bf16 %v2400_v57, %v2400_v57  ;;  %v2302_v61 = vmul.f32 %v2215_v24, %v4383_v22  ;;  %v2928_v22 = vld [vmem:[%s4722_s4 + $0x30] sm:$0xff]   ;;  %v2893_v57 = vunpack.c.l.bf16 %v2930_v4  ;;  %v2894_v24 = vunpack.c.h.bf16 %v2930_v4 }
 0x2db   :  { %2556 = vst.msk [vmem:[%s4723_s9 + $0x14] sm:$0xf] %vm2550_vm2, %v2832_v44  ;;  %v2401_v58 = vmul.f32 %v2882_v37, %v2305_v26  ;;  %v2885_v1 = vunpack.c.l.bf16 %v2928_v22  ;;  %v2886_v38 = vunpack.c.h.bf16 %v2928_v22  ;;  %v2910_v4 = vunpack.c.h.bf16 %v2934_v56 }
 0x2dc   :  { %2561 = vst.msk [vmem:[%s4723_s9 + $0x28] sm:$0xf] %vm2550_vm2, %v2837_v54  ;;  %v2398_v31 = vmul.f32 %v2877_v7, %v2302_v61  ;;  %v2217_v28 = vpop.permute.xlu1 %2216  ;;  %v2933_v7 = vld [vmem:[%s4722_s4 + $0x58] sm:$0xff]  }
 0x2dd   :  { %v2838_v13 = vpack.c.bf16 %v2401_v58, %v2401_v58  ;;  %v2303_v63 = vmul.f32 %v2217_v28, %v4390_v34  ;;  %v2227_v55 = vpop.permute.xlu0 %2226  ;;  %v2905_v58 = vunpack.c.l.bf16 %v2933_v7 }
 0x2de   :  { %v2835_v14 = vpack.c.bf16 %v2398_v31, %v2398_v31  ;;  %v2308_v19 = vmul.f32 %v2227_v55, %v4411_v39  ;;  %v2932_v31 = vld [vmem:[%s4722_s4 + $0x50] sm:$0xff]  }
 0x2df   :  { %2562 = vst.msk [vmem:[%s4723_s9 + $0x2c] sm:$0xf] %vm2550_vm2, %v2838_v13  ;;  %v2399_v50 = vmul.f32 %v2878_v51, %v2303_v63  ;;  %v2906_v13 = vunpack.c.h.bf16 %v2933_v7 }
 0x2e0   :  { %2559 = vst.msk [vmem:[%s4723_s9 + $0x20] sm:$0xf] %vm2550_vm2, %v2835_v14  ;;  %v2404_v34 = vmul.f32 %v2889_v6, %v2308_v19  ;;  %v2229_v29 = vpop.permute.xlu1 %2228  ;;  %v2901_v14 = vunpack.c.l.bf16 %v2932_v31 }
 0x2e1   :  { %v2836_v25 = vpack.c.bf16 %v2399_v50, %v2399_v50  ;;  %v2309_v27 = vmul.f32 %v2229_v29, %v4418_v11  ;;  %v2223_v20 = vpop.permute.xlu0 %2222  ;;  %v2935_v29 = vld [vmem:[%s4722_s4 + $0x68] sm:$0xff]  }
 0x2e2   :  { %v2841_v39 = vpack.c.bf16 %v2404_v34, %v2404_v34  ;;  %v2306_v9 = vmul.f32 %v2223_v20, %v4415_v48  ;;  %v2902_v34 = vunpack.c.h.bf16 %v2932_v31  ;;  %v2913_v20 = vunpack.c.l.bf16 %v2935_v29 }
 0x2e3   :  { %2560 = vst.msk [vmem:[%s4723_s9 + $0x24] sm:$0xf] %vm2550_vm2, %v2836_v25  ;;  %v2405_v2 = vmul.f32 %v2890_v15, %v2309_v27 }
 0x2e4   :  { %2565 = vst.msk [vmem:[%s4723_s9 + $0x38] sm:$0xf] %vm2550_vm2, %v2841_v39  ;;  %v2402_v11 = vmul.f32 %v2885_v1, %v2306_v9  ;;  %v2225_v17 = vpop.permute.xlu1 %2224 }
 0x2e5   :  { %v2842_v47 = vpack.c.bf16 %v2405_v2, %v2405_v2  ;;  %v2307_v48 = vmul.f32 %v2225_v17, %v4422_v60 }
 0x2e6   :  { %v2839_v16 = vpack.c.bf16 %v2402_v11, %v2402_v11  ;;  %v2235_v40 = vpop.permute.xlu0 %2234 }
 0x2e7   :  { %2566 = vst.msk [vmem:[%s4723_s9 + $0x3c] sm:$0xf] %vm2550_vm2, %v2842_v47  ;;  %v2403_v36 = vmul.f32 %v2886_v38, %v2307_v48  ;;  %v2312_v62 = vmul.f32 %v2235_v40, %v4444_v32  ;;  %v2914_v38 = vunpack.c.h.bf16 %v2935_v29  ;;  %v2909_v48 = vunpack.c.l.bf16 %v2934_v56 }
 0x2e8   :  { %2563 = vst.msk [vmem:[%s4723_s9 + $0x30] sm:$0xf] %vm2550_vm2, %v2839_v16  ;;  %v2237_v60 = vpop.permute.xlu1 %2236 }
 0x2e9   :  { %v2840_v30 = vpack.c.bf16 %v2403_v36, %v2403_v36  ;;  %v2408_v18 = vmul.f32 %v2897_v41, %v2312_v62  ;;  %v2313_v37 = vmul.f32 %v2237_v60, %v4451_v23  ;;  %v2936_v36 = vld [vmem:[%s4722_s4 + $0x70] sm:$0xff]  }
 0x2ea   :  { %v2231_v46 = vpop.permute.xlu0 %2230  ;;  %v2918_v7 = vunpack.c.h.bf16 %v2936_v36 }
 0x2eb   :  { %2564 = vst.msk [vmem:[%s4723_s9 + $0x34] sm:$0xf] %vm2550_vm2, %v2840_v30  ;;  %v2845_v32 = vpack.c.bf16 %v2408_v18, %v2408_v18  ;;  %v2409_v44 = vmul.f32 %v2898_v5, %v2313_v37  ;;  %v2310_v26 = vmul.f32 %v2231_v46, %v4447_v49  ;;  %v2917_v30 = vunpack.c.l.bf16 %v2936_v36 }
 0x2ec   :  { %v2233_v52 = vpop.permute.xlu1 %2232 }
 0x2ed   :  { %2569 = vst.msk [vmem:[%s4723_s9 + $0x48] sm:$0xf] %vm2550_vm2, %v2845_v32  ;;  %v2846_v23 = vpack.c.bf16 %v2409_v44, %v2409_v44  ;;  %v2406_v54 = vmul.f32 %v2893_v57, %v2310_v26  ;;  %v2311_v61 = vmul.f32 %v2233_v52, %v4454_v3  ;;  %v2937_v57 = vld [vmem:[%s4722_s4 + $0x78] sm:$0xff]  }
 0x2ee   :  { %v2243_v51 = vpop.permute.xlu0 %2242 }
 0x2ef   :  { %2570 = vst.msk [vmem:[%s4723_s9 + $0x4c] sm:$0xf] %vm2550_vm2, %v2846_v23  ;;  %v2843_v49 = vpack.c.bf16 %v2406_v54, %v2406_v54  ;;  %v2407_v28 = vmul.f32 %v2894_v24, %v2311_v61  ;;  %v2316_v6 = vmul.f32 %v2243_v51, %v4460_v33  ;;  %v2921_v24 = vunpack.c.l.bf16 %v2937_v57 }
 0x2f0   :  { %v2245_v63 = vpop.permute.xlu1 %2244  ;;  %v2922_v61 = vunpack.c.h.bf16 %v2937_v57 }
 0x2f1   :  { %2567 = vst.msk [vmem:[%s4723_s9 + $0x40] sm:$0xf] %vm2550_vm2, %v2843_v49  ;;  %v2844_v3 = vpack.c.bf16 %v2407_v28, %v2407_v28  ;;  %v2412_v55 = vmul.f32 %v2905_v58, %v2316_v6  ;;  %v2317_v22 = vmul.f32 %v2245_v63, %v4467_v12 }
 0x2f2   :  { %v2239_v19 = vpop.permute.xlu0 %2238 }
 0x2f3   :  { %2568 = vst.msk [vmem:[%s4723_s9 + $0x44] sm:$0xf] %vm2550_vm2, %v2844_v3  ;;  %v2849_v50 = vpack.c.bf16 %v2412_v55, %v2412_v55  ;;  %v2413_v33 = vmul.f32 %v2906_v13, %v2317_v22  ;;  %v2314_v15 = vmul.f32 %v2239_v19, %v4463_v8 }
 0x2f4   :  { %v2241_v1 = vpop.permute.xlu1 %2240 }
 0x2f5   :  { %2573 = vst.msk [vmem:[%s4723_s9 + $0x58] sm:$0xf] %vm2550_vm2, %v2849_v50  ;;  %v2850_v12 = vpack.c.bf16 %v2413_v33, %v2413_v33  ;;  %v2410_v25 = vmul.f32 %v2901_v14, %v2314_v15  ;;  %v2315_v27 = vmul.f32 %v2241_v1, %v4470_v45 }
 0x2f7   :  { %2574 = vst.msk [vmem:[%s4723_s9 + $0x5c] sm:$0xf] %vm2550_vm2, %v2850_v12  ;;  %v2847_v8 = vpack.c.bf16 %v2410_v25, %v2410_v25  ;;  %v2411_v39 = vmul.f32 %v2902_v34, %v2315_v27  ;;  %v2251_v9 = vpop.permute.xlu0 %2250 }
 0x2f8   :  { %v2320_v2 = vmul.f32 %v2251_v9, %v4476_v43 }
 0x2f9   :  { %2571 = vst.msk [vmem:[%s4723_s9 + $0x50] sm:$0xf] %vm2550_vm2, %v2847_v8  ;;  %v2848_v45 = vpack.c.bf16 %v2411_v39, %v2411_v39  ;;  %v2253_v11 = vpop.permute.xlu1 %2252 }
 0x2fa   :  { %v2416_v17 = vmul.f32 %v2913_v20, %v2320_v2  ;;  %v2321_v47 = vmul.f32 %v2253_v11, %v4483_v21 }
 0x2fb   :  { %2572 = vst.msk [vmem:[%s4723_s9 + $0x54] sm:$0xf] %vm2550_vm2, %v2848_v45  ;;  %v2247_v41 = vpop.permute.xlu0 %2246 }
 0x2fc   :  { %v2853_v16 = vpack.c.bf16 %v2416_v17, %v2416_v17  ;;  %v2417_v43 = vmul.f32 %v2914_v38, %v2321_v47  ;;  %v2318_v40 = vmul.f32 %v2247_v41, %v4479_v59 }
 0x2fd   :  { %v2249_v62 = vpop.permute.xlu1 %2248 }
 0x2fe   :  { %2577 = vst.msk [vmem:[%s4723_s9 + $0x68] sm:$0xf] %vm2550_vm2, %v2853_v16  ;;  %v2854_v21 = vpack.c.bf16 %v2417_v43, %v2417_v43  ;;  %v2414_v5 = vmul.f32 %v2909_v48, %v2318_v40  ;;  %v2319_v60 = vmul.f32 %v2249_v62, %v4486_v35 }
 0x300   :  { %2578 = vst.msk [vmem:[%s4723_s9 + $0x6c] sm:$0xf] %vm2550_vm2, %v2854_v21  ;;  %v2851_v59 = vpack.c.bf16 %v2414_v5, %v2414_v5  ;;  %v2415_v18 = vmul.f32 %v2910_v4, %v2319_v60  ;;  %v2255_v37 = vpop.permute.xlu0 %2254 }
 0x301   :  { %v2322_v46 = vmul.f32 %v2255_v37, %v4495_v0 }
 0x302   :  { %2575 = vst.msk [vmem:[%s4723_s9 + $0x60] sm:$0xf] %vm2550_vm2, %v2851_v59  ;;  %v2852_v35 = vpack.c.bf16 %v2415_v18, %v2415_v18  ;;  %v2257_v32 = vpop.permute.xlu1 %2256 }
 0x303   :  { %v2418_v44 = vmul.f32 %v2917_v30, %v2322_v46  ;;  %v2323_v26 = vmul.f32 %v2257_v32, %v4502_v10 }
 0x304   :  { %2576 = vst.msk [vmem:[%s4723_s9 + $0x64] sm:$0xf] %vm2550_vm2, %v2852_v35  ;;  %v2259_v52 = vpop.permute.xlu0 %2258 }
 0x305   :  { %v2855_v23 = vpack.c.bf16 %v2418_v44, %v2418_v44  ;;  %v2419_v0 = vmul.f32 %v2918_v7, %v2323_v26  ;;  %v2324_v54 = vmul.f32 %v2259_v52, %v4491_v42 }
 0x306   :  { %v2261_v58 = vpop.permute.xlu1 %2260 }
 0x307   :  { %2579 = vst.msk [vmem:[%s4723_s9 + $0x70] sm:$0xf] %vm2550_vm2, %v2855_v23  ;;  %v2856_v51 = vpack.c.bf16 %v2419_v0, %v2419_v0  ;;  %v2420_v10 = vmul.f32 %v2921_v24, %v2324_v54  ;;  %v2325_v31 = vmul.f32 %v2261_v58, %v4498_v53 }
 0x309   :  { %2580 = vst.msk [vmem:[%s4723_s9 + $0x74] sm:$0xf] %vm2550_vm2, %v2856_v51  ;;  %v2857_v49 = vpack.c.bf16 %v2420_v10, %v2420_v10  ;;  %v2421_v28 = vmul.f32 %v2922_v61, %v2325_v31 }
 0x30b   :  { %2581 = vst.msk [vmem:[%s4723_s9 + $0x78] sm:$0xf] %vm2550_vm2, %v2857_v49  ;;  %v2858_v42 = vpack.c.bf16 %v2421_v28, %v2421_v28 }
 0x30d   :  { %2582 = vst.msk [vmem:[%s4723_s9 + $0x7c] sm:$0xf] %vm2550_vm2, %v2858_v42 }

// kernel: chgnet_bond_graph_block.5
= control target key start
LH: loop header
LB: loop body
LE: loop exit
PB: predicated region body
PF: predicated region fallthrough
CT: control target
= control target key end

     0   :  { %vm252_vm0 = vcmask 130048   ;;  %vm554_vm1 = vcmask 261120   ;;  %s4434_s4 = inlined_call_operand.vmem [shape: bf16[96,128], index: 4, kind: input, shape index: {}]   ;;  %s4435_s1 = inlined_call_operand.vmem [shape: bf16[256,16], index: 1, kind: input, shape index: {}]   ;;  %s4436_s0 = inlined_call_operand.vmem [shape: bf16[256,32], index: 0, kind: input, shape index: {}]   ;;  %s4437_s2 = inlined_call_operand.vmem [shape: bf16[256,16], index: 2, kind: input, shape index: {}]   ;;  %s4438_s3 = inlined_call_operand.vmem [shape: bf16[256,32], index: 3, kind: input, shape index: {}]   ;;  %s4439_s6 = inlined_call_operand.vmem [shape: bf16[128,32], index: 6, kind: input, shape index: {}]   ;;  %s4440_s5 = inlined_call_operand.vmem [shape: f32[1,128], index: 5, kind: input, shape index: {}]   ;;  %s4441_s7 = inlined_call_operand.vmem [shape: f32[1,32], index: 7, kind: input, shape index: {}]   ;;  %s4442_s8 = inlined_call_operand.vmem [shape: f32[256,16], index: 8, kind: output, shape index: {}]  }
   0x1   :  { %v3012_v0 = vld [vmem:[%s4434_s4 + $0x10] sm:$0xff]   ;;  %v30_v1 = vld [vmem:[%s4435_s1] sm:$0xff]   ;;  %v32_v3 = vld [vmem:[%s4435_s1 + $0x8] sm:$0xff]  }
   0x2   :  { %v46_v2 = vld [vmem:[%s4435_s1 + $0x40] sm:$0xff]   ;;  %2725 = vmatprep.subr.bf16.mxu0 %v3012_v0  ;;  %2913 = vmatprep.subr.bf16.mxu1 %v3012_v0  ;;  %v48_v4 = vld [vmem:[%s4435_s1 + $0x48] sm:$0xff]   ;;  %v3017_v5 = vld [vmem:[%s4434_s4 + $0x18] sm:$0xff]  }
   0x3   :  { %2726 = vmatpush3.bf16.msra.mxu0 %v3012_v0  ;;  %2914 = vmatpush3.bf16.msra.mxu1 %v3012_v0  ;;  %v34_v6 = vld [vmem:[%s4435_s1 + $0x10] sm:$0xff]   ;;  %v36_v8 = vld [vmem:[%s4435_s1 + $0x18] sm:$0xff]   ;;  %v38_v10 = vld [vmem:[%s4435_s1 + $0x20] sm:$0xff]  }
   0x4   :  { %v50_v7 = vld [vmem:[%s4435_s1 + $0x50] sm:$0xff]   ;;  %2727 = vmatprep.mubr.msk.bf16.mxu0 %vm252_vm0, %v30_v1  ;;  %2743 = vmatprep.mubr.msk.bf16.mxu1 %vm252_vm0, %v46_v2  ;;  %v52_v9 = vld [vmem:[%s4435_s1 + $0x58] sm:$0xff]   ;;  %v54_v11 = vld [vmem:[%s4435_s1 + $0x60] sm:$0xff]  }
   0x5   :  { %2795 = vmatprep.subr.bf16.mxu0 %v3017_v5  ;;  %v3030_v12 = vld [vmem:[%s4434_s4] sm:$0xff]   ;;  %v3031_v13 = vld [vmem:[%s4434_s4 + $0x8] sm:$0xff]   ;;  %v42_v17 = vld [vmem:[%s4435_s1 + $0x30] sm:$0xff]  }
   0x6   :  { %2728 = vmatmul.mubr.msk.bf16.vlgmr.msra.gmra.mrb[0].mxu0 %vm252_vm0, %v32_v3  ;;  %2744 = vmatmul.mubr.msk.bf16.vlgmr.msra.gmra.mrb[0].mxu1 %vm252_vm0, %v48_v4  ;;  %v40_v14 = vld [vmem:[%s4435_s1 + $0x28] sm:$0xff]   ;;  %v3036_v16 = vld [vmem:[%s4434_s4 + $0x20] sm:$0xff]   ;;  %v58_v18 = vld [vmem:[%s4435_s1 + $0x70] sm:$0xff]  }
   0x7   :  { %2796 = vmatpush3.bf16.msra.mxu0 %v3017_v5  ;;  %2731 = vmatprep.mubr.msk.bf16.mxu0 %vm252_vm0, %v34_v6  ;;  %v56_v15 = vld [vmem:[%s4435_s1 + $0x68] sm:$0xff]   ;;  %v44_v19 = vld [vmem:[%s4435_s1 + $0x38] sm:$0xff]   ;;  %v3032_v21 = vld [vmem:[%s4436_s0] sm:$0xff]  }
   0x8   :  { %2747 = vmatprep.mubr.msk.bf16.mxu1 %vm252_vm0, %v50_v7  ;;  %2759 = vmatprep.subr.bf16.mxu1 %v3030_v12  ;;  %v60_v20 = vld [vmem:[%s4435_s1 + $0x78] sm:$0xff]   ;;  %v3033_v22 = vld [vmem:[%s4437_s2] sm:$0xff]   ;;  %v3034_v23 = vld [vmem:[%s4436_s0 + $0x8] sm:$0xff]  }
   0x9   :  { %2760 = vmatpush3.bf16.msra.mxu1 %v3030_v12  ;;  %2829 = vmatprep.subr.bf16.mxu0 %v3036_v16  ;;  %v3035_v24 = vld [vmem:[%s4437_s2 + $0x8] sm:$0xff]   ;;  %v3037_v25 = vld [vmem:[%s4436_s0 + $0x10] sm:$0xff]   ;;  %v3039_v28 = vld [vmem:[%s4436_s0 + $0x18] sm:$0xff]  }
   0xa   :  { %2761 = vmatprep.subr.bf16.mxu1 %v3031_v13  ;;  %v3038_v26 = vld [vmem:[%s4437_s2 + $0x10] sm:$0xff]   ;;  %v3053_v27 = vld [vmem:[%s4434_s4 + $0x28] sm:$0xff]   ;;  %v3040_v29 = vld [vmem:[%s4437_s2 + $0x18] sm:$0xff]  }
   0xb   :  { %v3041_v30 = vld [vmem:[%s4436_s0 + $0x20] sm:$0xff]   ;;  %v3043_v32 = vld [vmem:[%s4436_s0 + $0x28] sm:$0xff]   ;;  %v3045_v34 = vld [vmem:[%s4436_s0 + $0x30] sm:$0xff]  }
   0xc   :  { %v3042_v31 = vld [vmem:[%s4437_s2 + $0x20] sm:$0xff]   ;;  %v3044_v33 = vld [vmem:[%s4437_s2 + $0x28] sm:$0xff]   ;;  %v3046_v35 = vld [vmem:[%s4437_s2 + $0x30] sm:$0xff]  }
   0xd   :  { %2762 = vmatpush3.bf16.msra.mxu1 %v3031_v13  ;;  %v3047_v36 = vld [vmem:[%s4436_s0 + $0x38] sm:$0xff]   ;;  %v3049_v38 = vld [vmem:[%s4436_s0 + $0x40] sm:$0xff]   ;;  %v3051_v40 = vld [vmem:[%s4436_s0 + $0x48] sm:$0xff]  }
   0xe   :  { %2732 = vmatmul.mubr.msk.bf16.gmra.mrb[4].mxu0 %vm252_vm0, %v36_v8  ;;  %2748 = vmatmul.mubr.msk.bf16.gmra.mrb[4].mxu1 %vm252_vm0, %v52_v9  ;;  %v3048_v37 = vld [vmem:[%s4437_s2 + $0x38] sm:$0xff]   ;;  %v3050_v39 = vld [vmem:[%s4437_s2 + $0x40] sm:$0xff]   ;;  %v3052_v41 = vld [vmem:[%s4437_s2 + $0x48] sm:$0xff]  }
   0xf   :  { %2735 = vmatprep.mubr.msk.bf16.mxu0 %vm252_vm0, %v38_v10  ;;  %2751 = vmatprep.mubr.msk.bf16.mxu1 %vm252_vm0, %v54_v11  ;;  %v3054_v42 = vld [vmem:[%s4436_s0 + $0x50] sm:$0xff]   ;;  %v3056_v44 = vld [vmem:[%s4436_s0 + $0x58] sm:$0xff]   ;;  %v3058_v46 = vld [vmem:[%s4436_s0 + $0x60] sm:$0xff]  }
  0x10   :  { %v3055_v43 = vld [vmem:[%s4437_s2 + $0x50] sm:$0xff]   ;;  %v3057_v45 = vld [vmem:[%s4437_s2 + $0x58] sm:$0xff]   ;;  %v3059_v47 = vld [vmem:[%s4437_s2 + $0x60] sm:$0xff]  }
  0x11   :  { %v3060_v48 = vld [vmem:[%s4436_s0 + $0x68] sm:$0xff]   ;;  %v3062_v50 = vld [vmem:[%s4436_s0 + $0x70] sm:$0xff]   ;;  %v3064_v52 = vld [vmem:[%s4436_s0 + $0x78] sm:$0xff]  }
  0x12   :  { %v3061_v49 = vld [vmem:[%s4437_s2 + $0x68] sm:$0xff]   ;;  %v3063_v51 = vld [vmem:[%s4437_s2 + $0x70] sm:$0xff]   ;;  %v3065_v53 = vld [vmem:[%s4437_s2 + $0x78] sm:$0xff]  }
  0x13   :  { %v3066_v54 = vld [vmem:[%s4438_s3] sm:$0xff]   ;;  %v3067_v55 = vld [vmem:[%s4438_s3 + $0x8] sm:$0xff]   ;;  %v3068_v56 = vld [vmem:[%s4438_s3 + $0x10] sm:$0xff]  }
  0x14   :  { %v3069_v57 = vld [vmem:[%s4438_s3 + $0x18] sm:$0xff]   ;;  %v3070_v58 = vld [vmem:[%s4438_s3 + $0x20] sm:$0xff]   ;;  %v3071_v59 = vld [vmem:[%s4438_s3 + $0x28] sm:$0xff]  }
  0x15   :  { %v3072_v60 = vld [vmem:[%s4438_s3 + $0x30] sm:$0xff]   ;;  %v3073_v61 = vld [vmem:[%s4438_s3 + $0x38] sm:$0xff]   ;;  %v3074_v62 = vld [vmem:[%s4438_s3 + $0x40] sm:$0xff]  }
  0x16   :  { %2736 = vmatmul.mubr.msk.bf16.gmra.mrb[8].mxu0 %vm252_vm0, %v40_v14  ;;  %2752 = vmatmul.mubr.msk.bf16.gmra.mrb[8].mxu1 %vm252_vm0, %v56_v15  ;;  %v3075_v63 = vld [vmem:[%s4438_s3 + $0x48] sm:$0xff]   ;;  %v3076_v0 = vld [vmem:[%s4438_s3 + $0x50] sm:$0xff]   ;;  %v3077_v1 = vld [vmem:[%s4438_s3 + $0x58] sm:$0xff]  }
  0x17   :  { %2739 = vmatprep.mubr.msk.bf16.mxu0 %vm252_vm0, %v42_v17  ;;  %2755 = vmatprep.mubr.msk.bf16.mxu1 %vm252_vm0, %v58_v18  ;;  %v3078_v2 = vld [vmem:[%s4438_s3 + $0x60] sm:$0xff]   ;;  %v3079_v3 = vld [vmem:[%s4438_s3 + $0x68] sm:$0xff]   ;;  %v3080_v4 = vld [vmem:[%s4438_s3 + $0x70] sm:$0xff]  }
  0x18   :  { %v3081_v5 = vld [vmem:[%s4438_s3 + $0x78] sm:$0xff]   ;;  %v3082_v6 = vld [vmem:[%s4439_s6] sm:$0xff]   ;;  %v3083_v7 = vld [vmem:[%s4439_s6 + $0x8] sm:$0xff]  }
  0x19   :  { %2865 = vmatprep.subr.bf16.mxu1 %v3082_v6  ;;  %v3084_v8 = vld [vmem:[%s4439_s6 + $0x10] sm:$0xff]   ;;  %v3085_v9 = vld [vmem:[%s4439_s6 + $0x18] sm:$0xff]   ;;  %v3086_v10 = vld [vmem:[%s4439_s6 + $0x20] sm:$0xff]  }
  0x1a   :  { %v3087_v11 = vld [vmem:[%s4439_s6 + $0x28] sm:$0xff]   ;;  %v3088_v12 = vld [vmem:[%s4439_s6 + $0x30] sm:$0xff]  }
  0x1e   :  { %2740 = vmatmul.mubr.msk.bf16.gmra.mrb[12].mxu0 %vm252_vm0, %v44_v19  ;;  %2756 = vmatmul.mubr.msk.bf16.gmra.mrb[12].mxu1 %vm252_vm0, %v60_v20 }
  0x1f   :  { %2763 = vmatprep.mubr.msk.bf16.mxu1 %vm554_vm1, %v3032_v21  ;;  %2797 = vmatprep.mubr.msk.bf16.mxu0 %vm252_vm0, %v3033_v22 }
  0x26   :  { %2764 = vmatmul.mubr.msk.bf16.vlgmr.msra.gmra.mrb[16].mxu1 %vm554_vm1, %v3034_v23  ;;  %2798 = vmatmul.mubr.msk.bf16.vlgmr.msra.gmra.mrb[16].mxu0 %vm252_vm0, %v3035_v24 }
  0x27   :  { %2830 = vmatpush3.bf16.msra.mxu0 %v3036_v16  ;;  %2767 = vmatprep.mubr.msk.bf16.mxu1 %vm554_vm1, %v3037_v25  ;;  %v3089_v16 = vld [vmem:[%s4439_s6 + $0x38] sm:$0xff]  }
  0x28   :  { %2801 = vmatprep.mubr.msk.bf16.mxu0 %vm252_vm0, %v3038_v26  ;;  %2831 = vmatprep.subr.bf16.mxu0 %v3053_v27 }
  0x29   :  { %2866 = vmatpush3.bf16.msra.mxu1 %v3082_v6 }
  0x2a   :  { %2867 = vmatprep.subr.bf16.mxu1 %v3083_v7 }
  0x2b   :  { %2832 = vmatpush3.bf16.msra.mxu0 %v3053_v27 }
  0x2d   :  { %2868 = vmatpush3.bf16.msra.mxu1 %v3083_v7 }
  0x2e   :  { %2768 = vmatmul.mubr.msk.bf16.gmra.mrb[20].mxu1 %vm554_vm1, %v3039_v28  ;;  %2802 = vmatmul.mubr.msk.bf16.gmra.mrb[20].mxu0 %vm252_vm0, %v3040_v29 }
  0x2f   :  { %2771 = vmatprep.mubr.msk.bf16.mxu1 %vm554_vm1, %v3041_v30  ;;  %2805 = vmatprep.mubr.msk.bf16.mxu0 %vm252_vm0, %v3042_v31 }
  0x30   :  { %2869 = vmatprep.subr.bf16.mxu1 %v3084_v8 }
  0x31   :  { %2870 = vmatpush3.bf16.msra.mxu1 %v3084_v8 }
  0x32   :  { %2871 = vmatprep.subr.bf16.mxu1 %v3085_v9 }
  0x35   :  { %2872 = vmatpush3.bf16.msra.mxu1 %v3085_v9 }
  0x36   :  { %2772 = vmatmul.mubr.msk.bf16.gmra.mrb[24].mxu1 %vm554_vm1, %v3043_v32  ;;  %2806 = vmatmul.mubr.msk.bf16.gmra.mrb[24].mxu0 %vm252_vm0, %v3044_v33 }
  0x37   :  { %2775 = vmatprep.mubr.msk.bf16.mxu1 %vm554_vm1, %v3045_v34  ;;  %2809 = vmatprep.mubr.msk.bf16.mxu0 %vm252_vm0, %v3046_v35 }
  0x38   :  { %2873 = vmatprep.subr.bf16.mxu1 %v3086_v10 }
  0x39   :  { %2874 = vmatpush3.bf16.msra.mxu1 %v3086_v10 }
  0x3a   :  { %2875 = vmatprep.subr.bf16.mxu1 %v3087_v11 }
  0x3d   :  { %2876 = vmatpush3.bf16.msra.mxu1 %v3087_v11 }
  0x3e   :  { %2776 = vmatmul.mubr.msk.bf16.gmra.mrb[28].mxu1 %vm554_vm1, %v3047_v36  ;;  %2810 = vmatmul.mubr.msk.bf16.gmra.mrb[28].mxu0 %vm252_vm0, %v3048_v37 }
  0x3f   :  { %2779 = vmatprep.mubr.msk.bf16.mxu1 %vm554_vm1, %v3049_v38  ;;  %2813 = vmatprep.mubr.msk.bf16.mxu0 %vm252_vm0, %v3050_v39 }
  0x40   :  { %2877 = vmatprep.subr.bf16.mxu1 %v3088_v12 }
  0x41   :  { %2878 = vmatpush3.bf16.msra.mxu1 %v3088_v12 }
  0x42   :  { %2879 = vmatprep.subr.bf16.mxu1 %v3089_v16 }
  0x45   :  { %2880 = vmatpush3.bf16.msra.mxu1 %v3089_v16 }
  0x46   :  { %2780 = vmatmul.mubr.msk.bf16.gmra.mrb[0].mxu1 %vm554_vm1, %v3051_v40  ;;  %2814 = vmatmul.mubr.msk.bf16.gmra.mrb[32].mxu0 %vm252_vm0, %v3052_v41 }
  0x47   :  { %2783 = vmatprep.mubr.msk.bf16.mxu1 %vm554_vm1, %v3054_v42  ;;  %2817 = vmatprep.mubr.msk.bf16.mxu0 %vm252_vm0, %v3055_v43 }
  0x4e   :  { %2784 = vmatmul.mubr.msk.bf16.gmra.mrb[4].mxu1 %vm554_vm1, %v3056_v44  ;;  %2818 = vmatmul.mubr.msk.bf16.gmra.mrb[36].mxu0 %vm252_vm0, %v3057_v45 }
  0x4f   :  { %2787 = vmatprep.mubr.msk.bf16.mxu1 %vm554_vm1, %v3058_v46  ;;  %2821 = vmatprep.mubr.msk.bf16.mxu0 %vm252_vm0, %v3059_v47 }
  0x56   :  { %2788 = vmatmul.mubr.msk.bf16.gmra.mrb[8].mxu1 %vm554_vm1, %v3060_v48  ;;  %2822 = vmatmul.mubr.msk.bf16.gmra.mrb[40].mxu0 %vm252_vm0, %v3061_v49 }
  0x57   :  { %2791 = vmatprep.mubr.msk.bf16.mxu1 %vm554_vm1, %v3062_v50  ;;  %2825 = vmatprep.mubr.msk.bf16.mxu0 %vm252_vm0, %v3063_v51 }
  0x5e   :  { %2792 = vmatmul.mubr.msk.bf16.gmra.mrb[12].mxu1 %vm554_vm1, %v3064_v52  ;;  %2826 = vmatmul.mubr.msk.bf16.gmra.mrb[44].mxu0 %vm252_vm0, %v3065_v53 }
  0x5f   :  { %2833 = vmatprep.mubr.msk.bf16.mxu0 %vm554_vm1, %v3066_v54 }
  0x66   :  { %2834 = vmatmul.mubr.msk.bf16.vlgmr.msra.gmra.mrb[16].mxu0 %vm554_vm1, %v3067_v55 }
  0x67   :  { %2837 = vmatprep.mubr.msk.bf16.mxu0 %vm554_vm1, %v3068_v56 }
  0x6e   :  { %2838 = vmatmul.mubr.msk.bf16.gmra.mrb[20].mxu0 %vm554_vm1, %v3069_v57 }
  0x6f   :  { %2841 = vmatprep.mubr.msk.bf16.mxu0 %vm554_vm1, %v3070_v58 }
  0x76   :  { %2842 = vmatmul.mubr.msk.bf16.gmra.mrb[24].mxu0 %vm554_vm1, %v3071_v59 }
  0x77   :  { %2845 = vmatprep.mubr.msk.bf16.mxu0 %vm554_vm1, %v3072_v60 }
  0x7e   :  { %2846 = vmatmul.mubr.msk.bf16.gmra.mrb[28].mxu0 %vm554_vm1, %v3073_v61 }
  0x7f   :  { %2849 = vmatprep.mubr.msk.bf16.mxu0 %vm554_vm1, %v3074_v62 }
  0x86   :  { %2850 = vmatmul.mubr.msk.bf16.gmra.mrb[32].mxu0 %vm554_vm1, %v3075_v63 }
  0x87   :  { %2853 = vmatprep.mubr.msk.bf16.mxu0 %vm554_vm1, %v3076_v0 }
  0x8e   :  { %2854 = vmatmul.mubr.msk.bf16.gmra.mrb[36].mxu0 %vm554_vm1, %v3077_v1 }
  0x8f   :  { %2857 = vmatprep.mubr.msk.bf16.mxu0 %vm554_vm1, %v3078_v2 }
  0x96   :  { %2858 = vmatmul.mubr.msk.bf16.gmra.mrb[40].mxu0 %vm554_vm1, %v3079_v3 }
  0x97   :  { %2861 = vmatprep.mubr.msk.bf16.mxu0 %vm554_vm1, %v3080_v4 }
  0x9e   :  { %2862 = vmatmul.mubr.msk.bf16.gmra.mrb[44].mxu0 %vm554_vm1, %v3081_v5 }
  0xd9   :  { %v2729_v13 = vpop.f32.mrb[0].mxu0 }
  0xda   :  { %v335_v14 = vpop.f32.mrb[1].mxu0 }
  0xdb   :  { %v2730_v15 = vpop.f32.mrb[2].mxu0 }
  0xdc   :  { %v338_v17 = vpop.f32.mrb[3].mxu0 }
  0xe1   :  { %v2733_v18 = vpop.f32.mrb[4].mxu0 }
  0xe2   :  { %v351_v19 = vpop.f32.mrb[5].mxu0 }
  0xe3   :  { %v2734_v20 = vpop.f32.mrb[6].mxu0 }
  0xe4   :  { %v354_v21 = vpop.f32.mrb[7].mxu0 }
  0xe9   :  { %v2737_v22 = vpop.f32.mrb[8].mxu0 }
  0xea   :  { %v367_v23 = vpop.f32.mrb[9].mxu0 }
  0xeb   :  { %v2738_v24 = vpop.f32.mrb[10].mxu0 }
  0xec   :  { %v370_v25 = vpop.f32.mrb[11].mxu0 }
  0xf1   :  { %v2741_v26 = vpop.f32.mrb[12].mxu0 }
  0xf2   :  { %v383_v27 = vpop.f32.mrb[13].mxu0 }
  0xf3   :  { %v2742_v28 = vpop.f32.mrb[14].mxu0 }
  0xf4   :  { %v386_v29 = vpop.f32.mrb[15].mxu0 }
  0xf9   :  { %v2765_v30 = vpop.f32.mrb[16].mxu1 }
  0xfa   :  { %v646_v31 = vadd.f32 %v2765_v30, %v2729_v13  ;;  %v637_v32 = vpop.f32.mrb[17].mxu1 }
  0xfb   :  { %v638_v33 = vadd.f32 %v637_v32, %v335_v14  ;;  %v2766_v34 = vpop.f32.mrb[18].mxu1  ;;  %v3777_v14 = vld [vmem:[%s4440_s5] ss:$0 sm:$0xff] }
  0xfc   :  { %v649_v35 = vadd.f32 %v2766_v34, %v2730_v15  ;;  %v640_v36 = vpop.f32.mrb[19].mxu1 }
  0xfd   :  { %v641_v37 = vadd.f32 %v640_v36, %v338_v17 }
 0x101   :  { %v2769_v38 = vpop.f32.mrb[20].mxu1 }
 0x102   :  { %v662_v39 = vadd.f32 %v2769_v38, %v2733_v18  ;;  %v653_v40 = vpop.f32.mrb[21].mxu1 }
 0x103   :  { %v654_v41 = vadd.f32 %v653_v40, %v351_v19  ;;  %v2770_v42 = vpop.f32.mrb[22].mxu1 }
 0x104   :  { %v3722_v43 = vadd.f32 %v2770_v42, %v2734_v20  ;;  %v656_v44 = vpop.f32.mrb[23].mxu1 }
 0x105   :  { %v3724_v45 = vadd.f32 %v656_v44, %v354_v21 }
 0x109   :  { %v2773_v46 = vpop.f32.mrb[24].mxu1 }
 0x10a   :  { %v3726_v47 = vadd.f32 %v2773_v46, %v2737_v22  ;;  %v669_v48 = vpop.f32.mrb[25].mxu1 }
 0x10b   :  { %v3728_v49 = vadd.f32 %v669_v48, %v367_v23  ;;  %v2774_v50 = vpop.f32.mrb[26].mxu1 }
 0x10c   :  { %v3730_v51 = vadd.f32 %v2774_v50, %v2738_v24  ;;  %v672_v52 = vpop.f32.mrb[27].mxu1 }
 0x10d   :  { %v3732_v53 = vadd.f32 %v672_v52, %v370_v25 }
 0x111   :  { %v2777_v54 = vpop.f32.mrb[28].mxu1 }
 0x112   :  { %v3734_v55 = vadd.f32 %v2777_v54, %v2741_v26  ;;  %v685_v56 = vpop.f32.mrb[29].mxu1 }
 0x113   :  { %v3736_v57 = vadd.f32 %v685_v56, %v383_v27  ;;  %v2778_v58 = vpop.f32.mrb[30].mxu1 }
 0x114   :  { %v3738_v59 = vadd.f32 %v2778_v58, %v2742_v28  ;;  %v688_v60 = vpop.f32.mrb[31].mxu1 }
 0x115   :  { %v3740_v61 = vadd.f32 %v688_v60, %v386_v29 }
 0x119   :  { %v3742_v62 = vpop.f32.mrb[0].mxu1 }
 0x11a   :  { %v3744_v63 = vpop.f32.mrb[1].mxu1 }
 0x11b   :  { %v3746_v0 = vpop.f32.mrb[2].mxu1 }
 0x11c   :  { %v3748_v1 = vpop.f32.mrb[3].mxu1 }
 0x121   :  { %v3750_v2 = vpop.f32.mrb[4].mxu1 }
 0x122   :  { %v3752_v3 = vpop.f32.mrb[5].mxu1 }
 0x123   :  { %v3754_v4 = vpop.f32.mrb[6].mxu1 }
 0x124   :  { %v3756_v5 = vpop.f32.mrb[7].mxu1 }
 0x129   :  { %v3758_v6 = vpop.f32.mrb[8].mxu1 }
 0x12a   :  { %v3760_v7 = vpop.f32.mrb[9].mxu1 }
 0x12b   :  { %v3762_v8 = vpop.f32.mrb[10].mxu1 }
 0x12c   :  { %v3764_v9 = vpop.f32.mrb[11].mxu1 }
 0x131   :  { %v3766_v10 = vpop.f32.mrb[12].mxu1 }
 0x132   :  { %v3768_v11 = vpop.f32.mrb[13].mxu1 }
 0x133   :  { %v3770_v12 = vpop.f32.mrb[14].mxu1 }
 0x134   :  { %v3772_v13 = vpop.f32.mrb[15].mxu1 }
 0x139   :  { %v2835_v15 = vpop.f32.mrb[16].mxu0 }
 0x13a   :  { %v2916_v16 = vadd.f32 %v2835_v15, %v646_v31  ;;  %v1271_v17 = vpop.f32.mrb[17].mxu0 }
 0x13b   :  { %v2918_v18 = vadd.f32 %v1271_v17, %v638_v33  ;;  %v2836_v19 = vpop.f32.mrb[18].mxu0 }
 0x13c   :  { %v3780_v20 = vadd.f32 %v2916_v16, %v3777_v14  ;;  %v2920_v21 = vadd.f32 %v2836_v19, %v649_v35  ;;  %v1274_v22 = vpop.f32.mrb[19].mxu0 }
 0x13d   :  { %v3783_v23 = vadd.f32 %v2918_v18, %v3777_v14  ;;  %v2922_v24 = vadd.f32 %v1274_v22, %v641_v37 }
 0x13e   :  { %v2560_v25 = vmul.f32 -1.442695, %v3780_v20  ;;  %v3787_v26 = vadd.f32 %v2920_v21, %v3777_v14 }
 0x13f   :  { %v2558_v27 = vmul.f32 -1.442695, %v3783_v23  ;;  %v3791_v28 = vadd.f32 %v2922_v24, %v3777_v14 }
 0x140   :  { %3106 = vpow2.f32 %v2560_v25  ;;  %v2561_v29 = vmul.f32 -1.442695, %v3787_v26 }
 0x141   :  { %3108 = vpow2.f32 %v2558_v27  ;;  %v2559_v30 = vmul.f32 -1.442695, %v3791_v28  ;;  %v2839_v31 = vpop.f32.mrb[20].mxu0 }
 0x142   :  { %3110 = vpow2.f32 %v2561_v29  ;;  %v2924_v32 = vadd.f32 %v2839_v31, %v662_v39  ;;  %v1287_v33 = vpop.f32.mrb[21].mxu0 }
 0x143   :  { %3112 = vpow2.f32 %v2559_v30  ;;  %v2926_v34 = vadd.f32 %v1287_v33, %v654_v41  ;;  %v2840_v35 = vpop.f32.mrb[22].mxu0 }
 0x144   :  { %v3796_v36 = vadd.f32 %v2924_v32, %v3777_v14  ;;  %v2928_v37 = vadd.f32 %v2840_v35, %v3722_v43  ;;  %v1290_v38 = vpop.f32.mrb[23].mxu0 }
 0x145   :  { %v3800_v40 = vadd.f32 %v2926_v34, %v3777_v14  ;;  %v2930_v42 = vadd.f32 %v1290_v38, %v3724_v45 }
 0x146   :  { %v2564_v44 = vmul.f32 -1.442695, %v3796_v36  ;;  %v3805_v46 = vadd.f32 %v2928_v37, %v3777_v14 }
 0x147   :  { %v2562_v39 = vmul.f32 -1.442695, %v3800_v40  ;;  %v3809_v41 = vadd.f32 %v2930_v42, %v3777_v14 }
 0x148   :  { %3114 = vpow2.f32 %v2564_v44  ;;  %v2565_v48 = vmul.f32 -1.442695, %v3805_v46 }
 0x149   :  { %3116 = vpow2.f32 %v2562_v39  ;;  %v2563_v43 = vmul.f32 -1.442695, %v3809_v41  ;;  %v2843_v50 = vpop.f32.mrb[24].mxu0 }
 0x14a   :  { %v3107_v52 = vpop.eup %3106  ;;  %3118 = vpow2.f32 %v2565_v48  ;;  %v2932_v45 = vadd.f32 %v2843_v50, %v3726_v47  ;;  %v1303_v54 = vpop.f32.mrb[25].mxu0 }
 0x14b   :  { %v3109_v56 = vpop.eup %3108  ;;  %v1566_v58 = vadd.f32 1.0, %v3107_v52  ;;  %3120 = vpow2.f32 %v2563_v43  ;;  %v2934_v60 = vadd.f32 %v1303_v54, %v3728_v49  ;;  %v2844_v15 = vpop.f32.mrb[26].mxu0 }
 0x14c   :  { %v3111_v16 = vpop.eup %3110  ;;  %v1564_v17 = vadd.f32 1.0, %v3109_v56  ;;  %v3816_v18 = vadd.f32 %v2932_v45, %v3777_v14  ;;  %v2936_v19 = vadd.f32 %v2844_v15, %v3730_v51  ;;  %v1306_v21 = vpop.f32.mrb[27].mxu0 }
 0x14d   :  { %v3113_v22 = vpop.eup %3112  ;;  %3122 = vrcp.f32 %v1566_v58  ;;  %v1567_v24 = vadd.f32 1.0, %v3111_v16  ;;  %v3820_v47 = vadd.f32 %v2934_v60, %v3777_v14  ;;  %v2938_v25 = vadd.f32 %v1306_v21, %v3732_v53 }
 0x14e   :  { %3124 = vrcp.f32 %v1564_v17  ;;  %v1565_v27 = vadd.f32 1.0, %v3113_v22  ;;  %v2568_v49 = vmul.f32 -1.442695, %v3816_v18  ;;  %v3825_v29 = vadd.f32 %v2936_v19, %v3777_v14 }
 0x14f   :  { %3126 = vrcp.f32 %v1567_v24  ;;  %v2566_v30 = vmul.f32 -1.442695, %v3820_v47  ;;  %v3829_v51 = vadd.f32 %v2938_v25, %v3777_v14 }
 0x150   :  { %3128 = vrcp.f32 %v1565_v27  ;;  %v2569_v31 = vmul.f32 -1.442695, %v3825_v29 }
 0x151   :  { %3130 = vpow2.f32 %v2568_v49  ;;  %v2567_v32 = vmul.f32 -1.442695, %v3829_v51  ;;  %v2847_v53 = vpop.f32.mrb[28].mxu0 }
 0x152   :  { %v3115_v33 = vpop.eup %3114  ;;  %3132 = vpow2.f32 %v2566_v30  ;;  %v2940_v34 = vadd.f32 %v2847_v53, %v3734_v55  ;;  %v1319_v35 = vpop.f32.mrb[29].mxu0 }
 0x153   :  { %v3117_v37 = vpop.eup %3116  ;;  %v1570_v38 = vadd.f32 1.0, %v3115_v33  ;;  %3134 = vpow2.f32 %v2569_v31  ;;  %v2942_v42 = vadd.f32 %v1319_v35, %v3736_v57  ;;  %v2848_v44 = vpop.f32.mrb[30].mxu0 }
 0x154   :  { %v3119_v39 = vpop.eup %3118  ;;  %v1568_v48 = vadd.f32 1.0, %v3117_v37  ;;  %3136 = vpow2.f32 %v2567_v32  ;;  %v3836_v43 = vadd.f32 %v2940_v34, %v3777_v14  ;;  %v2944_v50 = vadd.f32 %v2848_v44, %v3738_v59  ;;  %v1322_v52 = vpop.f32.mrb[31].mxu0 }
 0x155   :  { %v3121_v45 = vpop.eup %3120  ;;  %3138 = vrcp.f32 %v1570_v38  ;;  %v1571_v54 = vadd.f32 1.0, %v3119_v39  ;;  %v3840_v55 = vadd.f32 %v2942_v42, %v3777_v14  ;;  %v2946_v56 = vadd.f32 %v1322_v52, %v3740_v61 }
 0x156   :  { %3140 = vrcp.f32 %v1568_v48  ;;  %v1569_v57 = vadd.f32 1.0, %v3121_v45  ;;  %v2572_v58 = vmul.f32 -1.442695, %v3836_v43  ;;  %v3845_v60 = vadd.f32 %v2944_v50, %v3777_v14 }
 0x157   :  { %v3123_v15 = vpop.eup %3122  ;;  %3142 = vrcp.f32 %v1571_v54  ;;  %v2570_v59 = vmul.f32 -1.442695, %v3840_v55  ;;  %v3849_v16 = vadd.f32 %v2946_v56, %v3777_v14 }
 0x158   :  { %v3125_v17 = vpop.eup %3124  ;;  %3144 = vrcp.f32 %v1569_v57  ;;  %v2573_v19 = vmul.f32 -1.442695, %v3845_v60  ;;  %v1662_v25 = vmul.f32 %v3123_v15, %v3780_v20 }
 0x159   :  { %v3127_v21 = vpop.eup %3126  ;;  %3146 = vpow2.f32 %v2572_v58  ;;  %v2571_v61 = vmul.f32 -1.442695, %v3849_v16  ;;  %v2851_v22 = vpop.f32.mrb[32].mxu0  ;;  %v1660_v32 = vmul.f32 %v3125_v17, %v3783_v23 }
 0x15a   :  { %v3129_v24 = vpop.eup %3128  ;;  %v1663_v27 = vmul.f32 %v3127_v21, %v3787_v26  ;;  %3148 = vpow2.f32 %v2570_v59  ;;  %v2947_v49 = vadd.f32 %v2851_v22, %v3742_v62  ;;  %v1335_v30 = vpop.f32.mrb[33].mxu0 }
 0x15b   :  { %v3131_v31 = vpop.eup %3130  ;;  %v1661_v53 = vmul.f32 %v3129_v24, %v3791_v28  ;;  %3150 = vpow2.f32 %v2573_v19  ;;  %v2948_v33 = vadd.f32 %v1335_v30, %v3744_v63  ;;  %v2852_v34 = vpop.f32.mrb[34].mxu0 }
 0x15c   :  { %v3133_v35 = vpop.eup %3132  ;;  %v1693_v37 = vpack.c.bf16 %v1663_v27, %v1662_v25  ;;  %v1574_v38 = vadd.f32 1.0, %v3131_v31  ;;  %3152 = vpow2.f32 %v2571_v61  ;;  %v3860_v20 = vadd.f32 %v2947_v49, %v3777_v14  ;;  %v1338_v26 = vpop.f32.mrb[35].mxu0 }
 0x15d   :  { %v3135_v42 = vpop.eup %3134  ;;  %v1572_v62 = vadd.f32 1.0, %v3133_v35  ;;  %v3863_v44 = vadd.f32 %v2948_v33, %v3777_v14  ;;  %v2949_v23 = vadd.f32 %v2852_v34, %v3746_v0  ;;  %v2950_v28 = vadd.f32 %v1338_v26, %v3748_v1 }
 0x15e   :  { %v3137_v39 = vpop.eup %3136  ;;  %3154 = vrcp.f32 %v1574_v38  ;;  %v1575_v63 = vadd.f32 1.0, %v3135_v42  ;;  %v2576_v48 = vmul.f32 -1.442695, %v3860_v20  ;;  %v1692_v50 = vpack.c.bf16 %v1661_v53, %v1660_v32 }
 0x15f   :  { %v3139_v52 = vpop.eup %3138  ;;  %3156 = vrcp.f32 %v1572_v62  ;;  %v1573_v45 = vadd.f32 1.0, %v3137_v39  ;;  %v2574_v54 = vmul.f32 -1.442695, %v3863_v44  ;;  %v3870_v56 = vadd.f32 %v2949_v23, %v3777_v14 }
 0x160   :  { %v3141_v57 = vpop.eup %3140  ;;  %3158 = vrcp.f32 %v1575_v63  ;;  %v3873_v0 = vadd.f32 %v2950_v28, %v3777_v14  ;;  %2881 = vmatprep.mubr.bf16.mxu1 %v1692_v50  ;;  %v1666_v58 = vmul.f32 %v3139_v52, %v3796_v36 }
 0x161   :  { %v3143_v1 = vpop.eup %3142  ;;  %3160 = vrcp.f32 %v1573_v45  ;;  %v2577_v15 = vmul.f32 -1.442695, %v3870_v56  ;;  %2882 = vmatmul.mubr.bf16.vlgmr.msra.gmra.mrb[32].mxu1 %v1693_v37  ;;  %v2855_v59 = vpop.f32.mrb[36].mxu0  ;;  %v1664_v19 = vmul.f32 %v3141_v57, %v3800_v40 }
 0x162   :  { %v3145_v17 = vpop.eup %3144  ;;  %3162 = vpow2.f32 %v2576_v48  ;;  %v2575_v21 = vmul.f32 -1.442695, %v3873_v0  ;;  %v2951_v61 = vadd.f32 %v2855_v59, %v3750_v2  ;;  %v1351_v22 = vpop.f32.mrb[37].mxu0  ;;  %v1667_v25 = vmul.f32 %v3143_v1, %v3805_v46 }
 0x163   :  { %v3147_v24 = vpop.eup %3146  ;;  %v1665_v27 = vmul.f32 %v3145_v17, %v3809_v41  ;;  %3164 = vpow2.f32 %v2574_v54  ;;  %v2952_v36 = vadd.f32 %v1351_v22, %v3752_v3  ;;  %v2856_v49 = vpop.f32.mrb[38].mxu0 }
 0x164   :  { %v3149_v30 = vpop.eup %3148  ;;  %v1578_v31 = vadd.f32 1.0, %v3147_v24  ;;  %3166 = vpow2.f32 %v2577_v15  ;;  %v3884_v40 = vadd.f32 %v2951_v61, %v3777_v14  ;;  %v2953_v32 = vadd.f32 %v2856_v49, %v3754_v4  ;;  %v1354_v53 = vpop.f32.mrb[39].mxu0 }
 0x165   :  { %v3151_v2 = vpop.eup %3150  ;;  %v1576_v33 = vadd.f32 1.0, %v3149_v30  ;;  %3168 = vpow2.f32 %v2575_v21  ;;  %v3888_v46 = vadd.f32 %v2952_v36, %v3777_v14  ;;  %v2954_v41 = vadd.f32 %v1354_v53, %v3756_v5 }
 0x166   :  { %v3153_v34 = vpop.eup %3152  ;;  %3170 = vrcp.f32 %v1578_v31  ;;  %v1579_v3 = vadd.f32 1.0, %v3151_v2  ;;  %v2580_v35 = vmul.f32 -1.442695, %v3884_v40  ;;  %v3893_v37 = vadd.f32 %v2953_v32, %v3777_v14 }
 0x167   :  { %3172 = vrcp.f32 %v1576_v33  ;;  %v1577_v38 = vadd.f32 1.0, %v3153_v34  ;;  %v2578_v4 = vmul.f32 -1.442695, %v3888_v46  ;;  %v3897_v26 = vadd.f32 %v2954_v41, %v3777_v14 }
 0x168   :  { %v3155_v42 = vpop.eup %3154  ;;  %3174 = vrcp.f32 %v1579_v3  ;;  %v2581_v62 = vmul.f32 -1.442695, %v3893_v37  ;;  %v1694_v5 = vpack.c.bf16 %v1665_v27, %v1664_v19  ;;  %v1695_v23 = vpack.c.bf16 %v1667_v25, %v1666_v58 }
 0x169   :  { %v3157_v28 = vpop.eup %3156  ;;  %3176 = vrcp.f32 %v1577_v38  ;;  %v2579_v39 = vmul.f32 -1.442695, %v3897_v26  ;;  %v2859_v63 = vpop.f32.mrb[40].mxu0  ;;  %v1670_v22 = vmul.f32 %v3155_v42, %v3816_v18 }
 0x16a   :  { %v3159_v48 = vpop.eup %3158  ;;  %3178 = vpow2.f32 %v2580_v35  ;;  %2885 = vmatprep.mubr.bf16.mxu1 %v1694_v5  ;;  %v2955_v50 = vadd.f32 %v2859_v63, %v3758_v6  ;;  %v1367_v52 = vpop.f32.mrb[41].mxu0  ;;  %v1668_v54 = vmul.f32 %v3157_v28, %v3820_v47 }
 0x16b   :  { %v3161_v45 = vpop.eup %3160  ;;  %v1671_v57 = vmul.f32 %v3159_v48, %v3825_v29  ;;  %3180 = vpow2.f32 %v2578_v4  ;;  %2886 = vmatmul.mubr.bf16.gmra.mrb[36].mxu1 %v1695_v23  ;;  %v2956_v1 = vadd.f32 %v1367_v52, %v3760_v7  ;;  %v2860_v58 = vpop.f32.mrb[42].mxu0 }
 0x16c   :  { %v3163_v15 = vpop.eup %3162  ;;  %v1669_v59 = vmul.f32 %v3161_v45, %v3829_v51  ;;  %3182 = vpow2.f32 %v2581_v62  ;;  %v3907_v17 = vadd.f32 %v2955_v50, %v3777_v14  ;;  %v2957_v6 = vadd.f32 %v2860_v58, %v3762_v8  ;;  %v1370_v19 = vpop.f32.mrb[43].mxu0 }
 0x16d   :  { %v3165_v21 = vpop.eup %3164  ;;  %v1582_v61 = vadd.f32 1.0, %v3163_v15  ;;  %3184 = vpow2.f32 %v2579_v39  ;;  %v3911_v47 = vadd.f32 %v2956_v1, %v3777_v14  ;;  %v2958_v29 = vadd.f32 %v1370_v19, %v3764_v9 }
 0x16e   :  { %v3167_v7 = vpop.eup %3166  ;;  %v1580_v24 = vadd.f32 1.0, %v3165_v21  ;;  %v3916_v51 = vadd.f32 %v2957_v6, %v3777_v14  ;;  %v1696_v25 = vpack.c.bf16 %v1669_v59, %v1668_v54  ;;  %v2584_v36 = vmul.f32 -1.442695, %v3907_v17 }
 0x16f   :  { %v3169_v27 = vpop.eup %3168  ;;  %3186 = vrcp.f32 %v1582_v61  ;;  %v1583_v8 = vadd.f32 1.0, %v3167_v7  ;;  %v3920_v49 = vadd.f32 %v2958_v29, %v3777_v14  ;;  %v2582_v9 = vmul.f32 -1.442695, %v3911_v47 }
 0x170   :  { %v3171_v30 = vpop.eup %3170  ;;  %3188 = vrcp.f32 %v1580_v24  ;;  %v1581_v31 = vadd.f32 1.0, %v3169_v27  ;;  %2889 = vmatprep.mubr.bf16.mxu1 %v1696_v25  ;;  %v1697_v18 = vpack.c.bf16 %v1671_v57, %v1670_v22  ;;  %v2585_v53 = vmul.f32 -1.442695, %v3916_v51 }
 0x171   :  { %v3173_v32 = vpop.eup %3172  ;;  %3190 = vrcp.f32 %v1583_v8  ;;  %v2863_v2 = vpop.f32.mrb[44].mxu0  ;;  %v2583_v41 = vmul.f32 -1.442695, %v3920_v49  ;;  %v1674_v38 = vmul.f32 %v3171_v30, %v3836_v43 }
 0x172   :  { %v3175_v33 = vpop.eup %3174  ;;  %3192 = vrcp.f32 %v1581_v31  ;;  %v2959_v34 = vadd.f32 %v2863_v2, %v3766_v10  ;;  %v1383_v3 = vpop.f32.mrb[45].mxu0  ;;  %v1672_v50 = vmul.f32 %v3173_v32, %v3840_v55 }
 0x173   :  { %v3177_v35 = vpop.eup %3176  ;;  %v1675_v4 = vmul.f32 %v3175_v33, %v3845_v60  ;;  %3194 = vpow2.f32 %v2584_v36  ;;  %2890 = vmatmul.mubr.bf16.gmra.mrb[40].mxu1 %v1697_v18  ;;  %v2960_v42 = vadd.f32 %v1383_v3, %v3768_v11  ;;  %v2864_v62 = vpop.f32.mrb[46].mxu0 }
 0x174   :  { %v3179_v5 = vpop.eup %3178  ;;  %v1673_v23 = vmul.f32 %v3177_v35, %v3849_v16  ;;  %3196 = vpow2.f32 %v2582_v9  ;;  %v3931_v28 = vadd.f32 %v2959_v34, %v3777_v14  ;;  %v2961_v10 = vadd.f32 %v2864_v62, %v3770_v12  ;;  %v1386_v39 = vpop.f32.mrb[47].mxu0 }
 0x175   :  { %v3181_v63 = vpop.eup %3180  ;;  %v1586_v48 = vadd.f32 1.0, %v3179_v5  ;;  %3198 = vpow2.f32 %v2585_v53  ;;  %v3935_v43 = vadd.f32 %v2960_v42, %v3777_v14  ;;  %v2962_v60 = vadd.f32 %v1386_v39, %v3772_v13 }
 0x176   :  { %v3183_v11 = vpop.eup %3182  ;;  %v1584_v52 = vadd.f32 1.0, %v3181_v63  ;;  %3200 = vpow2.f32 %v2583_v41  ;;  %v3940_v16 = vadd.f32 %v2961_v10, %v3777_v14  ;;  %v2588_v54 = vmul.f32 -1.442695, %v3931_v28 }
 0x177   :  { %v3185_v45 = vpop.eup %3184  ;;  %3202 = vrcp.f32 %v1586_v48  ;;  %v1587_v12 = vadd.f32 1.0, %v3183_v11  ;;  %v3944_v57 = vadd.f32 %v2962_v60, %v3777_v14  ;;  %v2586_v13 = vmul.f32 -1.442695, %v3935_v43 }
 0x178   :  { %3204 = vrcp.f32 %v1584_v52  ;;  %v1585_v1 = vadd.f32 1.0, %v3185_v45  ;;  %v1698_v58 = vpack.c.bf16 %v1673_v23, %v1672_v50  ;;  %v2589_v55 = vmul.f32 -1.442695, %v3940_v16 }
 0x179   :  { %v3187_v15 = vpop.eup %3186  ;;  %3206 = vrcp.f32 %v1587_v12  ;;  %v1699_v59 = vpack.c.bf16 %v1675_v4, %v1674_v38  ;;  %v2587_v19 = vmul.f32 -1.442695, %v3944_v57 }
 0x17a   :  { %v3189_v6 = vpop.eup %3188  ;;  %3208 = vrcp.f32 %v1585_v1  ;;  %2893 = vmatprep.mubr.bf16.mxu1 %v1698_v58  ;;  %v1678_v61 = vmul.f32 %v3187_v15, %v3860_v20 }
 0x17b   :  { %v3191_v21 = vpop.eup %3190  ;;  %3210 = vpow2.f32 %v2588_v54  ;;  %2894 = vmatmul.mubr.bf16.gmra.mrb[44].mxu1 %v1699_v59  ;;  %v1676_v22 = vmul.f32 %v3189_v6, %v3863_v44 }
 0x17c   :  { %v3193_v14 = vpop.eup %3192  ;;  %v1679_v29 = vmul.f32 %v3191_v21, %v3870_v56  ;;  %3212 = vpow2.f32 %v2586_v13 }
 0x17d   :  { %v3195_v7 = vpop.eup %3194  ;;  %v1677_v24 = vmul.f32 %v3193_v14, %v3873_v0  ;;  %3214 = vpow2.f32 %v2589_v55 }
 0x17e   :  { %v3197_v25 = vpop.eup %3196  ;;  %v1590_v27 = vadd.f32 1.0, %v3195_v7  ;;  %3216 = vpow2.f32 %v2587_v19  ;;  %v1701_v8 = vpack.c.bf16 %v1679_v29, %v1678_v61 }
 0x17f   :  { %v3199_v36 = vpop.eup %3198  ;;  %v1588_v30 = vadd.f32 1.0, %v3197_v25  ;;  %v1700_v31 = vpack.c.bf16 %v1677_v24, %v1676_v22 }
 0x180   :  { %v3201_v9 = vpop.eup %3200  ;;  %3218 = vrcp.f32 %v1590_v27  ;;  %v1591_v18 = vadd.f32 1.0, %v3199_v36 }
 0x181   :  { %v3203_v20 = vpop.eup %3202  ;;  %3220 = vrcp.f32 %v1588_v30  ;;  %v1589_v56 = vadd.f32 1.0, %v3201_v9  ;;  %2897 = vmatprep.mubr.bf16.mxu1 %v1700_v31 }
 0x182   :  { %v3205_v32 = vpop.eup %3204  ;;  %3222 = vrcp.f32 %v1591_v18  ;;  %v1682_v53 = vmul.f32 %v3203_v20, %v3884_v40 }
 0x183   :  { %v3207_v44 = vpop.eup %3206  ;;  %3224 = vrcp.f32 %v1589_v56  ;;  %2898 = vmatmul.mubr.bf16.gmra.mrb[48].mxu1 %v1701_v8  ;;  %v1680_v41 = vmul.f32 %v3205_v32, %v3888_v46 }
 0x184   :  { %v3209_v0 = vpop.eup %3208  ;;  %v1683_v2 = vmul.f32 %v3207_v44, %v3893_v37 }
 0x185   :  { %v3211_v33 = vpop.eup %3210  ;;  %v1681_v34 = vmul.f32 %v3209_v0, %v3897_v26 }
 0x186   :  { %v3213_v3 = vpop.eup %3212  ;;  %v1594_v35 = vadd.f32 1.0, %v3211_v33  ;;  %v1703_v38 = vpack.c.bf16 %v1683_v2, %v1682_v53 }
 0x187   :  { %v3215_v4 = vpop.eup %3214  ;;  %v1592_v42 = vadd.f32 1.0, %v3213_v3  ;;  %v1702_v62 = vpack.c.bf16 %v1681_v34, %v1680_v41 }
 0x188   :  { %v3217_v5 = vpop.eup %3216  ;;  %3226 = vrcp.f32 %v1594_v35  ;;  %v1595_v23 = vadd.f32 1.0, %v3215_v4 }
 0x189   :  { %3228 = vrcp.f32 %v1592_v42  ;;  %v1593_v10 = vadd.f32 1.0, %v3217_v5  ;;  %2901 = vmatprep.mubr.bf16.mxu1 %v1702_v62 }
 0x18a   :  { %v3219_v40 = vpop.eup %3218  ;;  %3230 = vrcp.f32 %v1595_v23 }
 0x18b   :  { %v3221_v37 = vpop.eup %3220  ;;  %3232 = vrcp.f32 %v1593_v10  ;;  %2902 = vmatmul.mubr.bf16.gmra.mrb[52].mxu1 %v1703_v38  ;;  %v1686_v26 = vmul.f32 %v3219_v40, %v3907_v17 }
 0x18c   :  { %v3223_v46 = vpop.eup %3222  ;;  %v1684_v48 = vmul.f32 %v3221_v37, %v3911_v47 }
 0x18d   :  { %v3225_v39 = vpop.eup %3224  ;;  %v1687_v63 = vmul.f32 %v3223_v46, %v3916_v51 }
 0x18e   :  { %v1685_v60 = vmul.f32 %v3225_v39, %v3920_v49  ;;  %v3968_v49 = vld [vmem:[%s4441_s7] ss:$0 sm:$0xff]  ;;  %s3378_s7 = smov 112  }
 0x18f   :  { %v1705_v11 = vpack.c.bf16 %v1687_v63, %v1686_v26 }
 0x190   :  { %v1704_v50 = vpack.c.bf16 %v1685_v60, %v1684_v48 }
 0x192   :  { %v3227_v52 = vpop.eup %3226  ;;  %2905 = vmatprep.mubr.bf16.mxu1 %v1704_v50 }
 0x193   :  { %v3229_v45 = vpop.eup %3228  ;;  %2906 = vmatmul.mubr.bf16.gmra.mrb[56].mxu1 %v1705_v11  ;;  %v1690_v1 = vmul.f32 %v3227_v52, %v3931_v28 }
 0x194   :  { %v3231_v12 = vpop.eup %3230  ;;  %v1688_v17 = vmul.f32 %v3229_v45, %v3935_v43 }
 0x195   :  { %v3233_v54 = vpop.eup %3232  ;;  %v1691_v13 = vmul.f32 %v3231_v12, %v3940_v16 }
 0x196   :  { %v1689_v51 = vmul.f32 %v3233_v54, %v3944_v57 }
 0x197   :  { %v1707_v58 = vpack.c.bf16 %v1691_v13, %v1690_v1 }
 0x198   :  { %v1706_v47 = vpack.c.bf16 %v1689_v51, %v1688_v17 }
 0x19a   :  { %2909 = vmatprep.mubr.bf16.mxu1 %v1706_v47 }
 0x19b   :  { %2910 = vmatmul.mubr.bf16.gmra.mrb[60].mxu1 %v1707_v58 }
 0x234   :  { %v2883_v15 = vpop.f32.mrb[32].mxu1 }
 0x235   :  { %v3971_v55 = vadd.f32 %v2883_v15, %v3968_v49  ;;  %v1812_v28 = vpop.f32.mrb[33].mxu1 }
 0x236   :  { %v3974_v16 = vadd.f32 %v3968_v49, %v1812_v28  ;;  %v2884_v43 = vpop.f32.mrb[34].mxu1 }
 0x237   :  { %v2601_v57 = vmul.f32 -1.442695, %v3971_v55  ;;  %v3978_v59 = vadd.f32 %v2884_v43, %v3968_v49  ;;  %v1815_v6 = vpop.f32.mrb[35].mxu1 }
 0x238   :  { %v2599_v19 = vmul.f32 -1.442695, %v3974_v16  ;;  %v3982_v21 = vadd.f32 %v3968_v49, %v1815_v6 }
 0x239   :  { %3234 = vpow2.f32 %v2601_v57  ;;  %v2602_v14 = vmul.f32 -1.442695, %v3978_v59 }
 0x23a   :  { %3236 = vpow2.f32 %v2599_v19  ;;  %v2600_v61 = vmul.f32 -1.442695, %v3982_v21 }
 0x23b   :  { %3238 = vpow2.f32 %v2602_v14 }
 0x23c   :  { %3240 = vpow2.f32 %v2600_v61 }
 0x23e   :  { %v2887_v29 = vpop.f32.mrb[36].mxu1 }
 0x23f   :  { %v3987_v7 = vadd.f32 %v2887_v29, %v3968_v49  ;;  %v1828_v22 = vpop.f32.mrb[37].mxu1 }
 0x240   :  { %v3990_v24 = vadd.f32 %v3968_v49, %v1828_v22  ;;  %v2888_v25 = vpop.f32.mrb[38].mxu1 }
 0x241   :  { %v2605_v27 = vmul.f32 -1.442695, %v3987_v7  ;;  %v3994_v8 = vadd.f32 %v2888_v25, %v3968_v49  ;;  %v1831_v36 = vpop.f32.mrb[39].mxu1 }
 0x242   :  { %v2603_v30 = vmul.f32 -1.442695, %v3990_v24  ;;  %v3998_v31 = vadd.f32 %v3968_v49, %v1831_v36 }
 0x243   :  { %v3235_v9 = vpop.eup %3234  ;;  %3242 = vpow2.f32 %v2605_v27  ;;  %v2606_v18 = vmul.f32 -1.442695, %v3994_v8 }
 0x244   :  { %v3237_v20 = vpop.eup %3236  ;;  %v2037_v56 = vadd.f32 1.0, %v3235_v9  ;;  %3244 = vpow2.f32 %v2603_v30  ;;  %v2604_v2 = vmul.f32 -1.442695, %v3998_v31 }
 0x245   :  { %v3239_v32 = vpop.eup %3238  ;;  %v2035_v44 = vadd.f32 1.0, %v3237_v20  ;;  %3246 = vpow2.f32 %v2606_v18 }
 0x246   :  { %v3241_v0 = vpop.eup %3240  ;;  %3248 = vrcp.f32 %v2037_v56  ;;  %v2038_v53 = vadd.f32 1.0, %v3239_v32  ;;  %v2891_v33 = vpop.f32.mrb[40].mxu1 }
 0x247   :  { %3250 = vrcp.f32 %v2035_v44  ;;  %v2036_v41 = vadd.f32 1.0, %v3241_v0  ;;  %v4003_v34 = vadd.f32 %v2891_v33, %v3968_v49  ;;  %v1844_v3 = vpop.f32.mrb[41].mxu1 }
 0x248   :  { %3252 = vrcp.f32 %v2038_v53  ;;  %v4006_v35 = vadd.f32 %v3968_v49, %v1844_v3  ;;  %v2892_v38 = vpop.f32.mrb[42].mxu1 }
 0x249   :  { %3254 = vrcp.f32 %v2036_v41  ;;  %v2609_v4 = vmul.f32 -1.442695, %v4003_v34  ;;  %v4010_v42 = vadd.f32 %v2892_v38, %v3968_v49  ;;  %v1847_v62 = vpop.f32.mrb[43].mxu1 }
 0x24a   :  { %3256 = vpow2.f32 %v2604_v2  ;;  %v2607_v5 = vmul.f32 -1.442695, %v4006_v35  ;;  %v4014_v23 = vadd.f32 %v3968_v49, %v1847_v62 }
 0x24b   :  { %3258 = vpow2.f32 %v2609_v4  ;;  %v2610_v10 = vmul.f32 -1.442695, %v4010_v42 }
 0x24c   :  { %3260 = vpow2.f32 %v2607_v5  ;;  %v2608_v40 = vmul.f32 -1.442695, %v4014_v23 }
 0x24d   :  { %v3243_v37 = vpop.eup %3242  ;;  %3262 = vpow2.f32 %v2610_v10 }
 0x24e   :  { %v3245_v46 = vpop.eup %3244  ;;  %v2041_v39 = vadd.f32 1.0, %v3243_v37  ;;  %3264 = vpow2.f32 %v2608_v40  ;;  %v2895_v26 = vpop.f32.mrb[44].mxu1 }
 0x24f   :  { %v3247_v63 = vpop.eup %3246  ;;  %v2039_v48 = vadd.f32 1.0, %v3245_v46  ;;  %v4019_v60 = vadd.f32 %v2895_v26, %v3968_v49  ;;  %v1860_v11 = vpop.f32.mrb[45].mxu1 }
 0x250   :  { %v3249_v50 = vpop.eup %3248  ;;  %3266 = vrcp.f32 %v2041_v39  ;;  %v2042_v52 = vadd.f32 1.0, %v3247_v63  ;;  %v4022_v45 = vadd.f32 %v3968_v49, %v1860_v11  ;;  %v2896_v12 = vpop.f32.mrb[46].mxu1 }
 0x251   :  { %v3251_v54 = vpop.eup %3250  ;;  %3268 = vrcp.f32 %v2039_v48  ;;  %v2613_v1 = vmul.f32 -1.442695, %v4019_v60  ;;  %v4026_v13 = vadd.f32 %v2896_v12, %v3968_v49  ;;  %v1863_v17 = vpop.f32.mrb[47].mxu1  ;;  %2199 = vrot.lane.b32.xlu1 %v3249_v50, %s3378_s7  ;;  %v4030_v51 = vmul.f32 %v3249_v50, %v3971_v55 }
 0x252   :  { %v3253_v58 = vpop.eup %3252  ;;  %3270 = vrcp.f32 %v2042_v52  ;;  %v2611_v47 = vmul.f32 -1.442695, %v4022_v45  ;;  %v4034_v15 = vadd.f32 %v3968_v49, %v1863_v17  ;;  %2195 = vrot.lane.b32.xlu0 %v3251_v54, %s3378_s7  ;;  %v4038_v28 = vmul.f32 %v3251_v54, %v3974_v16 }
 0x253   :  { %v3255_v43 = vpop.eup %3254  ;;  %3272 = vpow2.f32 %v2613_v1  ;;  %v2614_v57 = vmul.f32 -1.442695, %v4026_v13  ;;  %v4042_v6 = vmul.f32 %v3253_v58, %v3978_v59 }
 0x254   :  { %v3257_v55 = vpop.eup %3256  ;;  %3274 = vpow2.f32 %v2611_v47  ;;  %v2612_v19 = vmul.f32 -1.442695, %v4034_v15  ;;  %v4046_v14 = vmul.f32 %v3255_v43, %v3982_v21 }
 0x255   :  { %v3259_v61 = vpop.eup %3258  ;;  %v2040_v29 = vadd.f32 1.0, %v3257_v55  ;;  %3276 = vpow2.f32 %v2614_v57  ;;  %2201 = vrot.lane.b32.xlu1 %v3253_v58, %s3378_s7 }
 0x256   :  { %v3261_v16 = vpop.eup %3260  ;;  %v2045_v22 = vadd.f32 1.0, %v3259_v61  ;;  %3278 = vpow2.f32 %v2612_v19  ;;  %v2899_v25 = vpop.f32.mrb[48].mxu1  ;;  %2197 = vrot.lane.b32.xlu0 %v3255_v43, %s3378_s7 }
 0x257   :  { %v3263_v59 = vpop.eup %3262  ;;  %3280 = vrcp.f32 %v2040_v29  ;;  %v2043_v27 = vadd.f32 1.0, %v3261_v16  ;;  %v4051_v36 = vadd.f32 %v2899_v25, %v3968_v49  ;;  %v1876_v30 = vpop.f32.mrb[49].mxu1 }
 0x258   :  { %v3265_v21 = vpop.eup %3264  ;;  %3282 = vrcp.f32 %v2045_v22  ;;  %v2046_v9 = vadd.f32 1.0, %v3263_v59  ;;  %v4054_v18 = vadd.f32 %v3968_v49, %v1876_v30  ;;  %v2900_v20 = vpop.f32.mrb[50].mxu1 }
 0x259   :  { %3284 = vrcp.f32 %v2043_v27  ;;  %v2044_v56 = vadd.f32 1.0, %v3265_v21  ;;  %v2617_v32 = vmul.f32 -1.442695, %v4051_v36  ;;  %v4058_v44 = vadd.f32 %v2900_v20, %v3968_v49  ;;  %v1879_v0 = vpop.f32.mrb[51].mxu1 }
 0x25a   :  { %v3267_v53 = vpop.eup %3266  ;;  %3286 = vrcp.f32 %v2046_v9  ;;  %v2615_v2 = vmul.f32 -1.442695, %v4054_v18  ;;  %v4062_v33 = vadd.f32 %v3968_v49, %v1879_v0 }
 0x25b   :  { %v3269_v41 = vpop.eup %3268  ;;  %3288 = vrcp.f32 %v2044_v56  ;;  %v2618_v3 = vmul.f32 -1.442695, %v4058_v44  ;;  %2207 = vrot.lane.b32.xlu0 %v3267_v53, %s3378_s7  ;;  %v4067_v38 = vmul.f32 %v3267_v53, %v3987_v7 }
 0x25c   :  { %v3271_v4 = vpop.eup %3270  ;;  %3290 = vpow2.f32 %v2617_v32  ;;  %v2616_v62 = vmul.f32 -1.442695, %v4062_v33  ;;  %v4071_v5 = vmul.f32 %v3269_v41, %v3990_v24 }
 0x25d   :  { %v3273_v10 = vpop.eup %3272  ;;  %3292 = vpow2.f32 %v2615_v2  ;;  %2209 = vrot.lane.b32.xlu1 %v3271_v4, %s3378_s7  ;;  %v4075_v40 = vmul.f32 %v3271_v4, %v3994_v8 }
 0x25e   :  { %v3275_v37 = vpop.eup %3274  ;;  %v2049_v46 = vadd.f32 1.0, %v3273_v10  ;;  %3294 = vpow2.f32 %v2618_v3  ;;  %v2903_v39 = vpop.f32.mrb[52].mxu1 }
 0x25f   :  { %v3277_v7 = vpop.eup %3276  ;;  %v2047_v26 = vadd.f32 1.0, %v3275_v37  ;;  %3296 = vpow2.f32 %v2616_v62  ;;  %v4078_v63 = vadd.f32 %v2903_v39, %v3968_v49  ;;  %v1892_v48 = vpop.f32.mrb[53].mxu1  ;;  %2203 = vrot.lane.b32.xlu0 %v3269_v41, %s3378_s7 }
 0x260   :  { %v3279_v24 = vpop.eup %3278  ;;  %3298 = vrcp.f32 %v2049_v46  ;;  %v2050_v11 = vadd.f32 1.0, %v3277_v7  ;;  %v4082_v50 = vadd.f32 %v3968_v49, %v1892_v48  ;;  %v2904_v8 = vpop.f32.mrb[54].mxu1 }
 0x261   :  { %v3281_v52 = vpop.eup %3280  ;;  %3300 = vrcp.f32 %v2047_v26  ;;  %v2048_v12 = vadd.f32 1.0, %v3279_v24  ;;  %v2621_v54 = vmul.f32 -1.442695, %v4078_v63  ;;  %v4086_v1 = vadd.f32 %v2904_v8, %v3968_v49  ;;  %v1895_v17 = vpop.f32.mrb[55].mxu1 }
 0x262   :  { %v3283_v58 = vpop.eup %3282  ;;  %3302 = vrcp.f32 %v2050_v11  ;;  %v2619_v47 = vmul.f32 -1.442695, %v4082_v50  ;;  %v4090_v43 = vadd.f32 %v3968_v49, %v1895_v17  ;;  %2205 = vrot.lane.b32.xlu1 %v3281_v52, %s3378_s7  ;;  %v4094_v57 = vmul.f32 %v3281_v52, %v3998_v31 }
 0x263   :  { %v3285_v55 = vpop.eup %3284  ;;  %3304 = vrcp.f32 %v2048_v12  ;;  %v2622_v19 = vmul.f32 -1.442695, %v4086_v1  ;;  %2215 = vrot.lane.b32.xlu0 %v3283_v58, %s3378_s7  ;;  %v4099_v61 = vmul.f32 %v3283_v58, %v4003_v34 }
 0x264   :  { %v3287_v29 = vpop.eup %3286  ;;  %3306 = vpow2.f32 %v2621_v54  ;;  %v2620_v16 = vmul.f32 -1.442695, %v4090_v43  ;;  %v4103_v22 = vmul.f32 %v3285_v55, %v4006_v35 }
 0x265   :  { %v3289_v25 = vpop.eup %3288  ;;  %3308 = vpow2.f32 %v2619_v47  ;;  %v4106_v31 = vmul.f32 %v3287_v29, %v4010_v42 }
 0x266   :  { %v3291_v59 = vpop.eup %3290  ;;  %3310 = vpow2.f32 %v2622_v19  ;;  %2217 = vrot.lane.b32.xlu1 %v3287_v29, %s3378_s7  ;;  %v2907_v27 = vpop.f32.mrb[56].mxu1  ;;  %v4110_v34 = vmul.f32 %v3289_v25, %v4014_v23 }
 0x267   :  { %v3293_v30 = vpop.eup %3292  ;;  %v2053_v21 = vadd.f32 1.0, %v3291_v59  ;;  %3312 = vpow2.f32 %v2620_v16  ;;  %v4113_v9 = vadd.f32 %v2907_v27, %v3968_v49  ;;  %v1908_v35 = vpop.f32.mrb[57].mxu1  ;;  %2211 = vrot.lane.b32.xlu0 %v3285_v55, %s3378_s7 }
 0x268   :  { %v3295_v20 = vpop.eup %3294  ;;  %v2051_v42 = vadd.f32 1.0, %v3293_v30  ;;  %v4117_v56 = vadd.f32 %v3968_v49, %v1908_v35  ;;  %v2908_v32 = vpop.f32.mrb[58].mxu1 }
 0x269   :  { %v3297_v0 = vpop.eup %3296  ;;  %3314 = vrcp.f32 %v2053_v21  ;;  %v2054_v53 = vadd.f32 1.0, %v3295_v20  ;;  %v2625_v23 = vmul.f32 -1.442695, %v4113_v9  ;;  %v4121_v2 = vadd.f32 %v2908_v32, %v3968_v49  ;;  %v1911_v41 = vpop.f32.mrb[59].mxu1 }
 0x26a   :  { %v3299_v3 = vpop.eup %3298  ;;  %3316 = vrcp.f32 %v2051_v42  ;;  %v2052_v4 = vadd.f32 1.0, %v3297_v0  ;;  %v2623_v62 = vmul.f32 -1.442695, %v4117_v56  ;;  %v4125_v10 = vadd.f32 %v3968_v49, %v1911_v41  ;;  %2213 = vrot.lane.b32.xlu1 %v3289_v25, %s3378_s7 }
 0x26b   :  { %v3301_v37 = vpop.eup %3300  ;;  %3318 = vrcp.f32 %v2054_v53  ;;  %v2626_v46 = vmul.f32 -1.442695, %v4121_v2  ;;  %2223 = vrot.lane.b32.xlu0 %v3299_v3, %s3378_s7  ;;  %v4131_v39 = vmul.f32 %v3299_v3, %v4019_v60 }
 0x26c   :  { %v3303_v7 = vpop.eup %3302  ;;  %3320 = vrcp.f32 %v2052_v4  ;;  %v2624_v26 = vmul.f32 -1.442695, %v4125_v10  ;;  %v4135_v48 = vmul.f32 %v3301_v37, %v4022_v45 }
 0x26d   :  { %v3305_v24 = vpop.eup %3304  ;;  %3322 = vpow2.f32 %v2625_v23  ;;  %v4138_v11 = vmul.f32 %v3303_v7, %v4026_v13 }
 0x26e   :  { %v3307_v8 = vpop.eup %3306  ;;  %3324 = vpow2.f32 %v2623_v62  ;;  %2225 = vrot.lane.b32.xlu1 %v3303_v7, %s3378_s7  ;;  %v2911_v52 = vpop.f32.mrb[60].mxu1  ;;  %v4142_v60 = vmul.f32 %v3305_v24, %v4034_v15 }
 0x26f   :  { %v3309_v12 = vpop.eup %3308  ;;  %v2057_v54 = vadd.f32 1.0, %v3307_v8  ;;  %3326 = vpow2.f32 %v2626_v46  ;;  %v4145_v17 = vadd.f32 %v2911_v52, %v3968_v49  ;;  %v1924_v45 = vpop.f32.mrb[61].mxu1  ;;  %2219 = vrot.lane.b32.xlu0 %v3301_v37, %s3378_s7 }
 0x270   :  { %v3311_v58 = vpop.eup %3310  ;;  %v2055_v13 = vadd.f32 1.0, %v3309_v12  ;;  %3328 = vpow2.f32 %v2624_v26  ;;  %v4149_v47 = vadd.f32 %v3968_v49, %v1924_v45  ;;  %v2912_v55 = vpop.f32.mrb[62].mxu1 }
 0x271   :  { %v3313_v19 = vpop.eup %3312  ;;  %3330 = vrcp.f32 %v2057_v54  ;;  %v2058_v15 = vadd.f32 1.0, %v3311_v58  ;;  %v2629_v29 = vmul.f32 -1.442695, %v4145_v17  ;;  %v4153_v16 = vadd.f32 %v2912_v55, %v3968_v49  ;;  %v1927_v25 = vpop.f32.mrb[63].mxu1 }
 0x272   :  { %3332 = vrcp.f32 %v2055_v13  ;;  %v2056_v59 = vadd.f32 1.0, %v3313_v19  ;;  %v2627_v27 = vmul.f32 -1.442695, %v4149_v47  ;;  %v4157_v30 = vadd.f32 %v3968_v49, %v1927_v25  ;;  %2221 = vrot.lane.b32.xlu1 %v3305_v24, %s3378_s7 }
 0x273   :  { %v3315_v21 = vpop.eup %3314  ;;  %3334 = vrcp.f32 %v2058_v15  ;;  %v2630_v35 = vmul.f32 -1.442695, %v4153_v16 }
 0x274   :  { %v3317_v20 = vpop.eup %3316  ;;  %3336 = vrcp.f32 %v2056_v59  ;;  %v2628_v42 = vmul.f32 -1.442695, %v4157_v30  ;;  %2231 = vrot.lane.b32.xlu0 %v3315_v21, %s3378_s7  ;;  %v4164_v32 = vmul.f32 %v3315_v21, %v4051_v36 }
 0x275   :  { %v3319_v0 = vpop.eup %3318  ;;  %3338 = vpow2.f32 %v2629_v29  ;;  %v4167_v49 = vmul.f32 %v3317_v20, %v4054_v18 }
 0x276   :  { %v3321_v53 = vpop.eup %3320  ;;  %3340 = vpow2.f32 %v2627_v27  ;;  %2233 = vrot.lane.b32.xlu1 %v3319_v0, %s3378_s7  ;;  %v4171_v23 = vmul.f32 %v3319_v0, %v4058_v44 }
 0x277   :  { %v3323_v41 = vpop.eup %3322  ;;  %3342 = vpow2.f32 %v2630_v35  ;;  %v4174_v3 = vmul.f32 %v3321_v53, %v4062_v33 }
 0x278   :  { %v3325_v4 = vpop.eup %3324  ;;  %v2061_v36 = vadd.f32 1.0, %v3323_v41  ;;  %3344 = vpow2.f32 %v2628_v42  ;;  %2227 = vrot.lane.b32.xlu0 %v3317_v20, %s3378_s7 }
 0x279   :  { %v3327_v62 = vpop.eup %3326  ;;  %v2059_v18 = vadd.f32 1.0, %v3325_v4 }
 0x27a   :  { %v3329_v37 = vpop.eup %3328  ;;  %3346 = vrcp.f32 %v2061_v36  ;;  %v2062_v46 = vadd.f32 1.0, %v3327_v62  ;;  %2229 = vrot.lane.b32.xlu1 %v3321_v53, %s3378_s7 }
 0x27b   :  { %v3331_v7 = vpop.eup %3330  ;;  %3348 = vrcp.f32 %v2059_v18  ;;  %v2060_v44 = vadd.f32 1.0, %v3329_v37 }
 0x27c   :  { %v3333_v26 = vpop.eup %3332  ;;  %3350 = vrcp.f32 %v2062_v46  ;;  %2239 = vrot.lane.b32.xlu0 %v3331_v7, %s3378_s7  ;;  %v4180_v33 = vmul.f32 %v3331_v7, %v4078_v63 }
 0x27d   :  { %v3335_v24 = vpop.eup %3334  ;;  %3352 = vrcp.f32 %v2060_v44  ;;  %v4183_v8 = vmul.f32 %v3333_v26, %v4082_v50 }
 0x27e   :  { %v3337_v52 = vpop.eup %3336  ;;  %2241 = vrot.lane.b32.xlu1 %v3335_v24, %s3378_s7  ;;  %v4187_v12 = vmul.f32 %v3335_v24, %v4086_v1 }
 0x27f   :  { %v3339_v54 = vpop.eup %3338  ;;  %v4190_v45 = vmul.f32 %v3337_v52, %v4090_v43 }
 0x280   :  { %v3341_v58 = vpop.eup %3340  ;;  %v2065_v13 = vadd.f32 1.0, %v3339_v54  ;;  %2235 = vrot.lane.b32.xlu0 %v3333_v26, %s3378_s7  ;;  %v3364_v54 = vld [vmem:[%s4435_s1 + $0x18] sm:$0xff]  }
 0x281   :  { %v3343_v63 = vpop.eup %3342  ;;  %v2063_v55 = vadd.f32 1.0, %v3341_v58 }
 0x282   :  { %v3345_v19 = vpop.eup %3344  ;;  %3354 = vrcp.f32 %v2065_v13  ;;  %v2066_v50 = vadd.f32 1.0, %v3343_v63  ;;  %2237 = vrot.lane.b32.xlu1 %v3337_v52, %s3378_s7  ;;  %v2330_v13 = vunpack.c.h.bf16 %v3364_v54 }
 0x283   :  { %3356 = vrcp.f32 %v2063_v55  ;;  %v2064_v15 = vadd.f32 1.0, %v3345_v19 }
 0x284   :  { %v3347_v29 = vpop.eup %3346  ;;  %3358 = vrcp.f32 %v2066_v50  ;;  %v3365_v50 = vld [vmem:[%s4435_s1 + $0x10] sm:$0xff]  }
 0x285   :  { %v3349_v1 = vpop.eup %3348  ;;  %3360 = vrcp.f32 %v2064_v15  ;;  %2247 = vrot.lane.b32.xlu0 %v3347_v29, %s3378_s7  ;;  %v4196_v43 = vmul.f32 %v3347_v29, %v4113_v9  ;;  %v2327_v15 = vunpack.c.l.bf16 %v3365_v50 }
 0x286   :  { %v3351_v25 = vpop.eup %3350  ;;  %v4199_v59 = vmul.f32 %v3349_v1, %v4117_v56 }
 0x287   :  { %v3353_v27 = vpop.eup %3352  ;;  %2249 = vrot.lane.b32.xlu1 %v3351_v25, %s3378_s7  ;;  %v4203_v21 = vmul.f32 %v3351_v25, %v4121_v2 }
 0x288   :  { %v4206_v35 = vmul.f32 %v3353_v27, %v4125_v10 }
 0x289   :  { %2243 = vrot.lane.b32.xlu0 %v3349_v1, %s3378_s7 }
 0x28b   :  { %2245 = vrot.lane.b32.xlu1 %v3353_v27, %s3378_s7 }
 0x28c   :  { %v3355_v20 = vpop.eup %3354 }
 0x28d   :  { %v3357_v9 = vpop.eup %3356  ;;  %v4211_v42 = vmul.f32 %v3355_v20, %v4145_v17  ;;  %v3362_v17 = vld [vmem:[%s4435_s1 + $0x8] sm:$0xff]  }
 0x28e   :  { %v3359_v56 = vpop.eup %3358  ;;  %2251 = vrot.lane.b32.xlu0 %v3357_v9, %s3378_s7  ;;  %v4215_v0 = vmul.f32 %v3357_v9, %v4149_v47  ;;  %v2325_v41 = vunpack.c.l.bf16 %v3362_v17  ;;  %v3363_v47 = vld [vmem:[%s4435_s1] sm:$0xff]   ;;  %v2326_v37 = vunpack.c.h.bf16 %v3362_v17 }
 0x28f   :  { %v3361_v2 = vpop.eup %3360  ;;  %v4218_v53 = vmul.f32 %v3359_v56, %v4153_v16  ;;  %v2323_v16 = vunpack.c.l.bf16 %v3363_v47  ;;  %v2324_v46 = vunpack.c.h.bf16 %v3363_v47 }
 0x290   :  { %2253 = vrot.lane.b32.xlu1 %v3361_v2, %s3378_s7  ;;  %v4222_v10 = vmul.f32 %v3361_v2, %v4157_v30 }
 0x292   :  { %2255 = vrot.lane.b32.xlu0 %v3355_v20, %s3378_s7  ;;  %v3366_v20 = vld [vmem:[%s4435_s1 + $0x28] sm:$0xff]  }
 0x293   :  { %v2333_v9 = vunpack.c.l.bf16 %v3366_v20 }
 0x294   :  { %2257 = vrot.lane.b32.xlu1 %v3359_v56, %s3378_s7 }
 0x2c3   :  { %v2200_v4 = vpop.permute.xlu1 %2199 }
 0x2c4   :  { %v2293_v36 = vmul.f32 %v2200_v4, %v4030_v51  ;;  %v2196_v62 = vpop.permute.xlu0 %2195  ;;  %v3367_v4 = vld [vmem:[%s4435_s1 + $0x20] sm:$0xff]  }
 0x2c5   :  { %v2291_v30 = vmul.f32 %v2196_v62, %v4038_v28 }
 0x2c6   :  { %v2357_v18 = vadd.f32 %v2325_v41, %v2293_v36  ;;  %v2334_v41 = vunpack.c.h.bf16 %v3366_v20  ;;  %v2331_v36 = vunpack.c.l.bf16 %v3367_v4 }
 0x2c7   :  { %v2355_v7 = vadd.f32 %v2323_v16, %v2291_v30  ;;  %v2202_v44 = vpop.permute.xlu1 %2201 }
 0x2c8   :  { %2389 = vst.msk [vmem:[%s4442_s8 + $0x10] sm:$0xff] %vm252_vm0, %v2357_v18  ;;  %v2294_v26 = vmul.f32 %v2202_v44, %v4042_v6  ;;  %v2198_v24 = vpop.permute.xlu0 %2197  ;;  %v2329_v6 = vunpack.c.l.bf16 %v3364_v54  ;;  %v2332_v18 = vunpack.c.h.bf16 %v3367_v4  ;;  %v3369_v54 = vld [vmem:[%s4435_s1 + $0x30] sm:$0xff]  }
 0x2c9   :  { %2387 = vst.msk [vmem:[%s4442_s8] sm:$0xff] %vm252_vm0, %v2355_v7  ;;  %v2292_v51 = vmul.f32 %v2198_v24, %v4046_v14  ;;  %v3368_v7 = vld [vmem:[%s4435_s1 + $0x38] sm:$0xff]  }
 0x2ca   :  { %v2358_v28 = vadd.f32 %v2326_v37, %v2294_v26  ;;  %v2337_v44 = vunpack.c.l.bf16 %v3368_v7 }
 0x2cb   :  { %v2356_v52 = vadd.f32 %v2324_v46, %v2292_v51  ;;  %v2338_v51 = vunpack.c.h.bf16 %v3368_v7 }
 0x2cc   :  { %2390 = vst.msk [vmem:[%s4442_s8 + $0x18] sm:$0xff] %vm252_vm0, %v2358_v28 }
 0x2cd   :  { %2388 = vst.msk [vmem:[%s4442_s8 + $0x8] sm:$0xff] %vm252_vm0, %v2356_v52  ;;  %v2208_v58 = vpop.permute.xlu0 %2207 }
 0x2ce   :  { %v2297_v14 = vmul.f32 %v2208_v58, %v4067_v38  ;;  %v2328_v38 = vunpack.c.h.bf16 %v3365_v50 }
 0x2cf   :  { %v2210_v63 = vpop.permute.xlu1 %2209 }
 0x2d0   :  { %v2361_v55 = vadd.f32 %v2329_v6, %v2297_v14  ;;  %v2298_v19 = vmul.f32 %v2210_v63, %v4075_v40  ;;  %v2335_v6 = vunpack.c.l.bf16 %v3369_v54 }
 0x2d1   :  { %v2204_v29 = vpop.permute.xlu0 %2203 }
 0x2d2   :  { %2393 = vst.msk [vmem:[%s4442_s8 + $0x30] sm:$0xff] %vm252_vm0, %v2361_v55  ;;  %v2362_v1 = vadd.f32 %v2330_v13, %v2298_v19  ;;  %v2295_v25 = vmul.f32 %v2204_v29, %v4071_v5  ;;  %v2336_v13 = vunpack.c.h.bf16 %v3369_v54 }
 0x2d4   :  { %2394 = vst.msk [vmem:[%s4442_s8 + $0x38] sm:$0xff] %vm252_vm0, %v2362_v1  ;;  %v2359_v40 = vadd.f32 %v2327_v15, %v2295_v25  ;;  %v2206_v27 = vpop.permute.xlu1 %2205 }
 0x2d5   :  { %v2296_v56 = vmul.f32 %v2206_v27, %v4094_v57  ;;  %v2216_v2 = vpop.permute.xlu0 %2215 }
 0x2d6   :  { %2391 = vst.msk [vmem:[%s4442_s8 + $0x20] sm:$0xff] %vm252_vm0, %v2359_v40  ;;  %v2301_v5 = vmul.f32 %v2216_v2, %v4099_v61 }
 0x2d7   :  { %v2360_v17 = vadd.f32 %v2328_v38, %v2296_v56 }
 0x2d8   :  { %v2365_v47 = vadd.f32 %v2333_v9, %v2301_v5  ;;  %v2218_v16 = vpop.permute.xlu1 %2217 }
 0x2d9   :  { %2392 = vst.msk [vmem:[%s4442_s8 + $0x28] sm:$0xff] %vm252_vm0, %v2360_v17  ;;  %v2302_v57 = vmul.f32 %v2218_v16, %v4106_v31  ;;  %v2212_v62 = vpop.permute.xlu0 %2211 }
 0x2da   :  { %2397 = vst.msk [vmem:[%s4442_s8 + $0x50] sm:$0xff] %vm252_vm0, %v2365_v47  ;;  %v2299_v61 = vmul.f32 %v2212_v62, %v4103_v22  ;;  %v3373_v62 = vld [vmem:[%s4435_s1 + $0x50] sm:$0xff]  }
 0x2db   :  { %v2366_v30 = vadd.f32 %v2334_v41, %v2302_v57 }
 0x2dc   :  { %v2363_v37 = vadd.f32 %v2331_v36, %v2299_v61  ;;  %v2214_v46 = vpop.permute.xlu1 %2213  ;;  %v2343_v61 = vunpack.c.l.bf16 %v3373_v62 }
 0x2dd   :  { %2398 = vst.msk [vmem:[%s4442_s8 + $0x58] sm:$0xff] %vm252_vm0, %v2366_v30  ;;  %v2300_v31 = vmul.f32 %v2214_v46, %v4110_v34  ;;  %v2224_v26 = vpop.permute.xlu0 %2223 }
 0x2de   :  { %2395 = vst.msk [vmem:[%s4442_s8 + $0x40] sm:$0xff] %vm252_vm0, %v2363_v37  ;;  %v2305_v22 = vmul.f32 %v2224_v26, %v4131_v39  ;;  %v2344_v37 = vunpack.c.h.bf16 %v3373_v62 }
 0x2df   :  { %v2364_v24 = vadd.f32 %v2332_v18, %v2300_v31 }
 0x2e0   :  { %v2369_v28 = vadd.f32 %v2337_v44, %v2305_v22  ;;  %v2226_v52 = vpop.permute.xlu1 %2225  ;;  %v3374_v44 = vld [vmem:[%s4435_s1 + $0x68] sm:$0xff]  }
 0x2e1   :  { %2396 = vst.msk [vmem:[%s4442_s8 + $0x48] sm:$0xff] %vm252_vm0, %v2364_v24  ;;  %v2306_v34 = vmul.f32 %v2226_v52, %v4138_v11  ;;  %v2220_v58 = vpop.permute.xlu0 %2219  ;;  %v3370_v11 = vld [vmem:[%s4435_s1 + $0x48] sm:$0xff]   ;;  %v2349_v31 = vunpack.c.l.bf16 %v3374_v44  ;;  %v2350_v24 = vunpack.c.h.bf16 %v3374_v44  ;;  %v3375_v52 = vld [vmem:[%s4435_s1 + $0x60] sm:$0xff]  }
 0x2e2   :  { %2401 = vst.msk [vmem:[%s4442_s8 + $0x70] sm:$0xff] %vm252_vm0, %v2369_v28  ;;  %v2303_v39 = vmul.f32 %v2220_v58, %v4135_v48  ;;  %v2341_v50 = vunpack.c.l.bf16 %v3370_v11  ;;  %v2342_v1 = vunpack.c.h.bf16 %v3370_v11  ;;  %v2347_v54 = vunpack.c.l.bf16 %v3375_v52 }
 0x2e3   :  { %v2370_v14 = vadd.f32 %v2338_v51, %v2306_v34  ;;  %v2348_v58 = vunpack.c.h.bf16 %v3375_v52 }
 0x2e4   :  { %v2367_v63 = vadd.f32 %v2335_v6, %v2303_v39  ;;  %v2222_v55 = vpop.permute.xlu1 %2221 }
 0x2e5   :  { %2402 = vst.msk [vmem:[%s4442_s8 + $0x78] sm:$0xff] %vm252_vm0, %v2370_v14  ;;  %v2304_v19 = vmul.f32 %v2222_v55, %v4142_v60  ;;  %v3371_v60 = vld [vmem:[%s4435_s1 + $0x40] sm:$0xff]  }
 0x2e6   :  { %2399 = vst.msk [vmem:[%s4442_s8 + $0x60] sm:$0xff] %vm252_vm0, %v2367_v63  ;;  %v2232_v48 = vpop.permute.xlu0 %2231  ;;  %v2339_v38 = vunpack.c.l.bf16 %v3371_v60  ;;  %v2340_v9 = vunpack.c.h.bf16 %v3371_v60 }
 0x2e7   :  { %v2368_v15 = vadd.f32 %v2336_v13, %v2304_v19  ;;  %v2309_v29 = vmul.f32 %v2232_v48, %v4164_v32  ;;  %v3376_v13 = vld [vmem:[%s4435_s1 + $0x70] sm:$0xff]  }
 0x2e8   :  { %v2234_v25 = vpop.permute.xlu1 %2233  ;;  %v2351_v63 = vunpack.c.l.bf16 %v3376_v13  ;;  %v2352_v11 = vunpack.c.h.bf16 %v3376_v13 }
 0x2e9   :  { %2400 = vst.msk [vmem:[%s4442_s8 + $0x68] sm:$0xff] %vm252_vm0, %v2368_v15  ;;  %v2373_v40 = vadd.f32 %v2341_v50, %v2309_v29  ;;  %v2310_v27 = vmul.f32 %v2234_v25, %v4171_v23  ;;  %v3372_v23 = vld [vmem:[%s4435_s1 + $0x58] sm:$0xff]  }
 0x2ea   :  { %v2228_v20 = vpop.permute.xlu0 %2227  ;;  %v2345_v41 = vunpack.c.l.bf16 %v3372_v23  ;;  %v2346_v4 = vunpack.c.h.bf16 %v3372_v23  ;;  %v3377_v15 = vld [vmem:[%s4435_s1 + $0x78] sm:$0xff]  }
 0x2eb   :  { %2405 = vst.msk [vmem:[%s4442_s8 + $0x90] sm:$0xff] %vm252_vm0, %v2373_v40  ;;  %v2374_v32 = vadd.f32 %v2342_v1, %v2310_v27  ;;  %v2307_v56 = vmul.f32 %v2228_v20, %v4167_v49  ;;  %v2353_v29 = vunpack.c.l.bf16 %v3377_v15  ;;  %v2354_v60 = vunpack.c.h.bf16 %v3377_v15 }
 0x2ec   :  { %v2230_v2 = vpop.permute.xlu1 %2229 }
 0x2ed   :  { %2406 = vst.msk [vmem:[%s4442_s8 + $0x98] sm:$0xff] %vm252_vm0, %v2374_v32  ;;  %v2371_v5 = vadd.f32 %v2339_v38, %v2307_v56  ;;  %v2308_v17 = vmul.f32 %v2230_v2, %v4174_v3 }
 0x2ee   :  { %v2240_v47 = vpop.permute.xlu0 %2239 }
 0x2ef   :  { %2403 = vst.msk [vmem:[%s4442_s8 + $0x80] sm:$0xff] %vm252_vm0, %v2371_v5  ;;  %v2372_v49 = vadd.f32 %v2340_v9, %v2308_v17  ;;  %v2313_v16 = vmul.f32 %v2240_v47, %v4180_v33 }
 0x2f0   :  { %v2242_v36 = vpop.permute.xlu1 %2241 }
 0x2f1   :  { %2404 = vst.msk [vmem:[%s4442_s8 + $0x88] sm:$0xff] %vm252_vm0, %v2372_v49  ;;  %v2377_v3 = vadd.f32 %v2345_v41, %v2313_v16  ;;  %v2314_v57 = vmul.f32 %v2242_v36, %v4187_v12 }
 0x2f2   :  { %v2236_v30 = vpop.permute.xlu0 %2235 }
 0x2f3   :  { %2409 = vst.msk [vmem:[%s4442_s8 + $0xb0] sm:$0xff] %vm252_vm0, %v2377_v3  ;;  %v2378_v33 = vadd.f32 %v2346_v4, %v2314_v57  ;;  %v2311_v18 = vmul.f32 %v2236_v30, %v4183_v8 }
 0x2f4   :  { %v2238_v46 = vpop.permute.xlu1 %2237 }
 0x2f5   :  { %2410 = vst.msk [vmem:[%s4442_s8 + $0xb8] sm:$0xff] %vm252_vm0, %v2378_v33  ;;  %v2375_v12 = vadd.f32 %v2343_v61, %v2311_v18  ;;  %v2312_v7 = vmul.f32 %v2238_v46, %v4190_v45 }
 0x2f7   :  { %2407 = vst.msk [vmem:[%s4442_s8 + $0xa0] sm:$0xff] %vm252_vm0, %v2375_v12  ;;  %v2376_v8 = vadd.f32 %v2344_v37, %v2312_v7  ;;  %v2248_v26 = vpop.permute.xlu0 %2247 }
 0x2f8   :  { %v2317_v22 = vmul.f32 %v2248_v26, %v4196_v43 }
 0x2f9   :  { %2408 = vst.msk [vmem:[%s4442_s8 + $0xa8] sm:$0xff] %vm252_vm0, %v2376_v8  ;;  %v2250_v45 = vpop.permute.xlu1 %2249 }
 0x2fa   :  { %v2381_v51 = vadd.f32 %v2349_v31, %v2317_v22  ;;  %v2318_v28 = vmul.f32 %v2250_v45, %v4203_v21 }
 0x2fb   :  { %v2244_v6 = vpop.permute.xlu0 %2243 }
 0x2fc   :  { %2413 = vst.msk [vmem:[%s4442_s8 + $0xd0] sm:$0xff] %vm252_vm0, %v2381_v51  ;;  %v2382_v43 = vadd.f32 %v2350_v24, %v2318_v28  ;;  %v2315_v34 = vmul.f32 %v2244_v6, %v4199_v59 }
 0x2fd   :  { %v2246_v39 = vpop.permute.xlu1 %2245 }
 0x2fe   :  { %2414 = vst.msk [vmem:[%s4442_s8 + $0xd8] sm:$0xff] %vm252_vm0, %v2382_v43  ;;  %v2379_v21 = vadd.f32 %v2347_v54, %v2315_v34  ;;  %v2316_v14 = vmul.f32 %v2246_v39, %v4206_v35 }
 0x300   :  { %2411 = vst.msk [vmem:[%s4442_s8 + $0xc0] sm:$0xff] %vm252_vm0, %v2379_v21  ;;  %v2380_v59 = vadd.f32 %v2348_v58, %v2316_v14  ;;  %v2252_v55 = vpop.permute.xlu0 %2251 }
 0x301   :  { %v2319_v19 = vmul.f32 %v2252_v55, %v4215_v0 }
 0x302   :  { %2412 = vst.msk [vmem:[%s4442_s8 + $0xc8] sm:$0xff] %vm252_vm0, %v2380_v59  ;;  %v2254_v35 = vpop.permute.xlu1 %2253 }
 0x303   :  { %v2383_v50 = vadd.f32 %v2351_v63, %v2319_v19  ;;  %v2320_v48 = vmul.f32 %v2254_v35, %v4222_v10 }
 0x304   :  { %v2256_v1 = vpop.permute.xlu0 %2255 }
 0x305   :  { %2415 = vst.msk [vmem:[%s4442_s8 + $0xe0] sm:$0xff] %vm252_vm0, %v2383_v50  ;;  %v2384_v0 = vadd.f32 %v2352_v11, %v2320_v48  ;;  %v2321_v25 = vmul.f32 %v2256_v1, %v4211_v42 }
 0x306   :  { %v2258_v38 = vpop.permute.xlu1 %2257 }
 0x307   :  { %2416 = vst.msk [vmem:[%s4442_s8 + $0xe8] sm:$0xff] %vm252_vm0, %v2384_v0  ;;  %v2385_v10 = vadd.f32 %v2353_v29, %v2321_v25  ;;  %v2322_v40 = vmul.f32 %v2258_v38, %v4218_v53 }
 0x309   :  { %2417 = vst.msk [vmem:[%s4442_s8 + $0xf0] sm:$0xff] %vm252_vm0, %v2385_v10  ;;  %v2386_v27 = vadd.f32 %v2354_v60, %v2322_v40 }
 0x30b   :  { %2418 = vst.msk [vmem:[%s4442_s8 + $0xf8] sm:$0xff] %vm252_vm0, %v2386_v27 }

</bundles_post_ra>
